<compile_context>
chip_gen: v7x
topology: tpu7x:2x2x1
jax: 0.10.0
libtpu: 0.0.40
codegen_flags: <defaults>
</compile_context>

<pallas_src>
import jax
import jax.numpy as jnp
from jax.experimental import pallas as pl
from jax.experimental.pallas import tpu as pltpu

_EPS = 1e-5
_SLOPE = 0.2


# ----------------------------- small helpers -------------------------------

def _vmem():
    return pl.BlockSpec(memory_space=pltpu.MemorySpace.VMEM)


def _iota2(shape, dim):
    return jax.lax.broadcasted_iota(jnp.int32, shape, dim)


def _pair_select(n_out, n_in, k):
    """0/1 (n_out, n_in): output row r picks input row 2r+k (H downsample)."""
    r, c = _iota2((n_out, n_in), 0), _iota2((n_out, n_in), 1)
    return jnp.where(c == 2 * r + k, 1.0, 0.0).astype(jnp.bfloat16)


def _pair_expand(n_out, n_in, k):
    """0/1 (n_out, n_in): output row 2r+k receives input row r (H upsample)."""
    r, c = _iota2((n_out, n_in), 0), _iota2((n_out, n_in), 1)
    return jnp.where(r == 2 * c + k, 1.0, 0.0).astype(jnp.bfloat16)


def _repeat_rows(n_out, n_in, reps):
    """0/1 (n_out, n_in): output row i receives input row i // reps."""
    r, c = _iota2((n_out, n_in), 0), _iota2((n_out, n_in), 1)
    return jnp.where((r >= c * reps) & (r < (c + 1) * reps),
                     1.0, 0.0).astype(jnp.bfloat16)


def _dot(a, b):
    return jnp.dot(a, b, preferred_element_type=jnp.float32)


def _bn_cols(x):
    """Training-mode BN (batch stats, biased var, gamma=1, beta=0), per column."""
    mean = jnp.mean(x, axis=0, keepdims=True)
    d = x - mean
    var = jnp.mean(d * d, axis=0, keepdims=True)
    return d * jax.lax.rsqrt(var + _EPS)


def _bn_pooled_halves(x):
    """BN2d per channel where channel c occupies columns c and c+128 (k-major)."""
    m, c2 = x.shape
    c = c2 // 2
    a0, a1 = x[:, :c], x[:, c:]
    n = 2.0 * m
    mean = (jnp.sum(a0, axis=0, keepdims=True) +
            jnp.sum(a1, axis=0, keepdims=True)) / n
    d0, d1 = a0 - mean, a1 - mean
    var = (jnp.sum(d0 * d0, axis=0, keepdims=True) +
           jnp.sum(d1 * d1, axis=0, keepdims=True)) / n
    inv = jax.lax.rsqrt(var + _EPS)
    return d0 * inv, d1 * inv


def _lrelu(x):
    return jnp.maximum(x, _SLOPE * x)


# ------------------------ the single fused kernel ---------------------------

def _generator_kernel(
        # data
        z_ref, x0_ref, y_ref,
        # conditioner ("prev") conv path
        w0p_ref, b0p_ref,
        w1p0_ref, w1p1_ref, b1p_ref,
        w2p0_ref, w2p1_ref, b2p_ref,
        w3p0_ref, w3p1_ref, b3p_ref,
        # linear path
        wl1_ref, bl1_ref, wl2_ref, bl2_ref,
        # stacked y-conditioning weight (13, 2176)
        wy_ref,
        # deconv stack
        wd1x_ref, wd1p_ref, bd1_ref,
        wd2x_ref, wd2p_ref, bd2_ref,
        wd3x_ref, wd3p_ref, bd3_ref,
        w4x_ref, w4p_ref, b4_ref,
        # output (B*16, 128)
        o_ref):
    bf16 = jnp.bfloat16
    B = z_ref.shape[0]

    # ------------- conditioner path: 4 convs + BN2d + lrelu -----------------
    x0 = x0_ref[...].astype(bf16)                                # (B*16, 128)
    h0p = _lrelu(_bn_cols(_dot(x0, w0p_ref[...]) + b0p_ref[...]))
    h0p = h0p.astype(bf16)                                       # (B*16, 16)

    def prev_layer(x_b, w0, w1, b):
        # Conv2d(16,16,(2,1),(2,2)) == pair-fold matmul; fold via row-select.
        m = x_b.shape[0]
        xe = _dot(_pair_select(m // 2, m, 0), x_b).astype(bf16)  # rows 2r
        xo = _dot(_pair_select(m // 2, m, 1), x_b).astype(bf16)  # rows 2r+1
        pre = _dot(xe, w0) + _dot(xo, w1) + b
        return _lrelu(_bn_cols(pre)).astype(bf16)

    h1p = prev_layer(h0p, w1p0_ref[...], w1p1_ref[...], b1p_ref[...])  # (B*8,16)
    h2p = prev_layer(h1p, w2p0_ref[...], w2p1_ref[...], b2p_ref[...])  # (B*4,16)
    h3p = prev_layer(h2p, w3p0_ref[...], w3p1_ref[...], b3p_ref[...])  # (B*2,16)

    # -------- y contribution of ALL layers in one K=13 matmul ---------------
    yw = _dot(y_ref[...].astype(bf16), wy_ref[...])              # (B, 2176) f32

    # --------------------------- linear path --------------------------------
    h0 = _dot(z_ref[...].astype(bf16), wl1_ref[...]) + yw[:, 0:1024] + bl1_ref[...]
    h0 = jnp.maximum(_bn_cols(h0), 0.0)                          # (B, 1024)
    h1 = _dot(h0.astype(bf16), wl2_ref[...]) + yw[:, 1024:1280] + bl2_ref[...]
    h1 = jnp.maximum(_bn_cols(h1), 0.0)                          # (B, 256) h-major
    # h-major columns -> row-interleaved (B*2, 128) activation (torch .view)
    a0 = h1[:, :128].astype(bf16)
    a1 = h1[:, 128:].astype(bf16)
    x = (_dot(_pair_expand(2 * B, B, 0), a0) +
         _dot(_pair_expand(2 * B, B, 1), a1)).astype(bf16)       # (B*2, 128)

    # ------------------------ deconv stack h1..h3 ---------------------------
    def deconv(x_b, p_b, wx, wp, b, yw_slice):
        m = x_b.shape[0]                                         # B * H_in
        yc = _dot(_repeat_rows(m, B, m // B), yw_slice.astype(bf16))   # (m,256)
        pre = _dot(x_b, wx) + _dot(p_b, wp) + yc + b             # k-major cols
        c0, c1 = _bn_pooled_halves(pre)                          # BN2d + relu
        c0 = jnp.maximum(c0, 0.0).astype(bf16)
        c1 = jnp.maximum(c1, 0.0).astype(bf16)
        # interleave the two k-halves into rows: (m,256) -> (2m,128)
        return (_dot(_pair_expand(2 * m, m, 0), c0) +
                _dot(_pair_expand(2 * m, m, 1), c1)).astype(bf16)

    x = deconv(x, h3p, wd1x_ref[...], wd1p_ref[...], bd1_ref[...],
               yw[:, 1280:1536])                                 # (B*4, 128)
    x = deconv(x, h2p, wd2x_ref[...], wd2p_ref[...], bd2_ref[...],
               yw[:, 1536:1792])                                 # (B*8, 128)
    x = deconv(x, h1p, wd3x_ref[...], wd3p_ref[...], bd3_ref[...],
               yw[:, 1792:2048])                                 # (B*16, 128)

    # ------------------- final (1,128) deconv + sigmoid ---------------------
    m = x.shape[0]
    yc = _dot(_repeat_rows(m, B, m // B), yw[:, 2048:2176].astype(bf16))
    pre = _dot(x, w4x_ref[...]) + _dot(h0p, w4p_ref[...]) + yc + b4_ref[...]
    o_ref[...] = jax.nn.sigmoid(pre)


# ----------------------------- parameter init ------------------------------

def init_params(key, pitch_range):
    P = pitch_range
    shapes = {
        # ConvTranspose2d weights: (C_in, C_out, kH, kW)
        "h1_w": (157, 128, 2, 1), "h1_b": (128,),
        "h2_w": (157, 128, 2, 1), "h2_b": (128,),
        "h3_w": (157, 128, 2, 1), "h3_b": (128,),
        "h4_w": (157, 1, 1, P), "h4_b": (1,),
        # Conv2d weights: (C_out, C_in, kH, kW)
        "h0_prev_w": (16, 1, 1, P), "h0_prev_b": (16,),
        "h1_prev_w": (16, 16, 2, 1), "h1_prev_b": (16,),
        "h2_prev_w": (16, 16, 2, 1), "h2_prev_b": (16,),
        "h3_prev_w": (16, 16, 2, 1), "h3_prev_b": (16,),
        # Linear weights: (out_features, in_features)
        "lin1_w": (1024, 113), "lin1_b": (1024,),
        "lin2_w": (256, 1037), "lin2_b": (256,),
    }
    keys = jax.random.split(key, len(shapes))
    return {name: 0.05 * jax.random.normal(k, shp, dtype=jnp.float32)
            for (name, shp), k in zip(shapes.items(), keys)}


def prepare_params(params):
    """One-time weight re-layout: matmul-ready bf16 weights, (1,N) f32 biases."""
    f32, bf16 = jnp.float32, jnp.bfloat16
    p = {}

    # h0_prev: Conv2d(1,16,(1,128),(1,2)) -> (128, 16) matmul
    p["w0p"] = params["h0_prev_w"][:, 0, 0, :].T.astype(bf16)
    p["b0p"] = params["h0_prev_b"].reshape(1, -1).astype(f32)

    # hN_prev: Conv2d(16,16,(2,1),(2,2)); kernel==stride -> two (16,16) matmuls
    for i, name in enumerate(("h1_prev", "h2_prev", "h3_prev"), start=1):
        w = params[name + "_w"]                         # (cout, cin, 2, 1)
        p[f"w{i}p0"] = w[:, :, 0, 0].T.astype(bf16)     # (cin, cout), k = 0
        p[f"w{i}p1"] = w[:, :, 1, 0].T.astype(bf16)     # k = 1
        p[f"b{i}p"] = params[name + "_b"].reshape(1, -1).astype(f32)

    # linear1 (113 -> 1024): split z / y rows
    w1 = params["lin1_w"].T                             # (113, 1024)
    p["wl1"] = w1[:100].astype(bf16)
    wy_l1 = w1[100:]                                    # (13, 1024)
    p["bl1"] = params["lin1_b"].reshape(1, -1).astype(f32)

    # linear2 (1037 -> 256): permute output cols h-major (new col h*128+c <-
    # old col c*2+h, matching torch .view(B,128,2,1)); BN1d is per-column so
    # it commutes with the permutation.
    w2 = params["lin2_w"].T                             # (1037, 256)
    perm = jnp.asarray([c * 2 + h for h in range(2) for c in range(128)],
                       dtype=jnp.int32)
    w2 = w2[:, perm]
    p["wl2"] = w2[:1024].astype(bf16)
    wy_l2 = w2[1024:]                                   # (13, 256)
    p["bl2"] = params["lin2_b"][perm].reshape(1, -1).astype(f32)

    # deconvs h1..h3: ConvTranspose2d(157,128,(2,1),(2,2)); kernel==stride ->
    # k-major columns wmat[cin, k*128+cout] = w[cin, cout, k, 0].
    # Rows: [0:128]=x channels, [128:141]=y channels, [141:157]=prev channels.
    wy_d = []
    for i, name in enumerate(("h1", "h2", "h3"), start=1):
        w = params[name + "_w"]                         # (157, 128, 2, 1)
        wm = jnp.transpose(w[:, :, :, 0], (0, 2, 1)).reshape(157, 256)
        p[f"wd{i}x"] = wm[:128].astype(bf16)
        p[f"wd{i}p"] = wm[141:].astype(bf16)
        wy_d.append(wm[128:141])                        # (13, 256)
        p[f"bd{i}"] = jnp.tile(params[name + "_b"], 2).reshape(1, 256).astype(f32)

    # h4: ConvTranspose2d(157,1,(1,128),(1,2)) -> (157, 128) matmul, scalar bias
    w4 = params["h4_w"].reshape(157, -1)                # (157, 128)
    p["w4x"] = w4[:128].astype(bf16)
    p["w4p"] = w4[141:].astype(bf16)
    wy_h4 = w4[128:141]                                 # (13, 128)
    p["b4"] = jnp.broadcast_to(params["h4_b"], (1, w4.shape[1])).astype(f32)

    # stacked y-conditioning weight: [lin1 | lin2 | d1 | d2 | d3 | h4]
    p["wy"] = jnp.concatenate([wy_l1, wy_l2] + wy_d + [wy_h4], axis=1).astype(bf16)
    return p


# --------------------------------- forward ---------------------------------

_WEIGHT_ORDER = (
    "w0p", "b0p",
    "w1p0", "w1p1", "b1p", "w2p0", "w2p1", "b2p", "w3p0", "w3p1", "b3p",
    "wl1", "bl1", "wl2", "bl2",
    "wy",
    "wd1x", "wd1p", "bd1", "wd2x", "wd2p", "bd2", "wd3x", "wd3p", "bd3",
    "w4x", "w4p", "b4",
)


@jax.jit
def generator_forward(prm, z, prev_x, y):
    B = z.shape[0]
    P = prev_x.shape[-1]
    x0 = prev_x.reshape(B * 16, P)                 # rows = b*16 + h
    args = [z, x0, y] + [prm[k] for k in _WEIGHT_ORDER]
    out = pl.pallas_call(
        _generator_kernel,
        out_shape=jax.ShapeDtypeStruct((B * 16, P), jnp.float32),
        in_specs=[_vmem() for _ in args],
        out_specs=_vmem(),
    )(*args)
    return out.reshape(B, 1, 16, P)                # NCHW, like torch


# ----------------------------------- main -----------------------------------

if __name__ == "__main__":
    # pitch_range is forced to 128 by the channel arithmetic (128+13+16 = 157)
    pitch_range = 128
    batch_size = 2

    key = jax.random.PRNGKey(0)
    kz, kp, ky, kparam = jax.random.split(key, 4)
    z = jax.random.normal(kz, (batch_size, 100), dtype=jnp.float32)
    prev_x = jax.random.normal(kp, (batch_size, 1, 16, pitch_range),
                               dtype=jnp.float32)
    y = (jax.random.uniform(ky, (batch_size, 13)) > 0.5).astype(jnp.float32)

    raw_params = init_params(kparam, pitch_range)
    params = prepare_params(raw_params)            # one-time weight re-layout

    out = generator_forward(params, z, prev_x, y)
    out = jax.block_until_ready(out)
    assert out.shape == (batch_size, 1, 16, pitch_range)
    assert bool(jnp.all(jnp.isfinite(out)))
    assert bool(jnp.all((out >= 0.0) & (out <= 1.0)))   # sigmoid range
    print("KERNEL_OK")
</pallas_src>

<mosaic_0001>
module attributes {stable_mosaic.version = 11 : i64} {
  func.func @_generator_kernel(%arg0: memref<2x100xf32, #tpu.memory_space<vmem>>, %arg1: memref<32x128xf32, #tpu.memory_space<vmem>>, %arg2: memref<2x13xf32, #tpu.memory_space<vmem>>, %arg3: memref<128x16xbf16, #tpu.memory_space<vmem>>, %arg4: memref<1x16xf32, #tpu.memory_space<vmem>>, %arg5: memref<16x16xbf16, #tpu.memory_space<vmem>>, %arg6: memref<16x16xbf16, #tpu.memory_space<vmem>>, %arg7: memref<1x16xf32, #tpu.memory_space<vmem>>, %arg8: memref<16x16xbf16, #tpu.memory_space<vmem>>, %arg9: memref<16x16xbf16, #tpu.memory_space<vmem>>, %arg10: memref<1x16xf32, #tpu.memory_space<vmem>>, %arg11: memref<16x16xbf16, #tpu.memory_space<vmem>>, %arg12: memref<16x16xbf16, #tpu.memory_space<vmem>>, %arg13: memref<1x16xf32, #tpu.memory_space<vmem>>, %arg14: memref<100x1024xbf16, #tpu.memory_space<vmem>>, %arg15: memref<1x1024xf32, #tpu.memory_space<vmem>>, %arg16: memref<1024x256xbf16, #tpu.memory_space<vmem>>, %arg17: memref<1x256xf32, #tpu.memory_space<vmem>>, %arg18: memref<13x2176xbf16, #tpu.memory_space<vmem>>, %arg19: memref<128x256xbf16, #tpu.memory_space<vmem>>, %arg20: memref<16x256xbf16, #tpu.memory_space<vmem>>, %arg21: memref<1x256xf32, #tpu.memory_space<vmem>>, %arg22: memref<128x256xbf16, #tpu.memory_space<vmem>>, %arg23: memref<16x256xbf16, #tpu.memory_space<vmem>>, %arg24: memref<1x256xf32, #tpu.memory_space<vmem>>, %arg25: memref<128x256xbf16, #tpu.memory_space<vmem>>, %arg26: memref<16x256xbf16, #tpu.memory_space<vmem>>, %arg27: memref<1x256xf32, #tpu.memory_space<vmem>>, %arg28: memref<128x128xbf16, #tpu.memory_space<vmem>>, %arg29: memref<16x128xbf16, #tpu.memory_space<vmem>>, %arg30: memref<1x128xf32, #tpu.memory_space<vmem>>, %arg31: memref<32x128xf32, #tpu.memory_space<vmem>>) attributes {dimension_semantics = [], scalar_prefetch = 0 : i64, scratch_operands = 0 : i64, tpu.core_type = #tpu.core_type<tc>} {
    %c0 = arith.constant 0 : index
    %c0_0 = arith.constant 0 : index
    %0 = vector.load %arg1[%c0, %c0_0] : memref<32x128xf32, #tpu.memory_space<vmem>>, vector<32x128xf32>
    %1 = arith.truncf %0 : vector<32x128xf32> to vector<32x128xbf16>
    %c0_1 = arith.constant 0 : index
    %c0_2 = arith.constant 0 : index
    %2 = vector.load %arg3[%c0_1, %c0_2] : memref<128x16xbf16, #tpu.memory_space<vmem>>, vector<128x16xbf16>
    %cst = arith.constant dense<0.000000e+00> : vector<32x16xf32>
    %3 = tpu.matmul %1, %2, %cst {dimension_numbers = #tpu.dot_dimension_numbers<[1], [0], [0], [1], [0, 0, 1, 1], [], []>} : vector<32x128xbf16>, vector<128x16xbf16>, vector<32x16xf32> -> vector<32x16xf32>
    %c0_3 = arith.constant 0 : index
    %c0_4 = arith.constant 0 : index
    %4 = vector.load %arg4[%c0_3, %c0_4] : memref<1x16xf32, #tpu.memory_space<vmem>>, vector<1x16xf32>
    %5 = vector.broadcast %4 : vector<1x16xf32> to vector<32x16xf32>
    %6 = arith.addf %3, %5 : vector<32x16xf32>
    %cst_5 = arith.constant dense<0.000000e+00> : vector<16xf32>
    %7 = vector.multi_reduction <add>, %6, %cst_5 [0] : vector<32x16xf32> to vector<16xf32>
    %8 = vector.shape_cast %7 : vector<16xf32> to vector<1x16xf32>
    %cst_6 = arith.constant 3.200000e+01 : f32
    %9 = vector.broadcast %cst_6 : f32 to vector<1x16xf32>
    %10 = arith.divf %8, %9 : vector<1x16xf32>
    %11 = vector.broadcast %10 : vector<1x16xf32> to vector<32x16xf32>
    %12 = arith.subf %6, %11 : vector<32x16xf32>
    %13 = arith.mulf %12, %12 : vector<32x16xf32>
    %cst_7 = arith.constant dense<0.000000e+00> : vector<16xf32>
    %14 = vector.multi_reduction <add>, %13, %cst_7 [0] : vector<32x16xf32> to vector<16xf32>
    %15 = vector.shape_cast %14 : vector<16xf32> to vector<1x16xf32>
    %cst_8 = arith.constant 3.200000e+01 : f32
    %16 = vector.broadcast %cst_8 : f32 to vector<1x16xf32>
    %17 = arith.divf %15, %16 : vector<1x16xf32>
    %cst_9 = arith.constant 9.99999974E-6 : f32
    %18 = vector.broadcast %cst_9 : f32 to vector<1x16xf32>
    %19 = arith.addf %17, %18 : vector<1x16xf32>
    %20 = math.rsqrt %19 : vector<1x16xf32>
    %21 = vector.broadcast %20 : vector<1x16xf32> to vector<32x16xf32>
    %22 = arith.mulf %12, %21 : vector<32x16xf32>
    %cst_10 = arith.constant 2.000000e-01 : f32
    %23 = vector.broadcast %cst_10 : f32 to vector<32x16xf32>
    %24 = arith.mulf %23, %22 : vector<32x16xf32>
    %25 = arith.maximumf %22, %24 : vector<32x16xf32>
    %26 = arith.truncf %25 : vector<32x16xf32> to vector<32x16xbf16>
    %c0_11 = arith.constant 0 : index
    %c0_12 = arith.constant 0 : index
    %27 = vector.load %arg5[%c0_11, %c0_12] : memref<16x16xbf16, #tpu.memory_space<vmem>>, vector<16x16xbf16>
    %c0_13 = arith.constant 0 : index
    %c0_14 = arith.constant 0 : index
    %28 = vector.load %arg6[%c0_13, %c0_14] : memref<16x16xbf16, #tpu.memory_space<vmem>>, vector<16x16xbf16>
    %c0_15 = arith.constant 0 : index
    %c0_16 = arith.constant 0 : index
    %29 = vector.load %arg7[%c0_15, %c0_16] : memref<1x16xf32, #tpu.memory_space<vmem>>, vector<1x16xf32>
    %30 = tpu.iota {dimensions = array<i32: 0>} : vector<16x32xi32>
    %31 = tpu.iota {dimensions = array<i32: 1>} : vector<16x32xi32>
    %c2_i32 = arith.constant 2 : i32
    %32 = vector.broadcast %c2_i32 : i32 to vector<16x32xi32>
    %33 = arith.muli %32, %30 : vector<16x32xi32>
    %c0_i32 = arith.constant 0 : i32
    %34 = vector.broadcast %c0_i32 : i32 to vector<16x32xi32>
    %35 = arith.addi %33, %34 : vector<16x32xi32>
    %36 = arith.cmpi eq, %31, %35 : vector<16x32xi32>
    %cst_17 = arith.constant 1.000000e+00 : f32
    %cst_18 = arith.constant 0.000000e+00 : f32
    %37 = vector.broadcast %cst_17 : f32 to vector<16x32xf32>
    %38 = vector.broadcast %cst_18 : f32 to vector<16x32xf32>
    %39 = arith.select %36, %37, %38 : vector<16x32xi1>, vector<16x32xf32>
    %40 = arith.truncf %39 : vector<16x32xf32> to vector<16x32xbf16>
    %cst_19 = arith.constant dense<0.000000e+00> : vector<16x16xf32>
    %41 = tpu.matmul %40, %26, %cst_19 {dimension_numbers = #tpu.dot_dimension_numbers<[1], [0], [0], [1], [0, 0, 1, 1], [], []>} : vector<16x32xbf16>, vector<32x16xbf16>, vector<16x16xf32> -> vector<16x16xf32>
    %42 = arith.truncf %41 : vector<16x16xf32> to vector<16x16xbf16>
    %43 = tpu.iota {dimensions = array<i32: 0>} : vector<16x32xi32>
    %44 = tpu.iota {dimensions = array<i32: 1>} : vector<16x32xi32>
    %c2_i32_20 = arith.constant 2 : i32
    %45 = vector.broadcast %c2_i32_20 : i32 to vector<16x32xi32>
    %46 = arith.muli %45, %43 : vector<16x32xi32>
    %c1_i32 = arith.constant 1 : i32
    %47 = vector.broadcast %c1_i32 : i32 to vector<16x32xi32>
    %48 = arith.addi %46, %47 : vector<16x32xi32>
    %49 = arith.cmpi eq, %44, %48 : vector<16x32xi32>
    %cst_21 = arith.constant 1.000000e+00 : f32
    %cst_22 = arith.constant 0.000000e+00 : f32
    %50 = vector.broadcast %cst_21 : f32 to vector<16x32xf32>
    %51 = vector.broadcast %cst_22 : f32 to vector<16x32xf32>
    %52 = arith.select %49, %50, %51 : vector<16x32xi1>, vector<16x32xf32>
    %53 = arith.truncf %52 : vector<16x32xf32> to vector<16x32xbf16>
    %cst_23 = arith.constant dense<0.000000e+00> : vector<16x16xf32>
    %54 = tpu.matmul %53, %26, %cst_23 {dimension_numbers = #tpu.dot_dimension_numbers<[1], [0], [0], [1], [0, 0, 1, 1], [], []>} : vector<16x32xbf16>, vector<32x16xbf16>, vector<16x16xf32> -> vector<16x16xf32>
    %55 = arith.truncf %54 : vector<16x16xf32> to vector<16x16xbf16>
    %cst_24 = arith.constant dense<0.000000e+00> : vector<16x16xf32>
    %56 = tpu.matmul %42, %27, %cst_24 {dimension_numbers = #tpu.dot_dimension_numbers<[1], [0], [0], [1], [0, 0, 1, 1], [], []>} : vector<16x16xbf16>, vector<16x16xbf16>, vector<16x16xf32> -> vector<16x16xf32>
    %cst_25 = arith.constant dense<0.000000e+00> : vector<16x16xf32>
    %57 = tpu.matmul %55, %28, %cst_25 {dimension_numbers = #tpu.dot_dimension_numbers<[1], [0], [0], [1], [0, 0, 1, 1], [], []>} : vector<16x16xbf16>, vector<16x16xbf16>, vector<16x16xf32> -> vector<16x16xf32>
    %58 = arith.addf %56, %57 : vector<16x16xf32>
    %59 = vector.broadcast %29 : vector<1x16xf32> to vector<16x16xf32>
    %60 = arith.addf %58, %59 : vector<16x16xf32>
    %cst_26 = arith.constant dense<0.000000e+00> : vector<16xf32>
    %61 = vector.multi_reduction <add>, %60, %cst_26 [0] : vector<16x16xf32> to vector<16xf32>
    %62 = vector.shape_cast %61 : vector<16xf32> to vector<1x16xf32>
    %cst_27 = arith.constant 1.600000e+01 : f32
    %63 = vector.broadcast %cst_27 : f32 to vector<1x16xf32>
    %64 = arith.divf %62, %63 : vector<1x16xf32>
    %65 = vector.broadcast %64 : vector<1x16xf32> to vector<16x16xf32>
    %66 = arith.subf %60, %65 : vector<16x16xf32>
    %67 = arith.mulf %66, %66 : vector<16x16xf32>
    %cst_28 = arith.constant dense<0.000000e+00> : vector<16xf32>
    %68 = vector.multi_reduction <add>, %67, %cst_28 [0] : vector<16x16xf32> to vector<16xf32>
    %69 = vector.shape_cast %68 : vector<16xf32> to vector<1x16xf32>
    %cst_29 = arith.constant 1.600000e+01 : f32
    %70 = vector.broadcast %cst_29 : f32 to vector<1x16xf32>
    %71 = arith.divf %69, %70 : vector<1x16xf32>
    %cst_30 = arith.constant 9.99999974E-6 : f32
    %72 = vector.broadcast %cst_30 : f32 to vector<1x16xf32>
    %73 = arith.addf %71, %72 : vector<1x16xf32>
    %74 = math.rsqrt %73 : vector<1x16xf32>
    %75 = vector.broadcast %74 : vector<1x16xf32> to vector<16x16xf32>
    %76 = arith.mulf %66, %75 : vector<16x16xf32>
    %cst_31 = arith.constant 2.000000e-01 : f32
    %77 = vector.broadcast %cst_31 : f32 to vector<16x16xf32>
    %78 = arith.mulf %77, %76 : vector<16x16xf32>
    %79 = arith.maximumf %76, %78 : vector<16x16xf32>
    %80 = arith.truncf %79 : vector<16x16xf32> to vector<16x16xbf16>
    %c0_32 = arith.constant 0 : index
    %c0_33 = arith.constant 0 : index
    %81 = vector.load %arg8[%c0_32, %c0_33] : memref<16x16xbf16, #tpu.memory_space<vmem>>, vector<16x16xbf16>
    %c0_34 = arith.constant 0 : index
    %c0_35 = arith.constant 0 : index
    %82 = vector.load %arg9[%c0_34, %c0_35] : memref<16x16xbf16, #tpu.memory_space<vmem>>, vector<16x16xbf16>
    %c0_36 = arith.constant 0 : index
    %c0_37 = arith.constant 0 : index
    %83 = vector.load %arg10[%c0_36, %c0_37] : memref<1x16xf32, #tpu.memory_space<vmem>>, vector<1x16xf32>
    %84 = tpu.iota {dimensions = array<i32: 0>} : vector<8x16xi32>
    %85 = tpu.iota {dimensions = array<i32: 1>} : vector<8x16xi32>
    %c2_i32_38 = arith.constant 2 : i32
    %86 = vector.broadcast %c2_i32_38 : i32 to vector<8x16xi32>
    %87 = arith.muli %86, %84 : vector<8x16xi32>
    %c0_i32_39 = arith.constant 0 : i32
    %88 = vector.broadcast %c0_i32_39 : i32 to vector<8x16xi32>
    %89 = arith.addi %87, %88 : vector<8x16xi32>
    %90 = arith.cmpi eq, %85, %89 : vector<8x16xi32>
    %cst_40 = arith.constant 1.000000e+00 : f32
    %cst_41 = arith.constant 0.000000e+00 : f32
    %91 = vector.broadcast %cst_40 : f32 to vector<8x16xf32>
    %92 = vector.broadcast %cst_41 : f32 to vector<8x16xf32>
    %93 = arith.select %90, %91, %92 : vector<8x16xi1>, vector<8x16xf32>
    %94 = arith.truncf %93 : vector<8x16xf32> to vector<8x16xbf16>
    %cst_42 = arith.constant dense<0.000000e+00> : vector<8x16xf32>
    %95 = tpu.matmul %94, %80, %cst_42 {dimension_numbers = #tpu.dot_dimension_numbers<[1], [0], [0], [1], [0, 0, 1, 1], [], []>} : vector<8x16xbf16>, vector<16x16xbf16>, vector<8x16xf32> -> vector<8x16xf32>
    %96 = arith.truncf %95 : vector<8x16xf32> to vector<8x16xbf16>
    %97 = tpu.iota {dimensions = array<i32: 0>} : vector<8x16xi32>
    %98 = tpu.iota {dimensions = array<i32: 1>} : vector<8x16xi32>
    %c2_i32_43 = arith.constant 2 : i32
    %99 = vector.broadcast %c2_i32_43 : i32 to vector<8x16xi32>
    %100 = arith.muli %99, %97 : vector<8x16xi32>
    %c1_i32_44 = arith.constant 1 : i32
    %101 = vector.broadcast %c1_i32_44 : i32 to vector<8x16xi32>
    %102 = arith.addi %100, %101 : vector<8x16xi32>
    %103 = arith.cmpi eq, %98, %102 : vector<8x16xi32>
    %cst_45 = arith.constant 1.000000e+00 : f32
    %cst_46 = arith.constant 0.000000e+00 : f32
    %104 = vector.broadcast %cst_45 : f32 to vector<8x16xf32>
    %105 = vector.broadcast %cst_46 : f32 to vector<8x16xf32>
    %106 = arith.select %103, %104, %105 : vector<8x16xi1>, vector<8x16xf32>
    %107 = arith.truncf %106 : vector<8x16xf32> to vector<8x16xbf16>
    %cst_47 = arith.constant dense<0.000000e+00> : vector<8x16xf32>
    %108 = tpu.matmul %107, %80, %cst_47 {dimension_numbers = #tpu.dot_dimension_numbers<[1], [0], [0], [1], [0, 0, 1, 1], [], []>} : vector<8x16xbf16>, vector<16x16xbf16>, vector<8x16xf32> -> vector<8x16xf32>
    %109 = arith.truncf %108 : vector<8x16xf32> to vector<8x16xbf16>
    %cst_48 = arith.constant dense<0.000000e+00> : vector<8x16xf32>
    %110 = tpu.matmul %96, %81, %cst_48 {dimension_numbers = #tpu.dot_dimension_numbers<[1], [0], [0], [1], [0, 0, 1, 1], [], []>} : vector<8x16xbf16>, vector<16x16xbf16>, vector<8x16xf32> -> vector<8x16xf32>
    %cst_49 = arith.constant dense<0.000000e+00> : vector<8x16xf32>
    %111 = tpu.matmul %109, %82, %cst_49 {dimension_numbers = #tpu.dot_dimension_numbers<[1], [0], [0], [1], [0, 0, 1, 1], [], []>} : vector<8x16xbf16>, vector<16x16xbf16>, vector<8x16xf32> -> vector<8x16xf32>
    %112 = arith.addf %110, %111 : vector<8x16xf32>
    %113 = vector.broadcast %83 : vector<1x16xf32> to vector<8x16xf32>
    %114 = arith.addf %112, %113 : vector<8x16xf32>
    %cst_50 = arith.constant dense<0.000000e+00> : vector<16xf32>
    %115 = vector.multi_reduction <add>, %114, %cst_50 [0] : vector<8x16xf32> to vector<16xf32>
    %116 = vector.shape_cast %115 : vector<16xf32> to vector<1x16xf32>
    %cst_51 = arith.constant 8.000000e+00 : f32
    %117 = vector.broadcast %cst_51 : f32 to vector<1x16xf32>
    %118 = arith.divf %116, %117 : vector<1x16xf32>
    %119 = vector.broadcast %118 : vector<1x16xf32> to vector<8x16xf32>
    %120 = arith.subf %114, %119 : vector<8x16xf32>
    %121 = arith.mulf %120, %120 : vector<8x16xf32>
    %cst_52 = arith.constant dense<0.000000e+00> : vector<16xf32>
    %122 = vector.multi_reduction <add>, %121, %cst_52 [0] : vector<8x16xf32> to vector<16xf32>
    %123 = vector.shape_cast %122 : vector<16xf32> to vector<1x16xf32>
    %cst_53 = arith.constant 8.000000e+00 : f32
    %124 = vector.broadcast %cst_53 : f32 to vector<1x16xf32>
    %125 = arith.divf %123, %124 : vector<1x16xf32>
    %cst_54 = arith.constant 9.99999974E-6 : f32
    %126 = vector.broadcast %cst_54 : f32 to vector<1x16xf32>
    %127 = arith.addf %125, %126 : vector<1x16xf32>
    %128 = math.rsqrt %127 : vector<1x16xf32>
    %129 = vector.broadcast %128 : vector<1x16xf32> to vector<8x16xf32>
    %130 = arith.mulf %120, %129 : vector<8x16xf32>
    %cst_55 = arith.constant 2.000000e-01 : f32
    %131 = vector.broadcast %cst_55 : f32 to vector<8x16xf32>
    %132 = arith.mulf %131, %130 : vector<8x16xf32>
    %133 = arith.maximumf %130, %132 : vector<8x16xf32>
    %134 = arith.truncf %133 : vector<8x16xf32> to vector<8x16xbf16>
    %c0_56 = arith.constant 0 : index
    %c0_57 = arith.constant 0 : index
    %135 = vector.load %arg11[%c0_56, %c0_57] : memref<16x16xbf16, #tpu.memory_space<vmem>>, vector<16x16xbf16>
    %c0_58 = arith.constant 0 : index
    %c0_59 = arith.constant 0 : index
    %136 = vector.load %arg12[%c0_58, %c0_59] : memref<16x16xbf16, #tpu.memory_space<vmem>>, vector<16x16xbf16>
    %c0_60 = arith.constant 0 : index
    %c0_61 = arith.constant 0 : index
    %137 = vector.load %arg13[%c0_60, %c0_61] : memref<1x16xf32, #tpu.memory_space<vmem>>, vector<1x16xf32>
    %138 = tpu.iota {dimensions = array<i32: 0>} : vector<4x8xi32>
    %139 = tpu.iota {dimensions = array<i32: 1>} : vector<4x8xi32>
    %c2_i32_62 = arith.constant 2 : i32
    %140 = vector.broadcast %c2_i32_62 : i32 to vector<4x8xi32>
    %141 = arith.muli %140, %138 : vector<4x8xi32>
    %c0_i32_63 = arith.constant 0 : i32
    %142 = vector.broadcast %c0_i32_63 : i32 to vector<4x8xi32>
    %143 = arith.addi %141, %142 : vector<4x8xi32>
    %144 = arith.cmpi eq, %139, %143 : vector<4x8xi32>
    %cst_64 = arith.constant 1.000000e+00 : f32
    %cst_65 = arith.constant 0.000000e+00 : f32
    %145 = vector.broadcast %cst_64 : f32 to vector<4x8xf32>
    %146 = vector.broadcast %cst_65 : f32 to vector<4x8xf32>
    %147 = arith.select %144, %145, %146 : vector<4x8xi1>, vector<4x8xf32>
    %148 = arith.truncf %147 : vector<4x8xf32> to vector<4x8xbf16>
    %cst_66 = arith.constant dense<0.000000e+00> : vector<4x16xf32>
    %149 = tpu.matmul %148, %134, %cst_66 {dimension_numbers = #tpu.dot_dimension_numbers<[1], [0], [0], [1], [0, 0, 1, 1], [], []>} : vector<4x8xbf16>, vector<8x16xbf16>, vector<4x16xf32> -> vector<4x16xf32>
    %150 = arith.truncf %149 : vector<4x16xf32> to vector<4x16xbf16>
    %151 = tpu.iota {dimensions = array<i32: 0>} : vector<4x8xi32>
    %152 = tpu.iota {dimensions = array<i32: 1>} : vector<4x8xi32>
    %c2_i32_67 = arith.constant 2 : i32
    %153 = vector.broadcast %c2_i32_67 : i32 to vector<4x8xi32>
    %154 = arith.muli %153, %151 : vector<4x8xi32>
    %c1_i32_68 = arith.constant 1 : i32
    %155 = vector.broadcast %c1_i32_68 : i32 to vector<4x8xi32>
    %156 = arith.addi %154, %155 : vector<4x8xi32>
    %157 = arith.cmpi eq, %152, %156 : vector<4x8xi32>
    %cst_69 = arith.constant 1.000000e+00 : f32
    %cst_70 = arith.constant 0.000000e+00 : f32
    %158 = vector.broadcast %cst_69 : f32 to vector<4x8xf32>
    %159 = vector.broadcast %cst_70 : f32 to vector<4x8xf32>
    %160 = arith.select %157, %158, %159 : vector<4x8xi1>, vector<4x8xf32>
    %161 = arith.truncf %160 : vector<4x8xf32> to vector<4x8xbf16>
    %cst_71 = arith.constant dense<0.000000e+00> : vector<4x16xf32>
    %162 = tpu.matmul %161, %134, %cst_71 {dimension_numbers = #tpu.dot_dimension_numbers<[1], [0], [0], [1], [0, 0, 1, 1], [], []>} : vector<4x8xbf16>, vector<8x16xbf16>, vector<4x16xf32> -> vector<4x16xf32>
    %163 = arith.truncf %162 : vector<4x16xf32> to vector<4x16xbf16>
    %cst_72 = arith.constant dense<0.000000e+00> : vector<4x16xf32>
    %164 = tpu.matmul %150, %135, %cst_72 {dimension_numbers = #tpu.dot_dimension_numbers<[1], [0], [0], [1], [0, 0, 1, 1], [], []>} : vector<4x16xbf16>, vector<16x16xbf16>, vector<4x16xf32> -> vector<4x16xf32>
    %cst_73 = arith.constant dense<0.000000e+00> : vector<4x16xf32>
    %165 = tpu.matmul %163, %136, %cst_73 {dimension_numbers = #tpu.dot_dimension_numbers<[1], [0], [0], [1], [0, 0, 1, 1], [], []>} : vector<4x16xbf16>, vector<16x16xbf16>, vector<4x16xf32> -> vector<4x16xf32>
    %166 = arith.addf %164, %165 : vector<4x16xf32>
    %167 = vector.broadcast %137 : vector<1x16xf32> to vector<4x16xf32>
    %168 = arith.addf %166, %167 : vector<4x16xf32>
    %cst_74 = arith.constant dense<0.000000e+00> : vector<16xf32>
    %169 = vector.multi_reduction <add>, %168, %cst_74 [0] : vector<4x16xf32> to vector<16xf32>
    %170 = vector.shape_cast %169 : vector<16xf32> to vector<1x16xf32>
    %cst_75 = arith.constant 4.000000e+00 : f32
    %171 = vector.broadcast %cst_75 : f32 to vector<1x16xf32>
    %172 = arith.divf %170, %171 : vector<1x16xf32>
    %173 = vector.broadcast %172 : vector<1x16xf32> to vector<4x16xf32>
    %174 = arith.subf %168, %173 : vector<4x16xf32>
    %175 = arith.mulf %174, %174 : vector<4x16xf32>
    %cst_76 = arith.constant dense<0.000000e+00> : vector<16xf32>
    %176 = vector.multi_reduction <add>, %175, %cst_76 [0] : vector<4x16xf32> to vector<16xf32>
    %177 = vector.shape_cast %176 : vector<16xf32> to vector<1x16xf32>
    %cst_77 = arith.constant 4.000000e+00 : f32
    %178 = vector.broadcast %cst_77 : f32 to vector<1x16xf32>
    %179 = arith.divf %177, %178 : vector<1x16xf32>
    %cst_78 = arith.constant 9.99999974E-6 : f32
    %180 = vector.broadcast %cst_78 : f32 to vector<1x16xf32>
    %181 = arith.addf %179, %180 : vector<1x16xf32>
    %182 = math.rsqrt %181 : vector<1x16xf32>
    %183 = vector.broadcast %182 : vector<1x16xf32> to vector<4x16xf32>
    %184 = arith.mulf %174, %183 : vector<4x16xf32>
    %cst_79 = arith.constant 2.000000e-01 : f32
    %185 = vector.broadcast %cst_79 : f32 to vector<4x16xf32>
    %186 = arith.mulf %185, %184 : vector<4x16xf32>
    %187 = arith.maximumf %184, %186 : vector<4x16xf32>
    %188 = arith.truncf %187 : vector<4x16xf32> to vector<4x16xbf16>
    %c0_80 = arith.constant 0 : index
    %c0_81 = arith.constant 0 : index
    %189 = vector.load %arg2[%c0_80, %c0_81] : memref<2x13xf32, #tpu.memory_space<vmem>>, vector<2x13xf32>
    %190 = arith.truncf %189 : vector<2x13xf32> to vector<2x13xbf16>
    %c0_82 = arith.constant 0 : index
    %c0_83 = arith.constant 0 : index
    %191 = vector.load %arg18[%c0_82, %c0_83] : memref<13x2176xbf16, #tpu.memory_space<vmem>>, vector<13x2176xbf16>
    %cst_84 = arith.constant dense<0.000000e+00> : vector<2x2176xf32>
    %192 = tpu.matmul %190, %191, %cst_84 {dimension_numbers = #tpu.dot_dimension_numbers<[1], [0], [0], [1], [0, 0, 1, 1], [], []>} : vector<2x13xbf16>, vector<13x2176xbf16>, vector<2x2176xf32> -> vector<2x2176xf32>
    %c0_85 = arith.constant 0 : index
    %c0_86 = arith.constant 0 : index
    %193 = vector.load %arg0[%c0_85, %c0_86] : memref<2x100xf32, #tpu.memory_space<vmem>>, vector<2x100xf32>
    %194 = arith.truncf %193 : vector<2x100xf32> to vector<2x100xbf16>
    %c0_87 = arith.constant 0 : index
    %c0_88 = arith.constant 0 : index
    %195 = vector.load %arg14[%c0_87, %c0_88] : memref<100x1024xbf16, #tpu.memory_space<vmem>>, vector<100x1024xbf16>
    %cst_89 = arith.constant dense<0.000000e+00> : vector<2x1024xf32>
    %196 = tpu.matmul %194, %195, %cst_89 {dimension_numbers = #tpu.dot_dimension_numbers<[1], [0], [0], [1], [0, 0, 1, 1], [], []>} : vector<2x100xbf16>, vector<100x1024xbf16>, vector<2x1024xf32> -> vector<2x1024xf32>
    %197 = vector.extract_strided_slice %192 {offsets = [0, 0], sizes = [2, 1024], strides = [1, 1]} : vector<2x2176xf32> to vector<2x1024xf32>
    %198 = arith.addf %196, %197 : vector<2x1024xf32>
    %c0_90 = arith.constant 0 : index
    %c0_91 = arith.constant 0 : index
    %199 = vector.load %arg15[%c0_90, %c0_91] : memref<1x1024xf32, #tpu.memory_space<vmem>>, vector<1x1024xf32>
    %200 = vector.broadcast %199 : vector<1x1024xf32> to vector<2x1024xf32>
    %201 = arith.addf %198, %200 : vector<2x1024xf32>
    %cst_92 = arith.constant dense<0.000000e+00> : vector<1024xf32>
    %202 = vector.multi_reduction <add>, %201, %cst_92 [0] : vector<2x1024xf32> to vector<1024xf32>
    %203 = vector.shape_cast %202 : vector<1024xf32> to vector<1x1024xf32>
    %cst_93 = arith.constant 2.000000e+00 : f32
    %204 = vector.broadcast %cst_93 : f32 to vector<1x1024xf32>
    %205 = arith.divf %203, %204 : vector<1x1024xf32>
    %206 = vector.broadcast %205 : vector<1x1024xf32> to vector<2x1024xf32>
    %207 = arith.subf %201, %206 : vector<2x1024xf32>
    %208 = arith.mulf %207, %207 : vector<2x1024xf32>
    %cst_94 = arith.constant dense<0.000000e+00> : vector<1024xf32>
    %209 = vector.multi_reduction <add>, %208, %cst_94 [0] : vector<2x1024xf32> to vector<1024xf32>
    %210 = vector.shape_cast %209 : vector<1024xf32> to vector<1x1024xf32>
    %cst_95 = arith.constant 2.000000e+00 : f32
    %211 = vector.broadcast %cst_95 : f32 to vector<1x1024xf32>
    %212 = arith.divf %210, %211 : vector<1x1024xf32>
    %cst_96 = arith.constant 9.99999974E-6 : f32
    %213 = vector.broadcast %cst_96 : f32 to vector<1x1024xf32>
    %214 = arith.addf %212, %213 : vector<1x1024xf32>
    %215 = math.rsqrt %214 : vector<1x1024xf32>
    %216 = vector.broadcast %215 : vector<1x1024xf32> to vector<2x1024xf32>
    %217 = arith.mulf %207, %216 : vector<2x1024xf32>
    %cst_97 = arith.constant 0.000000e+00 : f32
    %218 = vector.broadcast %cst_97 : f32 to vector<2x1024xf32>
    %219 = arith.maximumf %217, %218 : vector<2x1024xf32>
    %220 = arith.truncf %219 : vector<2x1024xf32> to vector<2x1024xbf16>
    %c0_98 = arith.constant 0 : index
    %c0_99 = arith.constant 0 : index
    %221 = vector.load %arg16[%c0_98, %c0_99] : memref<1024x256xbf16, #tpu.memory_space<vmem>>, vector<1024x256xbf16>
    %cst_100 = arith.constant dense<0.000000e+00> : vector<2x256xf32>
    %222 = tpu.matmul %220, %221, %cst_100 {dimension_numbers = #tpu.dot_dimension_numbers<[1], [0], [0], [1], [0, 0, 1, 1], [], []>} : vector<2x1024xbf16>, vector<1024x256xbf16>, vector<2x256xf32> -> vector<2x256xf32>
    %223 = vector.extract_strided_slice %192 {offsets = [0, 1024], sizes = [2, 256], strides = [1, 1]} : vector<2x2176xf32> to vector<2x256xf32>
    %224 = arith.addf %222, %223 : vector<2x256xf32>
    %c0_101 = arith.constant 0 : index
    %c0_102 = arith.constant 0 : index
    %225 = vector.load %arg17[%c0_101, %c0_102] : memref<1x256xf32, #tpu.memory_space<vmem>>, vector<1x256xf32>
    %226 = vector.broadcast %225 : vector<1x256xf32> to vector<2x256xf32>
    %227 = arith.addf %224, %226 : vector<2x256xf32>
    %cst_103 = arith.constant dense<0.000000e+00> : vector<256xf32>
    %228 = vector.multi_reduction <add>, %227, %cst_103 [0] : vector<2x256xf32> to vector<256xf32>
    %229 = vector.shape_cast %228 : vector<256xf32> to vector<1x256xf32>
    %cst_104 = arith.constant 2.000000e+00 : f32
    %230 = vector.broadcast %cst_104 : f32 to vector<1x256xf32>
    %231 = arith.divf %229, %230 : vector<1x256xf32>
    %232 = vector.broadcast %231 : vector<1x256xf32> to vector<2x256xf32>
    %233 = arith.subf %227, %232 : vector<2x256xf32>
    %234 = arith.mulf %233, %233 : vector<2x256xf32>
    %cst_105 = arith.constant dense<0.000000e+00> : vector<256xf32>
    %235 = vector.multi_reduction <add>, %234, %cst_105 [0] : vector<2x256xf32> to vector<256xf32>
    %236 = vector.shape_cast %235 : vector<256xf32> to vector<1x256xf32>
    %cst_106 = arith.constant 2.000000e+00 : f32
    %237 = vector.broadcast %cst_106 : f32 to vector<1x256xf32>
    %238 = arith.divf %236, %237 : vector<1x256xf32>
    %cst_107 = arith.constant 9.99999974E-6 : f32
    %239 = vector.broadcast %cst_107 : f32 to vector<1x256xf32>
    %240 = arith.addf %238, %239 : vector<1x256xf32>
    %241 = math.rsqrt %240 : vector<1x256xf32>
    %242 = vector.broadcast %241 : vector<1x256xf32> to vector<2x256xf32>
    %243 = arith.mulf %233, %242 : vector<2x256xf32>
    %cst_108 = arith.constant 0.000000e+00 : f32
    %244 = vector.broadcast %cst_108 : f32 to vector<2x256xf32>
    %245 = arith.maximumf %243, %244 : vector<2x256xf32>
    %246 = vector.extract_strided_slice %245 {offsets = [0, 0], sizes = [2, 128], strides = [1, 1]} : vector<2x256xf32> to vector<2x128xf32>
    %247 = arith.truncf %246 : vector<2x128xf32> to vector<2x128xbf16>
    %248 = vector.extract_strided_slice %245 {offsets = [0, 128], sizes = [2, 128], strides = [1, 1]} : vector<2x256xf32> to vector<2x128xf32>
    %249 = arith.truncf %248 : vector<2x128xf32> to vector<2x128xbf16>
    %250 = tpu.iota {dimensions = array<i32: 0>} : vector<4x2xi32>
    %251 = tpu.iota {dimensions = array<i32: 1>} : vector<4x2xi32>
    %c2_i32_109 = arith.constant 2 : i32
    %252 = vector.broadcast %c2_i32_109 : i32 to vector<4x2xi32>
    %253 = arith.muli %252, %251 : vector<4x2xi32>
    %c0_i32_110 = arith.constant 0 : i32
    %254 = vector.broadcast %c0_i32_110 : i32 to vector<4x2xi32>
    %255 = arith.addi %253, %254 : vector<4x2xi32>
    %256 = arith.cmpi eq, %250, %255 : vector<4x2xi32>
    %cst_111 = arith.constant 1.000000e+00 : f32
    %cst_112 = arith.constant 0.000000e+00 : f32
    %257 = vector.broadcast %cst_111 : f32 to vector<4x2xf32>
    %258 = vector.broadcast %cst_112 : f32 to vector<4x2xf32>
    %259 = arith.select %256, %257, %258 : vector<4x2xi1>, vector<4x2xf32>
    %260 = arith.truncf %259 : vector<4x2xf32> to vector<4x2xbf16>
    %cst_113 = arith.constant dense<0.000000e+00> : vector<4x128xf32>
    %261 = tpu.matmul %260, %247, %cst_113 {dimension_numbers = #tpu.dot_dimension_numbers<[1], [0], [0], [1], [0, 0, 1, 1], [], []>} : vector<4x2xbf16>, vector<2x128xbf16>, vector<4x128xf32> -> vector<4x128xf32>
    %262 = tpu.iota {dimensions = array<i32: 0>} : vector<4x2xi32>
    %263 = tpu.iota {dimensions = array<i32: 1>} : vector<4x2xi32>
    %c2_i32_114 = arith.constant 2 : i32
    %264 = vector.broadcast %c2_i32_114 : i32 to vector<4x2xi32>
    %265 = arith.muli %264, %263 : vector<4x2xi32>
    %c1_i32_115 = arith.constant 1 : i32
    %266 = vector.broadcast %c1_i32_115 : i32 to vector<4x2xi32>
    %267 = arith.addi %265, %266 : vector<4x2xi32>
    %268 = arith.cmpi eq, %262, %267 : vector<4x2xi32>
    %cst_116 = arith.constant 1.000000e+00 : f32
    %cst_117 = arith.constant 0.000000e+00 : f32
    %269 = vector.broadcast %cst_116 : f32 to vector<4x2xf32>
    %270 = vector.broadcast %cst_117 : f32 to vector<4x2xf32>
    %271 = arith.select %268, %269, %270 : vector<4x2xi1>, vector<4x2xf32>
    %272 = arith.truncf %271 : vector<4x2xf32> to vector<4x2xbf16>
    %cst_118 = arith.constant dense<0.000000e+00> : vector<4x128xf32>
    %273 = tpu.matmul %272, %249, %cst_118 {dimension_numbers = #tpu.dot_dimension_numbers<[1], [0], [0], [1], [0, 0, 1, 1], [], []>} : vector<4x2xbf16>, vector<2x128xbf16>, vector<4x128xf32> -> vector<4x128xf32>
    %274 = arith.addf %261, %273 : vector<4x128xf32>
    %275 = arith.truncf %274 : vector<4x128xf32> to vector<4x128xbf16>
    %c0_119 = arith.constant 0 : index
    %c0_120 = arith.constant 0 : index
    %276 = vector.load %arg19[%c0_119, %c0_120] : memref<128x256xbf16, #tpu.memory_space<vmem>>, vector<128x256xbf16>
    %c0_121 = arith.constant 0 : index
    %c0_122 = arith.constant 0 : index
    %277 = vector.load %arg20[%c0_121, %c0_122] : memref<16x256xbf16, #tpu.memory_space<vmem>>, vector<16x256xbf16>
    %c0_123 = arith.constant 0 : index
    %c0_124 = arith.constant 0 : index
    %278 = vector.load %arg21[%c0_123, %c0_124] : memref<1x256xf32, #tpu.memory_space<vmem>>, vector<1x256xf32>
    %279 = vector.extract_strided_slice %192 {offsets = [0, 1280], sizes = [2, 256], strides = [1, 1]} : vector<2x2176xf32> to vector<2x256xf32>
    %280 = tpu.iota {dimensions = array<i32: 0>} : vector<4x2xi32>
    %281 = tpu.iota {dimensions = array<i32: 1>} : vector<4x2xi32>
    %c2_i32_125 = arith.constant 2 : i32
    %282 = vector.broadcast %c2_i32_125 : i32 to vector<4x2xi32>
    %283 = arith.muli %281, %282 : vector<4x2xi32>
    %284 = arith.cmpi sge, %280, %283 : vector<4x2xi32>
    %c1_i32_126 = arith.constant 1 : i32
    %285 = vector.broadcast %c1_i32_126 : i32 to vector<4x2xi32>
    %286 = arith.addi %281, %285 : vector<4x2xi32>
    %c2_i32_127 = arith.constant 2 : i32
    %287 = vector.broadcast %c2_i32_127 : i32 to vector<4x2xi32>
    %288 = arith.muli %286, %287 : vector<4x2xi32>
    %289 = arith.cmpi slt, %280, %288 : vector<4x2xi32>
    %290 = arith.andi %284, %289 : vector<4x2xi1>
    %cst_128 = arith.constant 1.000000e+00 : f32
    %cst_129 = arith.constant 0.000000e+00 : f32
    %291 = vector.broadcast %cst_128 : f32 to vector<4x2xf32>
    %292 = vector.broadcast %cst_129 : f32 to vector<4x2xf32>
    %293 = arith.select %290, %291, %292 : vector<4x2xi1>, vector<4x2xf32>
    %294 = arith.truncf %293 : vector<4x2xf32> to vector<4x2xbf16>
    %295 = arith.truncf %279 : vector<2x256xf32> to vector<2x256xbf16>
    %cst_130 = arith.constant dense<0.000000e+00> : vector<4x256xf32>
    %296 = tpu.matmul %294, %295, %cst_130 {dimension_numbers = #tpu.dot_dimension_numbers<[1], [0], [0], [1], [0, 0, 1, 1], [], []>} : vector<4x2xbf16>, vector<2x256xbf16>, vector<4x256xf32> -> vector<4x256xf32>
    %cst_131 = arith.constant dense<0.000000e+00> : vector<4x256xf32>
    %297 = tpu.matmul %275, %276, %cst_131 {dimension_numbers = #tpu.dot_dimension_numbers<[1], [0], [0], [1], [0, 0, 1, 1], [], []>} : vector<4x128xbf16>, vector<128x256xbf16>, vector<4x256xf32> -> vector<4x256xf32>
    %cst_132 = arith.constant dense<0.000000e+00> : vector<4x256xf32>
    %298 = tpu.matmul %188, %277, %cst_132 {dimension_numbers = #tpu.dot_dimension_numbers<[1], [0], [0], [1], [0, 0, 1, 1], [], []>} : vector<4x16xbf16>, vector<16x256xbf16>, vector<4x256xf32> -> vector<4x256xf32>
    %299 = arith.addf %297, %298 : vector<4x256xf32>
    %300 = arith.addf %299, %296 : vector<4x256xf32>
    %301 = vector.broadcast %278 : vector<1x256xf32> to vector<4x256xf32>
    %302 = arith.addf %300, %301 : vector<4x256xf32>
    %303 = vector.extract_strided_slice %302 {offsets = [0, 0], sizes = [4, 128], strides = [1, 1]} : vector<4x256xf32> to vector<4x128xf32>
    %304 = vector.extract_strided_slice %302 {offsets = [0, 128], sizes = [4, 128], strides = [1, 1]} : vector<4x256xf32> to vector<4x128xf32>
    %cst_133 = arith.constant dense<0.000000e+00> : vector<128xf32>
    %305 = vector.multi_reduction <add>, %303, %cst_133 [0] : vector<4x128xf32> to vector<128xf32>
    %306 = vector.shape_cast %305 : vector<128xf32> to vector<1x128xf32>
    %cst_134 = arith.constant dense<0.000000e+00> : vector<128xf32>
    %307 = vector.multi_reduction <add>, %304, %cst_134 [0] : vector<4x128xf32> to vector<128xf32>
    %308 = vector.shape_cast %307 : vector<128xf32> to vector<1x128xf32>
    %309 = arith.addf %306, %308 : vector<1x128xf32>
    %cst_135 = arith.constant 8.000000e+00 : f32
    %310 = vector.broadcast %cst_135 : f32 to vector<1x128xf32>
    %311 = arith.divf %309, %310 : vector<1x128xf32>
    %312 = vector.broadcast %311 : vector<1x128xf32> to vector<4x128xf32>
    %313 = arith.subf %303, %312 : vector<4x128xf32>
    %314 = vector.broadcast %311 : vector<1x128xf32> to vector<4x128xf32>
    %315 = arith.subf %304, %314 : vector<4x128xf32>
    %316 = arith.mulf %313, %313 : vector<4x128xf32>
    %cst_136 = arith.constant dense<0.000000e+00> : vector<128xf32>
    %317 = vector.multi_reduction <add>, %316, %cst_136 [0] : vector<4x128xf32> to vector<128xf32>
    %318 = vector.shape_cast %317 : vector<128xf32> to vector<1x128xf32>
    %319 = arith.mulf %315, %315 : vector<4x128xf32>
    %cst_137 = arith.constant dense<0.000000e+00> : vector<128xf32>
    %320 = vector.multi_reduction <add>, %319, %cst_137 [0] : vector<4x128xf32> to vector<128xf32>
    %321 = vector.shape_cast %320 : vector<128xf32> to vector<1x128xf32>
    %322 = arith.addf %318, %321 : vector<1x128xf32>
    %cst_138 = arith.constant 8.000000e+00 : f32
    %323 = vector.broadcast %cst_138 : f32 to vector<1x128xf32>
    %324 = arith.divf %322, %323 : vector<1x128xf32>
    %cst_139 = arith.constant 9.99999974E-6 : f32
    %325 = vector.broadcast %cst_139 : f32 to vector<1x128xf32>
    %326 = arith.addf %324, %325 : vector<1x128xf32>
    %327 = math.rsqrt %326 : vector<1x128xf32>
    %328 = vector.broadcast %327 : vector<1x128xf32> to vector<4x128xf32>
    %329 = arith.mulf %313, %328 : vector<4x128xf32>
    %330 = vector.broadcast %327 : vector<1x128xf32> to vector<4x128xf32>
    %331 = arith.mulf %315, %330 : vector<4x128xf32>
    %cst_140 = arith.constant 0.000000e+00 : f32
    %332 = vector.broadcast %cst_140 : f32 to vector<4x128xf32>
    %333 = arith.maximumf %329, %332 : vector<4x128xf32>
    %334 = arith.truncf %333 : vector<4x128xf32> to vector<4x128xbf16>
    %cst_141 = arith.constant 0.000000e+00 : f32
    %335 = vector.broadcast %cst_141 : f32 to vector<4x128xf32>
    %336 = arith.maximumf %331, %335 : vector<4x128xf32>
    %337 = arith.truncf %336 : vector<4x128xf32> to vector<4x128xbf16>
    %338 = tpu.iota {dimensions = array<i32: 0>} : vector<8x4xi32>
    %339 = tpu.iota {dimensions = array<i32: 1>} : vector<8x4xi32>
    %c2_i32_142 = arith.constant 2 : i32
    %340 = vector.broadcast %c2_i32_142 : i32 to vector<8x4xi32>
    %341 = arith.muli %340, %339 : vector<8x4xi32>
    %c0_i32_143 = arith.constant 0 : i32
    %342 = vector.broadcast %c0_i32_143 : i32 to vector<8x4xi32>
    %343 = arith.addi %341, %342 : vector<8x4xi32>
    %344 = arith.cmpi eq, %338, %343 : vector<8x4xi32>
    %cst_144 = arith.constant 1.000000e+00 : f32
    %cst_145 = arith.constant 0.000000e+00 : f32
    %345 = vector.broadcast %cst_144 : f32 to vector<8x4xf32>
    %346 = vector.broadcast %cst_145 : f32 to vector<8x4xf32>
    %347 = arith.select %344, %345, %346 : vector<8x4xi1>, vector<8x4xf32>
    %348 = arith.truncf %347 : vector<8x4xf32> to vector<8x4xbf16>
    %cst_146 = arith.constant dense<0.000000e+00> : vector<8x128xf32>
    %349 = tpu.matmul %348, %334, %cst_146 {dimension_numbers = #tpu.dot_dimension_numbers<[1], [0], [0], [1], [0, 0, 1, 1], [], []>} : vector<8x4xbf16>, vector<4x128xbf16>, vector<8x128xf32> -> vector<8x128xf32>
    %350 = tpu.iota {dimensions = array<i32: 0>} : vector<8x4xi32>
    %351 = tpu.iota {dimensions = array<i32: 1>} : vector<8x4xi32>
    %c2_i32_147 = arith.constant 2 : i32
    %352 = vector.broadcast %c2_i32_147 : i32 to vector<8x4xi32>
    %353 = arith.muli %352, %351 : vector<8x4xi32>
    %c1_i32_148 = arith.constant 1 : i32
    %354 = vector.broadcast %c1_i32_148 : i32 to vector<8x4xi32>
    %355 = arith.addi %353, %354 : vector<8x4xi32>
    %356 = arith.cmpi eq, %350, %355 : vector<8x4xi32>
    %cst_149 = arith.constant 1.000000e+00 : f32
    %cst_150 = arith.constant 0.000000e+00 : f32
    %357 = vector.broadcast %cst_149 : f32 to vector<8x4xf32>
    %358 = vector.broadcast %cst_150 : f32 to vector<8x4xf32>
    %359 = arith.select %356, %357, %358 : vector<8x4xi1>, vector<8x4xf32>
    %360 = arith.truncf %359 : vector<8x4xf32> to vector<8x4xbf16>
    %cst_151 = arith.constant dense<0.000000e+00> : vector<8x128xf32>
    %361 = tpu.matmul %360, %337, %cst_151 {dimension_numbers = #tpu.dot_dimension_numbers<[1], [0], [0], [1], [0, 0, 1, 1], [], []>} : vector<8x4xbf16>, vector<4x128xbf16>, vector<8x128xf32> -> vector<8x128xf32>
    %362 = arith.addf %349, %361 : vector<8x128xf32>
    %363 = arith.truncf %362 : vector<8x128xf32> to vector<8x128xbf16>
    %c0_152 = arith.constant 0 : index
    %c0_153 = arith.constant 0 : index
    %364 = vector.load %arg22[%c0_152, %c0_153] : memref<128x256xbf16, #tpu.memory_space<vmem>>, vector<128x256xbf16>
    %c0_154 = arith.constant 0 : index
    %c0_155 = arith.constant 0 : index
    %365 = vector.load %arg23[%c0_154, %c0_155] : memref<16x256xbf16, #tpu.memory_space<vmem>>, vector<16x256xbf16>
    %c0_156 = arith.constant 0 : index
    %c0_157 = arith.constant 0 : index
    %366 = vector.load %arg24[%c0_156, %c0_157] : memref<1x256xf32, #tpu.memory_space<vmem>>, vector<1x256xf32>
    %367 = vector.extract_strided_slice %192 {offsets = [0, 1536], sizes = [2, 256], strides = [1, 1]} : vector<2x2176xf32> to vector<2x256xf32>
    %368 = tpu.iota {dimensions = array<i32: 0>} : vector<8x2xi32>
    %369 = tpu.iota {dimensions = array<i32: 1>} : vector<8x2xi32>
    %c4_i32 = arith.constant 4 : i32
    %370 = vector.broadcast %c4_i32 : i32 to vector<8x2xi32>
    %371 = arith.muli %369, %370 : vector<8x2xi32>
    %372 = arith.cmpi sge, %368, %371 : vector<8x2xi32>
    %c1_i32_158 = arith.constant 1 : i32
    %373 = vector.broadcast %c1_i32_158 : i32 to vector<8x2xi32>
    %374 = arith.addi %369, %373 : vector<8x2xi32>
    %c4_i32_159 = arith.constant 4 : i32
    %375 = vector.broadcast %c4_i32_159 : i32 to vector<8x2xi32>
    %376 = arith.muli %374, %375 : vector<8x2xi32>
    %377 = arith.cmpi slt, %368, %376 : vector<8x2xi32>
    %378 = arith.andi %372, %377 : vector<8x2xi1>
    %cst_160 = arith.constant 1.000000e+00 : f32
    %cst_161 = arith.constant 0.000000e+00 : f32
    %379 = vector.broadcast %cst_160 : f32 to vector<8x2xf32>
    %380 = vector.broadcast %cst_161 : f32 to vector<8x2xf32>
    %381 = arith.select %378, %379, %380 : vector<8x2xi1>, vector<8x2xf32>
    %382 = arith.truncf %381 : vector<8x2xf32> to vector<8x2xbf16>
    %383 = arith.truncf %367 : vector<2x256xf32> to vector<2x256xbf16>
    %cst_162 = arith.constant dense<0.000000e+00> : vector<8x256xf32>
    %384 = tpu.matmul %382, %383, %cst_162 {dimension_numbers = #tpu.dot_dimension_numbers<[1], [0], [0], [1], [0, 0, 1, 1], [], []>} : vector<8x2xbf16>, vector<2x256xbf16>, vector<8x256xf32> -> vector<8x256xf32>
    %cst_163 = arith.constant dense<0.000000e+00> : vector<8x256xf32>
    %385 = tpu.matmul %363, %364, %cst_163 {dimension_numbers = #tpu.dot_dimension_numbers<[1], [0], [0], [1], [0, 0, 1, 1], [], []>} : vector<8x128xbf16>, vector<128x256xbf16>, vector<8x256xf32> -> vector<8x256xf32>
    %cst_164 = arith.constant dense<0.000000e+00> : vector<8x256xf32>
    %386 = tpu.matmul %134, %365, %cst_164 {dimension_numbers = #tpu.dot_dimension_numbers<[1], [0], [0], [1], [0, 0, 1, 1], [], []>} : vector<8x16xbf16>, vector<16x256xbf16>, vector<8x256xf32> -> vector<8x256xf32>
    %387 = arith.addf %385, %386 : vector<8x256xf32>
    %388 = arith.addf %387, %384 : vector<8x256xf32>
    %389 = vector.broadcast %366 : vector<1x256xf32> to vector<8x256xf32>
    %390 = arith.addf %388, %389 : vector<8x256xf32>
    %391 = vector.extract_strided_slice %390 {offsets = [0, 0], sizes = [8, 128], strides = [1, 1]} : vector<8x256xf32> to vector<8x128xf32>
    %392 = vector.extract_strided_slice %390 {offsets = [0, 128], sizes = [8, 128], strides = [1, 1]} : vector<8x256xf32> to vector<8x128xf32>
    %cst_165 = arith.constant dense<0.000000e+00> : vector<128xf32>
    %393 = vector.multi_reduction <add>, %391, %cst_165 [0] : vector<8x128xf32> to vector<128xf32>
    %394 = vector.shape_cast %393 : vector<128xf32> to vector<1x128xf32>
    %cst_166 = arith.constant dense<0.000000e+00> : vector<128xf32>
    %395 = vector.multi_reduction <add>, %392, %cst_166 [0] : vector<8x128xf32> to vector<128xf32>
    %396 = vector.shape_cast %395 : vector<128xf32> to vector<1x128xf32>
    %397 = arith.addf %394, %396 : vector<1x128xf32>
    %cst_167 = arith.constant 1.600000e+01 : f32
    %398 = vector.broadcast %cst_167 : f32 to vector<1x128xf32>
    %399 = arith.divf %397, %398 : vector<1x128xf32>
    %400 = vector.broadcast %399 : vector<1x128xf32> to vector<8x128xf32>
    %401 = arith.subf %391, %400 : vector<8x128xf32>
    %402 = vector.broadcast %399 : vector<1x128xf32> to vector<8x128xf32>
    %403 = arith.subf %392, %402 : vector<8x128xf32>
    %404 = arith.mulf %401, %401 : vector<8x128xf32>
    %cst_168 = arith.constant dense<0.000000e+00> : vector<128xf32>
    %405 = vector.multi_reduction <add>, %404, %cst_168 [0] : vector<8x128xf32> to vector<128xf32>
    %406 = vector.shape_cast %405 : vector<128xf32> to vector<1x128xf32>
    %407 = arith.mulf %403, %403 : vector<8x128xf32>
    %cst_169 = arith.constant dense<0.000000e+00> : vector<128xf32>
    %408 = vector.multi_reduction <add>, %407, %cst_169 [0] : vector<8x128xf32> to vector<128xf32>
    %409 = vector.shape_cast %408 : vector<128xf32> to vector<1x128xf32>
    %410 = arith.addf %406, %409 : vector<1x128xf32>
    %cst_170 = arith.constant 1.600000e+01 : f32
    %411 = vector.broadcast %cst_170 : f32 to vector<1x128xf32>
    %412 = arith.divf %410, %411 : vector<1x128xf32>
    %cst_171 = arith.constant 9.99999974E-6 : f32
    %413 = vector.broadcast %cst_171 : f32 to vector<1x128xf32>
    %414 = arith.addf %412, %413 : vector<1x128xf32>
    %415 = math.rsqrt %414 : vector<1x128xf32>
    %416 = vector.broadcast %415 : vector<1x128xf32> to vector<8x128xf32>
    %417 = arith.mulf %401, %416 : vector<8x128xf32>
    %418 = vector.broadcast %415 : vector<1x128xf32> to vector<8x128xf32>
    %419 = arith.mulf %403, %418 : vector<8x128xf32>
    %cst_172 = arith.constant 0.000000e+00 : f32
    %420 = vector.broadcast %cst_172 : f32 to vector<8x128xf32>
    %421 = arith.maximumf %417, %420 : vector<8x128xf32>
    %422 = arith.truncf %421 : vector<8x128xf32> to vector<8x128xbf16>
    %cst_173 = arith.constant 0.000000e+00 : f32
    %423 = vector.broadcast %cst_173 : f32 to vector<8x128xf32>
    %424 = arith.maximumf %419, %423 : vector<8x128xf32>
    %425 = arith.truncf %424 : vector<8x128xf32> to vector<8x128xbf16>
    %426 = tpu.iota {dimensions = array<i32: 0>} : vector<16x8xi32>
    %427 = tpu.iota {dimensions = array<i32: 1>} : vector<16x8xi32>
    %c2_i32_174 = arith.constant 2 : i32
    %428 = vector.broadcast %c2_i32_174 : i32 to vector<16x8xi32>
    %429 = arith.muli %428, %427 : vector<16x8xi32>
    %c0_i32_175 = arith.constant 0 : i32
    %430 = vector.broadcast %c0_i32_175 : i32 to vector<16x8xi32>
    %431 = arith.addi %429, %430 : vector<16x8xi32>
    %432 = arith.cmpi eq, %426, %431 : vector<16x8xi32>
    %cst_176 = arith.constant 1.000000e+00 : f32
    %cst_177 = arith.constant 0.000000e+00 : f32
    %433 = vector.broadcast %cst_176 : f32 to vector<16x8xf32>
    %434 = vector.broadcast %cst_177 : f32 to vector<16x8xf32>
    %435 = arith.select %432, %433, %434 : vector<16x8xi1>, vector<16x8xf32>
    %436 = arith.truncf %435 : vector<16x8xf32> to vector<16x8xbf16>
    %cst_178 = arith.constant dense<0.000000e+00> : vector<16x128xf32>
    %437 = tpu.matmul %436, %422, %cst_178 {dimension_numbers = #tpu.dot_dimension_numbers<[1], [0], [0], [1], [0, 0, 1, 1], [], []>} : vector<16x8xbf16>, vector<8x128xbf16>, vector<16x128xf32> -> vector<16x128xf32>
    %438 = tpu.iota {dimensions = array<i32: 0>} : vector<16x8xi32>
    %439 = tpu.iota {dimensions = array<i32: 1>} : vector<16x8xi32>
    %c2_i32_179 = arith.constant 2 : i32
    %440 = vector.broadcast %c2_i32_179 : i32 to vector<16x8xi32>
    %441 = arith.muli %440, %439 : vector<16x8xi32>
    %c1_i32_180 = arith.constant 1 : i32
    %442 = vector.broadcast %c1_i32_180 : i32 to vector<16x8xi32>
    %443 = arith.addi %441, %442 : vector<16x8xi32>
    %444 = arith.cmpi eq, %438, %443 : vector<16x8xi32>
    %cst_181 = arith.constant 1.000000e+00 : f32
    %cst_182 = arith.constant 0.000000e+00 : f32
    %445 = vector.broadcast %cst_181 : f32 to vector<16x8xf32>
    %446 = vector.broadcast %cst_182 : f32 to vector<16x8xf32>
    %447 = arith.select %444, %445, %446 : vector<16x8xi1>, vector<16x8xf32>
    %448 = arith.truncf %447 : vector<16x8xf32> to vector<16x8xbf16>
    %cst_183 = arith.constant dense<0.000000e+00> : vector<16x128xf32>
    %449 = tpu.matmul %448, %425, %cst_183 {dimension_numbers = #tpu.dot_dimension_numbers<[1], [0], [0], [1], [0, 0, 1, 1], [], []>} : vector<16x8xbf16>, vector<8x128xbf16>, vector<16x128xf32> -> vector<16x128xf32>
    %450 = arith.addf %437, %449 : vector<16x128xf32>
    %451 = arith.truncf %450 : vector<16x128xf32> to vector<16x128xbf16>
    %c0_184 = arith.constant 0 : index
    %c0_185 = arith.constant 0 : index
    %452 = vector.load %arg25[%c0_184, %c0_185] : memref<128x256xbf16, #tpu.memory_space<vmem>>, vector<128x256xbf16>
    %c0_186 = arith.constant 0 : index
    %c0_187 = arith.constant 0 : index
    %453 = vector.load %arg26[%c0_186, %c0_187] : memref<16x256xbf16, #tpu.memory_space<vmem>>, vector<16x256xbf16>
    %c0_188 = arith.constant 0 : index
    %c0_189 = arith.constant 0 : index
    %454 = vector.load %arg27[%c0_188, %c0_189] : memref<1x256xf32, #tpu.memory_space<vmem>>, vector<1x256xf32>
    %455 = vector.extract_strided_slice %192 {offsets = [0, 1792], sizes = [2, 256], strides = [1, 1]} : vector<2x2176xf32> to vector<2x256xf32>
    %456 = tpu.iota {dimensions = array<i32: 0>} : vector<16x2xi32>
    %457 = tpu.iota {dimensions = array<i32: 1>} : vector<16x2xi32>
    %c8_i32 = arith.constant 8 : i32
    %458 = vector.broadcast %c8_i32 : i32 to vector<16x2xi32>
    %459 = arith.muli %457, %458 : vector<16x2xi32>
    %460 = arith.cmpi sge, %456, %459 : vector<16x2xi32>
    %c1_i32_190 = arith.constant 1 : i32
    %461 = vector.broadcast %c1_i32_190 : i32 to vector<16x2xi32>
    %462 = arith.addi %457, %461 : vector<16x2xi32>
    %c8_i32_191 = arith.constant 8 : i32
    %463 = vector.broadcast %c8_i32_191 : i32 to vector<16x2xi32>
    %464 = arith.muli %462, %463 : vector<16x2xi32>
    %465 = arith.cmpi slt, %456, %464 : vector<16x2xi32>
    %466 = arith.andi %460, %465 : vector<16x2xi1>
    %cst_192 = arith.constant 1.000000e+00 : f32
    %cst_193 = arith.constant 0.000000e+00 : f32
    %467 = vector.broadcast %cst_192 : f32 to vector<16x2xf32>
    %468 = vector.broadcast %cst_193 : f32 to vector<16x2xf32>
    %469 = arith.select %466, %467, %468 : vector<16x2xi1>, vector<16x2xf32>
    %470 = arith.truncf %469 : vector<16x2xf32> to vector<16x2xbf16>
    %471 = arith.truncf %455 : vector<2x256xf32> to vector<2x256xbf16>
    %cst_194 = arith.constant dense<0.000000e+00> : vector<16x256xf32>
    %472 = tpu.matmul %470, %471, %cst_194 {dimension_numbers = #tpu.dot_dimension_numbers<[1], [0], [0], [1], [0, 0, 1, 1], [], []>} : vector<16x2xbf16>, vector<2x256xbf16>, vector<16x256xf32> -> vector<16x256xf32>
    %cst_195 = arith.constant dense<0.000000e+00> : vector<16x256xf32>
    %473 = tpu.matmul %451, %452, %cst_195 {dimension_numbers = #tpu.dot_dimension_numbers<[1], [0], [0], [1], [0, 0, 1, 1], [], []>} : vector<16x128xbf16>, vector<128x256xbf16>, vector<16x256xf32> -> vector<16x256xf32>
    %cst_196 = arith.constant dense<0.000000e+00> : vector<16x256xf32>
    %474 = tpu.matmul %80, %453, %cst_196 {dimension_numbers = #tpu.dot_dimension_numbers<[1], [0], [0], [1], [0, 0, 1, 1], [], []>} : vector<16x16xbf16>, vector<16x256xbf16>, vector<16x256xf32> -> vector<16x256xf32>
    %475 = arith.addf %473, %474 : vector<16x256xf32>
    %476 = arith.addf %475, %472 : vector<16x256xf32>
    %477 = vector.broadcast %454 : vector<1x256xf32> to vector<16x256xf32>
    %478 = arith.addf %476, %477 : vector<16x256xf32>
    %479 = vector.extract_strided_slice %478 {offsets = [0, 0], sizes = [16, 128], strides = [1, 1]} : vector<16x256xf32> to vector<16x128xf32>
    %480 = vector.extract_strided_slice %478 {offsets = [0, 128], sizes = [16, 128], strides = [1, 1]} : vector<16x256xf32> to vector<16x128xf32>
    %cst_197 = arith.constant dense<0.000000e+00> : vector<128xf32>
    %481 = vector.multi_reduction <add>, %479, %cst_197 [0] : vector<16x128xf32> to vector<128xf32>
    %482 = vector.shape_cast %481 : vector<128xf32> to vector<1x128xf32>
    %cst_198 = arith.constant dense<0.000000e+00> : vector<128xf32>
    %483 = vector.multi_reduction <add>, %480, %cst_198 [0] : vector<16x128xf32> to vector<128xf32>
    %484 = vector.shape_cast %483 : vector<128xf32> to vector<1x128xf32>
    %485 = arith.addf %482, %484 : vector<1x128xf32>
    %cst_199 = arith.constant 3.200000e+01 : f32
    %486 = vector.broadcast %cst_199 : f32 to vector<1x128xf32>
    %487 = arith.divf %485, %486 : vector<1x128xf32>
    %488 = vector.broadcast %487 : vector<1x128xf32> to vector<16x128xf32>
    %489 = arith.subf %479, %488 : vector<16x128xf32>
    %490 = vector.broadcast %487 : vector<1x128xf32> to vector<16x128xf32>
    %491 = arith.subf %480, %490 : vector<16x128xf32>
    %492 = arith.mulf %489, %489 : vector<16x128xf32>
    %cst_200 = arith.constant dense<0.000000e+00> : vector<128xf32>
    %493 = vector.multi_reduction <add>, %492, %cst_200 [0] : vector<16x128xf32> to vector<128xf32>
    %494 = vector.shape_cast %493 : vector<128xf32> to vector<1x128xf32>
    %495 = arith.mulf %491, %491 : vector<16x128xf32>
    %cst_201 = arith.constant dense<0.000000e+00> : vector<128xf32>
    %496 = vector.multi_reduction <add>, %495, %cst_201 [0] : vector<16x128xf32> to vector<128xf32>
    %497 = vector.shape_cast %496 : vector<128xf32> to vector<1x128xf32>
    %498 = arith.addf %494, %497 : vector<1x128xf32>
    %cst_202 = arith.constant 3.200000e+01 : f32
    %499 = vector.broadcast %cst_202 : f32 to vector<1x128xf32>
    %500 = arith.divf %498, %499 : vector<1x128xf32>
    %cst_203 = arith.constant 9.99999974E-6 : f32
    %501 = vector.broadcast %cst_203 : f32 to vector<1x128xf32>
    %502 = arith.addf %500, %501 : vector<1x128xf32>
    %503 = math.rsqrt %502 : vector<1x128xf32>
    %504 = vector.broadcast %503 : vector<1x128xf32> to vector<16x128xf32>
    %505 = arith.mulf %489, %504 : vector<16x128xf32>
    %506 = vector.broadcast %503 : vector<1x128xf32> to vector<16x128xf32>
    %507 = arith.mulf %491, %506 : vector<16x128xf32>
    %cst_204 = arith.constant 0.000000e+00 : f32
    %508 = vector.broadcast %cst_204 : f32 to vector<16x128xf32>
    %509 = arith.maximumf %505, %508 : vector<16x128xf32>
    %510 = arith.truncf %509 : vector<16x128xf32> to vector<16x128xbf16>
    %cst_205 = arith.constant 0.000000e+00 : f32
    %511 = vector.broadcast %cst_205 : f32 to vector<16x128xf32>
    %512 = arith.maximumf %507, %511 : vector<16x128xf32>
    %513 = arith.truncf %512 : vector<16x128xf32> to vector<16x128xbf16>
    %514 = tpu.iota {dimensions = array<i32: 0>} : vector<32x16xi32>
    %515 = tpu.iota {dimensions = array<i32: 1>} : vector<32x16xi32>
    %c2_i32_206 = arith.constant 2 : i32
    %516 = vector.broadcast %c2_i32_206 : i32 to vector<32x16xi32>
    %517 = arith.muli %516, %515 : vector<32x16xi32>
    %c0_i32_207 = arith.constant 0 : i32
    %518 = vector.broadcast %c0_i32_207 : i32 to vector<32x16xi32>
    %519 = arith.addi %517, %518 : vector<32x16xi32>
    %520 = arith.cmpi eq, %514, %519 : vector<32x16xi32>
    %cst_208 = arith.constant 1.000000e+00 : f32
    %cst_209 = arith.constant 0.000000e+00 : f32
    %521 = vector.broadcast %cst_208 : f32 to vector<32x16xf32>
    %522 = vector.broadcast %cst_209 : f32 to vector<32x16xf32>
    %523 = arith.select %520, %521, %522 : vector<32x16xi1>, vector<32x16xf32>
    %524 = arith.truncf %523 : vector<32x16xf32> to vector<32x16xbf16>
    %cst_210 = arith.constant dense<0.000000e+00> : vector<32x128xf32>
    %525 = tpu.matmul %524, %510, %cst_210 {dimension_numbers = #tpu.dot_dimension_numbers<[1], [0], [0], [1], [0, 0, 1, 1], [], []>} : vector<32x16xbf16>, vector<16x128xbf16>, vector<32x128xf32> -> vector<32x128xf32>
    %526 = tpu.iota {dimensions = array<i32: 0>} : vector<32x16xi32>
    %527 = tpu.iota {dimensions = array<i32: 1>} : vector<32x16xi32>
    %c2_i32_211 = arith.constant 2 : i32
    %528 = vector.broadcast %c2_i32_211 : i32 to vector<32x16xi32>
    %529 = arith.muli %528, %527 : vector<32x16xi32>
    %c1_i32_212 = arith.constant 1 : i32
    %530 = vector.broadcast %c1_i32_212 : i32 to vector<32x16xi32>
    %531 = arith.addi %529, %530 : vector<32x16xi32>
    %532 = arith.cmpi eq, %526, %531 : vector<32x16xi32>
    %cst_213 = arith.constant 1.000000e+00 : f32
    %cst_214 = arith.constant 0.000000e+00 : f32
    %533 = vector.broadcast %cst_213 : f32 to vector<32x16xf32>
    %534 = vector.broadcast %cst_214 : f32 to vector<32x16xf32>
    %535 = arith.select %532, %533, %534 : vector<32x16xi1>, vector<32x16xf32>
    %536 = arith.truncf %535 : vector<32x16xf32> to vector<32x16xbf16>
    %cst_215 = arith.constant dense<0.000000e+00> : vector<32x128xf32>
    %537 = tpu.matmul %536, %513, %cst_215 {dimension_numbers = #tpu.dot_dimension_numbers<[1], [0], [0], [1], [0, 0, 1, 1], [], []>} : vector<32x16xbf16>, vector<16x128xbf16>, vector<32x128xf32> -> vector<32x128xf32>
    %538 = arith.addf %525, %537 : vector<32x128xf32>
    %539 = arith.truncf %538 : vector<32x128xf32> to vector<32x128xbf16>
    %540 = tpu.iota {dimensions = array<i32: 0>} : vector<32x2xi32>
    %541 = tpu.iota {dimensions = array<i32: 1>} : vector<32x2xi32>
    %c16_i32 = arith.constant 16 : i32
    %542 = vector.broadcast %c16_i32 : i32 to vector<32x2xi32>
    %543 = arith.muli %541, %542 : vector<32x2xi32>
    %544 = arith.cmpi sge, %540, %543 : vector<32x2xi32>
    %c1_i32_216 = arith.constant 1 : i32
    %545 = vector.broadcast %c1_i32_216 : i32 to vector<32x2xi32>
    %546 = arith.addi %541, %545 : vector<32x2xi32>
    %c16_i32_217 = arith.constant 16 : i32
    %547 = vector.broadcast %c16_i32_217 : i32 to vector<32x2xi32>
    %548 = arith.muli %546, %547 : vector<32x2xi32>
    %549 = arith.cmpi slt, %540, %548 : vector<32x2xi32>
    %550 = arith.andi %544, %549 : vector<32x2xi1>
    %cst_218 = arith.constant 1.000000e+00 : f32
    %cst_219 = arith.constant 0.000000e+00 : f32
    %551 = vector.broadcast %cst_218 : f32 to vector<32x2xf32>
    %552 = vector.broadcast %cst_219 : f32 to vector<32x2xf32>
    %553 = arith.select %550, %551, %552 : vector<32x2xi1>, vector<32x2xf32>
    %554 = arith.truncf %553 : vector<32x2xf32> to vector<32x2xbf16>
    %555 = vector.extract_strided_slice %192 {offsets = [0, 2048], sizes = [2, 128], strides = [1, 1]} : vector<2x2176xf32> to vector<2x128xf32>
    %556 = arith.truncf %555 : vector<2x128xf32> to vector<2x128xbf16>
    %cst_220 = arith.constant dense<0.000000e+00> : vector<32x128xf32>
    %557 = tpu.matmul %554, %556, %cst_220 {dimension_numbers = #tpu.dot_dimension_numbers<[1], [0], [0], [1], [0, 0, 1, 1], [], []>} : vector<32x2xbf16>, vector<2x128xbf16>, vector<32x128xf32> -> vector<32x128xf32>
    %c0_221 = arith.constant 0 : index
    %c0_222 = arith.constant 0 : index
    %558 = vector.load %arg28[%c0_221, %c0_222] : memref<128x128xbf16, #tpu.memory_space<vmem>>, vector<128x128xbf16>
    %cst_223 = arith.constant dense<0.000000e+00> : vector<32x128xf32>
    %559 = tpu.matmul %539, %558, %cst_223 {dimension_numbers = #tpu.dot_dimension_numbers<[1], [0], [0], [1], [0, 0, 1, 1], [], []>} : vector<32x128xbf16>, vector<128x128xbf16>, vector<32x128xf32> -> vector<32x128xf32>
    %c0_224 = arith.constant 0 : index
    %c0_225 = arith.constant 0 : index
    %560 = vector.load %arg29[%c0_224, %c0_225] : memref<16x128xbf16, #tpu.memory_space<vmem>>, vector<16x128xbf16>
    %cst_226 = arith.constant dense<0.000000e+00> : vector<32x128xf32>
    %561 = tpu.matmul %26, %560, %cst_226 {dimension_numbers = #tpu.dot_dimension_numbers<[1], [0], [0], [1], [0, 0, 1, 1], [], []>} : vector<32x16xbf16>, vector<16x128xbf16>, vector<32x128xf32> -> vector<32x128xf32>
    %562 = arith.addf %559, %561 : vector<32x128xf32>
    %563 = arith.addf %562, %557 : vector<32x128xf32>
    %c0_227 = arith.constant 0 : index
    %c0_228 = arith.constant 0 : index
    %564 = vector.load %arg30[%c0_227, %c0_228] : memref<1x128xf32, #tpu.memory_space<vmem>>, vector<1x128xf32>
    %565 = vector.broadcast %564 : vector<1x128xf32> to vector<32x128xf32>
    %566 = arith.addf %563, %565 : vector<32x128xf32>
    %567 = arith.negf %566 : vector<32x128xf32>
    %568 = math.exp %567 : vector<32x128xf32>
    %cst_229 = arith.constant 1.000000e+00 : f32
    %569 = vector.broadcast %cst_229 : f32 to vector<32x128xf32>
    %570 = arith.addf %569, %568 : vector<32x128xf32>
    %571 = arith.divf %569, %570 : vector<32x128xf32>
    %c0_230 = arith.constant 0 : index
    %c0_231 = arith.constant 0 : index
    %572 = vector.load %arg31[%c0_230, %c0_231] : memref<32x128xf32, #tpu.memory_space<vmem>>, vector<32x128xf32>
    tpu.vector_store %arg31[%c0_230, %c0_231], %571 {strides = array<i32>} : memref<32x128xf32, #tpu.memory_space<vmem>>, vector<32x128xf32>,
    return
  }
}

</mosaic_0001>

<bundles_post_ra>
// kernel: generator_forward.1
= control target key start
LH: loop header
LB: loop body
LE: loop exit
PB: predicated region body
PF: predicated region fallthrough
CT: control target
= control target key end

     0   :  { %s6956_s6 = smov 1   ;;  %s6957_s10 = smov 2   ;;  %s7918_s0 = inlined_call_operand.smem [shape: u32[32], index: -1, kind: input, shape index: {}] }
   0x1   :  { %s7030_s5 = sld [smem:[%s7918_s0]]   ;;  %s6958_s14 = smov 3  }
   0x2   :  { %s7035_s9 = sld [smem:[%s7918_s0 + %s6956_s6]]   ;;  %s6959_s18 = smov 4  }
   0x3   :  { %s7040_s13 = sld [smem:[%s7918_s0 + %s6957_s10]]   ;;  %s6960_s22 = smov 5  }
   0x4   :  { %s7045_s17 = sld [smem:[%s7918_s0 + %s6958_s14]]   ;;  %s6961_s26 = smov 6  }
   0x5   :  { %s7050_s21 = sld [smem:[%s7918_s0 + %s6959_s18]]   ;;  %s6962_s30 = smov 7  }
   0x6   :  { %s7055_s25 = sld [smem:[%s7918_s0 + %s6960_s22]]   ;;  %s6963_s4 = smov 8  }
   0x7   :  { %7930 = sst [smem:[#allocation55_spill]] %s7030_s5  ;;  %s6964_s10 = smov 9  }
   0x8   :  { %7931 = sst [smem:[#allocation56_spill]] %s7035_s9  ;;  %s6965_s15 = smov 10  }
   0x9   :  { %7932 = sst [smem:[#allocation57_spill]] %s7040_s13  ;;  %s6966_s20 = smov 11  }
   0xa   :  { %7933 = sst [smem:[#allocation58_spill]] %s7045_s17  ;;  %s6968_s1 = smov 13  }
   0xb   :  { %7934 = sst [smem:[#allocation59_spill]] %s7050_s21  ;;  %s6969_s7 = smov 14  }
   0xc   :  { %7935 = sst [smem:[#allocation60_spill]] %s7055_s25  ;;  %s6971_s22 = smov 16  }
   0xd   :  { %s7060_s29 = sld [smem:[%s7918_s0 + %s6961_s26]]   ;;  %s6967_s26 = smov 12  }
   0xe   :  { %s7065_s3 = sld [smem:[%s7918_s0 + %s6962_s30]]   ;;  %s6972_s28 = smov 17  }
   0xf   :  { %s7070_s8 = sld [smem:[%s7918_s0 + %s6963_s4]]  }
  0x10   :  { %s7075_s14 = sld [smem:[%s7918_s0 + %s6964_s10]]  }
  0x11   :  { %s7080_s19 = sld [smem:[%s7918_s0 + %s6965_s15]]   ;;  %s6970_s15 = smov 15  }
  0x12   :  { %s7085_s24 = sld [smem:[%s7918_s0 + %s6966_s20]]  }
  0x13   :  { %s7090_s30 = sld [smem:[%s7918_s0 + %s6967_s26]]  }
  0x14   :  { %s7095_s6 = sld [smem:[%s7918_s0 + %s6968_s1]]  }
  0x15   :  { %s7100_s12 = sld [smem:[%s7918_s0 + %s6969_s7]]   ;;  %s6973_s7 = smov 18  }
  0x16   :  { %s7105_s20 = sld [smem:[%s7918_s0 + %s6970_s15]]   ;;  %s6974_s15 = smov 19  }
  0x17   :  { %s7110_s27 = sld [smem:[%s7918_s0 + %s6971_s22]]   ;;  %s6975_s22 = smov 20  }
  0x18   :  { %s7115_s4 = sld [smem:[%s7918_s0 + %s6972_s28]]   ;;  %s6976_s28 = smov 21  }
  0x19   :  { %s7120_s5 = sld [smem:[%s7918_s0 + %s6973_s7]]   ;;  %s6977_s7 = smov 22  }
  0x1a   :  { %s7125_s13 = sld [smem:[%s7918_s0 + %s6974_s15]]   ;;  %s6978_s15 = smov 23  }
  0x1b   :  { %7936 = sst [smem:[#allocation61_spill]] %s7100_s12 }
  0x1c   :  { %s7130_s25 = sld [smem:[%s7918_s0 + %s6975_s22]]   ;;  %s6979_s22 = smov 24  }
  0x1d   :  { %7937 = sst [smem:[#allocation62_spill]] %s7110_s27 }
  0x1e   :  { %s7135_s21 = sld [smem:[%s7918_s0 + %s6976_s28]]   ;;  %s6980_s28 = smov 25  }
  0x1f   :  { %7938 = sst [smem:[#allocation63_spill]] %s7120_s5 }
  0x20   :  { %7939 = sst [smem:[#allocation64_spill]] %s7125_s13 }
  0x21   :  { %s7140_s5 = sld [smem:[%s7918_s0 + %s6977_s7]]   ;;  %s6981_s7 = smov 26  }
  0x22   :  { %s7145_s9 = sld [smem:[%s7918_s0 + %s6978_s15]]   ;;  %s6982_s15 = smov 27  }
  0x23   :  { %s7150_s17 = sld [smem:[%s7918_s0 + %s6979_s22]]   ;;  %s6983_s22 = smov 28  }
  0x24   :  { %7940 = sst [smem:[#allocation65_spill]] %s7135_s21 }
  0x25   :  { %s7155_s21 = sld [smem:[%s7918_s0 + %s6980_s28]]   ;;  %s6984_s28 = smov 29  }
  0x26   :  { %s7160_s13 = sld [smem:[%s7918_s0 + %s6981_s7]]   ;;  %s6985_s7 = smov 30  }
  0x27   :  { %s7170_s27 = sld [smem:[%s7918_s0 + %s6983_s22]]  }
  0x28   :  { %7941 = sst [smem:[#allocation66_spill]] %s7145_s9 }
  0x29   :  { %s7165_s9 = sld [smem:[%s7918_s0 + %s6982_s15]]   ;;  %s6986_s15 = smov 31  }
  0x2a   :  { %s7180_s12 = sld [smem:[%s7918_s0 + %s6985_s7]]  }
  0x2b   :  { %7942 = sst [smem:[#allocation67_spill]] %s7155_s21 }
  0x2c   :  { %s7175_s21 = sld [smem:[%s7918_s0 + %s6984_s28]]  }
  0x2f   :  { %7943 = sst [smem:[#allocation68_spill]] %s7165_s9 }
  0x30   :  { %s7185_s9 = sld [smem:[%s7918_s0 + %s6986_s15]]  }
  0x31   :  { %68 = vsyncpa [#allocation3], 0 }
  0x32   :  { %69 = vsyncpa [#allocation6], 0 }
  0x33   :  { %70 = vsyncpa [#allocation9], 0 }
  0x34   :  { %71 = vsyncpa [#allocation12], 0 }
  0x35   :  { %72 = vsyncpa [#allocation15], 0 }
  0x36   :  { %73 = vsyncpa [#allocation18], 0 }
  0x37   :  { %74 = vsyncpa [#allocation21], 0 }
  0x38   :  { %75 = vsyncpa [#allocation24], 0 }
  0x39   :  { %76 = vsyncpa [#allocation27], 0 }
  0x3a   :  { %77 = vsyncpa [#allocation30], 0 }
  0x3b   :  { %78 = vsyncpa [#allocation33], 0 }
  0x3c   :  { %79 = vsyncpa [#allocation36], 0 }
  0x3d   :  { %80 = vsyncpa [#allocation39], 0 }
  0x3e   :  { %81 = vsyncpa [#allocation4], 0  ;;  %s6987_s22 = smov [#allocation5]   ;;  %s6378_s23 = scalar_lea.hbm %s7065_s3, 16 }
  0x3f   :  { %s112_s0 = sshll.u32 %s6987_s22, 4  ;;  %p6379_p0 = scmp.ne.s32.totalorder %s7065_s3, %s6378_s23  ;;  %s113_s0 = int_to_ptr.vmem [resolvable:$true] %s112_s0 }
  0x40   :  { %p6382_p1 = scmp.lt.u32.totalorder %s6378_s23, %s7065_s3 }
  0x42   :  { %p6384_p2 = pnand %p6382_p1, %p6379_p0 }
  0x44   :  { %6387 = shalt.err (!%p6384_p2)
}
  0x45   :  { %s6388_s26 = scalar_lea.vmem %s113_s0, 16  ;;  %s6392_s28 = scalar_lea.vmem %s113_s0, 32 }
  0x46   :  { %p6389_p3 = scmp.ne.s32.totalorder %s113_s0, %s6388_s26  ;;  %p6393_p4 = scmp.lt.s32.totalorder %s113_s0, %s113_s0 }
  0x47   :  { %p6394_p5 = scmp.lt.s32.totalorder %s6392_s28, %s6388_s26 }
  0x49   :  { %p6395_p6 = por %p6394_p5, %p6393_p4 }
  0x4b   :  { %p6396_p7 = pnand %p6395_p6, %p6389_p3 }
  0x4d   :  { %6399 = shalt.err (!%p6396_p7)
}
  0x4e   :  { %115 = dma.hbm_to_vmem [thread:$0]  %s7065_s3, 16, %s113_s0, [#allocation6]  }
  0x4f   :  { %s6988_s1 = smov [#allocation8]   ;;  %s6989_s7 = smov [#allocation11]  }
  0x50   :  { %s133_s2 = sshll.u32 %s6988_s1, 4  ;;  %s155_s10 = sshll.u32 %s6989_s7, 4  ;;  %s134_s2 = int_to_ptr.vmem [resolvable:$true] %s133_s2  ;;  %s156_s10 = int_to_ptr.vmem [resolvable:$true] %s155_s10 }
  0x51   :  { %s6400_s11 = scalar_lea.hbm %s7075_s14, 128 }
  0x52   :  { %p6401_p8 = scmp.ne.s32.totalorder %s7075_s14, %s6400_s11  ;;  %p6404_p9 = scmp.lt.u32.totalorder %s6400_s11, %s7075_s14 }
  0x54   :  { %p6406_p10 = pnand %p6404_p9, %p6401_p8 }
  0x56   :  { %6409 = shalt.err (!%p6406_p10)
}
  0x57   :  { %s6410_s15 = scalar_lea.vmem %s134_s2, 128  ;;  %p6415_p12 = scmp.lt.s32.totalorder %s134_s2, %s134_s2 }
  0x58   :  { %p6411_p11 = scmp.ne.s32.totalorder %s134_s2, %s6410_s15  ;;  %p6416_p13 = scmp.lt.s32.totalorder %s6410_s15, %s6410_s15 }
  0x5a   :  { %p6417_p0 = por %p6416_p13, %p6415_p12 }
  0x5c   :  { %p6418_p1 = pnand %p6417_p0, %p6411_p11 }
  0x5e   :  { %6421 = shalt.err (!%p6418_p1)
}
  0x5f   :  { %s6990_s16 = smov 64   ;;  %s6991_s3 = smov 4  }
  0x60   :  { %139 = dma.hbm_to_vmem [thread:$0]  %s7075_s14, 128, %s134_s2, [#allocation9], %s6990_s16, %s6990_s16, %s6991_s3  }
  0x61   :  { %s6422_s18 = scalar_lea.hbm %s7085_s24, 128 }
  0x62   :  { %p6423_p2 = scmp.ne.s32.totalorder %s7085_s24, %s6422_s18  ;;  %p6426_p3 = scmp.lt.u32.totalorder %s6422_s18, %s7085_s24 }
  0x64   :  { %p6428_p4 = pnand %p6426_p3, %p6423_p2 }
  0x66   :  { %6431 = shalt.err (!%p6428_p4)
}
  0x67   :  { %s6432_s22 = scalar_lea.vmem %s156_s10, 128  ;;  %p6437_p6 = scmp.lt.s32.totalorder %s156_s10, %s156_s10 }
  0x68   :  { %p6433_p5 = scmp.ne.s32.totalorder %s156_s10, %s6432_s22  ;;  %p6438_p7 = scmp.lt.s32.totalorder %s6432_s22, %s6432_s22 }
  0x6a   :  { %p6439_p8 = por %p6438_p7, %p6437_p6 }
  0x6c   :  { %p6440_p9 = pnand %p6439_p8, %p6433_p5 }
  0x6e   :  { %6443 = shalt.err (!%p6440_p9)
}
  0x6f   :  { %161 = dma.hbm_to_vmem [thread:$0]  %s7085_s24, 128, %s156_s10, [#allocation12], %s6990_s16, %s6990_s16, %s6991_s3  }
  0x70   :  { %s6992_s14 = smov [#allocation14]   ;;  %s6993_s23 = smov [#allocation17]  }
  0x71   :  { %s180_s0 = sshll.u32 %s6992_s14, 4  ;;  %s202_s26 = sshll.u32 %s6993_s23, 4  ;;  %s181_s0 = int_to_ptr.vmem [resolvable:$true] %s180_s0  ;;  %s203_s26 = int_to_ptr.vmem [resolvable:$true] %s202_s26 }
  0x72   :  { %s6444_s28 = scalar_lea.hbm %s7095_s6, 16 }
  0x73   :  { %p6445_p10 = scmp.ne.s32.totalorder %s7095_s6, %s6444_s28  ;;  %p6448_p11 = scmp.lt.u32.totalorder %s6444_s28, %s7095_s6 }
  0x75   :  { %p6450_p12 = pnand %p6448_p11, %p6445_p10 }
  0x77   :  { %6453 = shalt.err (!%p6450_p12)
}
  0x78   :  { %s6454_s1 = scalar_lea.vmem %s181_s0, 16  ;;  %s6458_s2 = scalar_lea.vmem %s181_s0, 32 }
  0x79   :  { %p6455_p13 = scmp.ne.s32.totalorder %s181_s0, %s6454_s1  ;;  %p6459_p0 = scmp.lt.s32.totalorder %s181_s0, %s181_s0 }
  0x7a   :  { %p6460_p1 = scmp.lt.s32.totalorder %s6458_s2, %s6454_s1 }
  0x7c   :  { %p6461_p2 = por %p6460_p1, %p6459_p0 }
  0x7e   :  { %p6462_p3 = pnand %p6461_p2, %p6455_p13 }
  0x80   :  { %6465 = shalt.err (!%p6462_p3)
}
  0x81   :  { %183 = dma.hbm_to_vmem [thread:$0]  %s7095_s6, 16, %s181_s0, [#allocation15]  }
  0x82   :  { %s6466_s24 = scalar_lea.hbm %s7105_s20, 128 }
  0x83   :  { %p6467_p4 = scmp.ne.s32.totalorder %s7105_s20, %s6466_s24  ;;  %p6470_p5 = scmp.lt.u32.totalorder %s6466_s24, %s7105_s20 }
  0x85   :  { %p6472_p6 = pnand %p6470_p5, %p6467_p4 }
  0x87   :  { %6475 = shalt.err (!%p6472_p6)
}
  0x88   :  { %s6476_s7 = scalar_lea.vmem %s203_s26, 128  ;;  %p6481_p8 = scmp.lt.s32.totalorder %s203_s26, %s203_s26 }
  0x89   :  { %p6477_p7 = scmp.ne.s32.totalorder %s203_s26, %s6476_s7  ;;  %p6482_p9 = scmp.lt.s32.totalorder %s6476_s7, %s6476_s7 }
  0x8b   :  { %p6483_p10 = por %p6482_p9, %p6481_p8 }
  0x8d   :  { %p6484_p11 = pnand %p6483_p10, %p6477_p7 }
  0x8f   :  { %6487 = shalt.err (!%p6484_p11)
}
  0x90   :  { %205 = dma.hbm_to_vmem [thread:$0]  %s7105_s20, 128, %s203_s26, [#allocation18]  }
  0x91   :  { %s6994_s10 = smov [#allocation20]   ;;  %s6488_s11 = scalar_lea.hbm %s7115_s4, 32 }
  0x92   :  { %s224_s6 = sshll.u32 %s6994_s10, 4  ;;  %p6489_p12 = scmp.ne.s32.totalorder %s7115_s4, %s6488_s11  ;;  %s225_s6 = int_to_ptr.vmem [resolvable:$true] %s224_s6 }
  0x93   :  { %p6492_p13 = scmp.lt.u32.totalorder %s6488_s11, %s7115_s4 }
  0x95   :  { %p6494_p0 = pnand %p6492_p13, %p6489_p12 }
  0x97   :  { %6497 = shalt.err (!%p6494_p0)
}
  0x98   :  { %s6498_s15 = scalar_lea.vmem %s225_s6, 32  ;;  %p6503_p2 = scmp.lt.s32.totalorder %s225_s6, %s225_s6 }
  0x99   :  { %p6499_p1 = scmp.ne.s32.totalorder %s225_s6, %s6498_s15  ;;  %p6504_p3 = scmp.lt.s32.totalorder %s6498_s15, %s6498_s15 }
  0x9b   :  { %p6505_p4 = por %p6504_p3, %p6503_p2 }
  0x9d   :  { %p6506_p5 = pnand %p6505_p4, %p6499_p1 }
  0x9f   :  { %6509 = shalt.err (!%p6506_p5)
}
  0xa0   :  { %227 = dma.hbm_to_vmem [thread:$0]  %s7115_s4, 32, %s225_s6, [#allocation21]  }
  0xa1   :  { %s6995_s20 = smov [#allocation23]   ;;  %s6996_s22 = smov [#allocation26]  }
  0xa2   :  { %s247_s18 = sshll.u32 %s6995_s20, 4  ;;  %s269_s14 = sshll.u32 %s6996_s22, 4  ;;  %s248_s18 = int_to_ptr.vmem [resolvable:$true] %s247_s18  ;;  %s7217_s14 = int_to_ptr.vmem [resolvable:$true] %s269_s14 }
  0xa3   :  { %s6510_s0 = scalar_lea.hbm %s7130_s25, 256 }
  0xa4   :  { %p6511_p6 = scmp.ne.s32.totalorder %s7130_s25, %s6510_s0  ;;  %p6514_p7 = scmp.lt.u32.totalorder %s6510_s0, %s7130_s25 }
  0xa6   :  { %p6516_p8 = pnand %p6514_p7, %p6511_p6 }
  0xa8   :  { %6519 = shalt.err (!%p6516_p8)
}
  0xa9   :  { %s6520_s23 = scalar_lea.vmem %s248_s18, 256  ;;  %p6525_p10 = scmp.lt.s32.totalorder %s248_s18, %s248_s18 }
  0xaa   :  { %p6521_p9 = scmp.ne.s32.totalorder %s248_s18, %s6520_s23  ;;  %p6526_p11 = scmp.lt.s32.totalorder %s6520_s23, %s6520_s23 }
  0xac   :  { %p6527_p12 = por %p6526_p11, %p6525_p10 }
  0xae   :  { %p6528_p13 = pnand %p6527_p12, %p6521_p9 }
  0xb0   :  { %6531 = shalt.err (!%p6528_p13)
}
  0xb1   :  { %s6997_s4 = smov 128   ;;  %s6998_s26 = smov 8  }
  0xb2   :  { %253 = dma.hbm_to_vmem [thread:$0]  %s7130_s25, 256, %s248_s18, [#allocation24], %s6997_s4, %s6997_s4, %s6998_s26  }
  0xb3   :  { %s6532_s28 = scalar_lea.hbm %s7140_s5, 2048 }
  0xb4   :  { %p6533_p0 = scmp.ne.s32.totalorder %s7140_s5, %s6532_s28  ;;  %p6536_p1 = scmp.lt.u32.totalorder %s6532_s28, %s7140_s5 }
  0xb6   :  { %p6538_p2 = pnand %p6536_p1, %p6533_p0 }
  0xb8   :  { %6541 = shalt.err (!%p6538_p2)
}
  0xb9   :  { %s6542_s1 = scalar_lea.vmem %s7217_s14, 2048  ;;  %p6547_p4 = scmp.lt.s32.totalorder %s7217_s14, %s7217_s14 }
  0xba   :  { %p6543_p3 = scmp.ne.s32.totalorder %s7217_s14, %s6542_s1  ;;  %p6548_p5 = scmp.lt.s32.totalorder %s6542_s1, %s6542_s1 }
  0xbc   :  { %p6549_p6 = por %p6548_p5, %p6547_p4 }
  0xbe   :  { %p6550_p7 = pnand %p6549_p6, %p6543_p3 }
  0xc0   :  { %6553 = shalt.err (!%p6550_p7)
}
  0xc1   :  { %275 = dma.hbm_to_vmem [thread:$0]  %s7140_s5, 2048, %s7217_s14, [#allocation27], %s6997_s4, %s6997_s4, %s6998_s26  }
  0xc2   :  { %s6999_s25 = smov [#allocation29]   ;;  %s7000_s24 = smov [#allocation32]  }
  0xc3   :  { %s294_s2 = sshll.u32 %s6999_s25, 4  ;;  %s315_s7 = sshll.u32 %s7000_s24, 4  ;;  %s295_s2 = int_to_ptr.vmem [resolvable:$true] %s294_s2  ;;  %s7238_s7 = int_to_ptr.vmem [resolvable:$true] %s315_s7 }
  0xc4   :  { %s6554_s10 = scalar_lea.hbm %s7150_s17, 32 }
  0xc5   :  { %p6555_p8 = scmp.ne.s32.totalorder %s7150_s17, %s6554_s10  ;;  %p6558_p9 = scmp.lt.u32.totalorder %s6554_s10, %s7150_s17 }
  0xc7   :  { %p6560_p10 = pnand %p6558_p9, %p6555_p8 }
  0xc9   :  { %6563 = shalt.err (!%p6560_p10)
}
  0xca   :  { %s6564_s6 = scalar_lea.vmem %s295_s2, 32  ;;  %p6569_p12 = scmp.lt.s32.totalorder %s295_s2, %s295_s2 }
  0xcb   :  { %p6565_p11 = scmp.ne.s32.totalorder %s295_s2, %s6564_s6  ;;  %p6570_p13 = scmp.lt.s32.totalorder %s6564_s6, %s6564_s6 }
  0xcd   :  { %p6571_p0 = por %p6570_p13, %p6569_p12 }
  0xcf   :  { %p6572_p1 = pnand %p6571_p0, %p6565_p11 }
  0xd1   :  { %6575 = shalt.err (!%p6572_p1)
}
  0xd2   :  { %297 = dma.hbm_to_vmem [thread:$0]  %s7150_s17, 32, %s295_s2, [#allocation30]  }
  0xd3   :  { %s6576_s5 = scalar_lea.hbm %s7160_s13, 256 }
  0xd4   :  { %p6577_p2 = scmp.ne.s32.totalorder %s7160_s13, %s6576_s5  ;;  %p6580_p3 = scmp.lt.u32.totalorder %s6576_s5, %s7160_s13 }
  0xd6   :  { %p6582_p4 = pnand %p6580_p3, %p6577_p2 }
  0xd8   :  { %6585 = shalt.err (!%p6582_p4)
}
  0xd9   :  { %s6586_s11 = scalar_lea.vmem %s7238_s7, 256  ;;  %p6591_p6 = scmp.lt.s32.totalorder %s7238_s7, %s7238_s7 }
  0xda   :  { %p6587_p5 = scmp.ne.s32.totalorder %s7238_s7, %s6586_s11  ;;  %p6592_p7 = scmp.lt.s32.totalorder %s6586_s11, %s6586_s11 }
  0xdc   :  { %p6593_p8 = por %p6592_p7, %p6591_p6 }
  0xde   :  { %p6594_p9 = pnand %p6593_p8, %p6587_p5 }
  0xe0   :  { %6597 = shalt.err (!%p6594_p9)
}
  0xe1   :  { %321 = dma.hbm_to_vmem [thread:$0]  %s7160_s13, 256, %s7238_s7, [#allocation33], %s6997_s4, %s6997_s4, %s6998_s26  }
  0xe2   :  { %s7001_s17 = smov [#allocation35]   ;;  %s7002_s20 = smov [#allocation2]  }
  0xe3   :  { %s337_s15 = sshll.u32 %s7001_s17, 4  ;;  %s99_s18 = sshll.u32 %s7002_s20, 4  ;;  %s338_s15 = int_to_ptr.vmem [resolvable:$true] %s337_s15  ;;  %s7256_s18 = int_to_ptr.vmem [resolvable:$true] %s99_s18 }
  0xe4   :  { %s6598_s22 = scalar_lea.hbm %s7170_s27, 1024 }
  0xe5   :  { %p6599_p10 = scmp.ne.s32.totalorder %s7170_s27, %s6598_s22  ;;  %p6602_p11 = scmp.lt.u32.totalorder %s6598_s22, %s7170_s27 }
  0xe7   :  { %p6604_p12 = pnand %p6602_p11, %p6599_p10 }
  0xe9   :  { %6607 = shalt.err (!%p6604_p12)
}
  0xea   :  { %s6608_s14 = scalar_lea.vmem %s338_s15, 1024  ;;  %p6613_p0 = scmp.lt.s32.totalorder %s338_s15, %s338_s15 }
  0xeb   :  { %p6609_p13 = scmp.ne.s32.totalorder %s338_s15, %s6608_s14  ;;  %p6614_p1 = scmp.lt.s32.totalorder %s6608_s14, %s6608_s14 }
  0xed   :  { %p6615_p2 = por %p6614_p1, %p6613_p0 }
  0xef   :  { %p6616_p3 = pnand %p6615_p2, %p6609_p13 }
  0xf1   :  { %6619 = shalt.err (!%p6616_p3)
}
  0xf2   :  { %343 = dma.hbm_to_vmem [thread:$0]  %s7170_s27, 1024, %s338_s15, [#allocation36], %s6990_s16, %s6990_s16, %s6991_s3  }
  0xf3   :  { %s6620_s13 = scalar_lea.hbm %s7060_s29, 128 }
  0xf4   :  { %p6621_p4 = scmp.ne.s32.totalorder %s7060_s29, %s6620_s13  ;;  %p6624_p5 = scmp.lt.u32.totalorder %s6620_s13, %s7060_s29 }
  0xf6   :  { %p6626_p6 = pnand %p6624_p5, %p6621_p4 }
  0xf8   :  { %6629 = shalt.err (!%p6626_p6)
}
  0xf9   :  { %s6630_s0 = scalar_lea.vmem %s7256_s18, 128  ;;  %p6635_p8 = scmp.lt.s32.totalorder %s7256_s18, %s7256_s18 }
  0xfa   :  { %p6631_p7 = scmp.ne.s32.totalorder %s7256_s18, %s6630_s0  ;;  %p6636_p9 = scmp.lt.s32.totalorder %s6630_s0, %s6630_s0 }
  0xfc   :  { %p6637_p10 = por %p6636_p9, %p6635_p8 }
  0xfe   :  { %p6638_p11 = pnand %p6637_p10, %p6631_p7 }
 0x100   :  { %6641 = shalt.err (!%p6638_p11)
}
 0x101   :  { %105 = dma.hbm_to_vmem [thread:$0]  %s7060_s29, 128, %s7256_s18, [#allocation3], %s6990_s16, %s6990_s16, %s6991_s3  }
 0x102   :  { %s7003_s27 = smov [#allocation7]   ;;  %s7004_s28 = smov [#allocation10]  }
 0x103   :  { %s121_s23 = sshll.u32 %s7003_s27, 4  ;;  %s146_s1 = sshll.u32 %s7004_s28, 4  ;;  %s122_s23 = int_to_ptr.vmem [resolvable:$true] %s121_s23  ;;  %s147_s1 = int_to_ptr.vmem [resolvable:$true] %s146_s1 }
 0x104   :  { %s6642_s25 = scalar_lea.hbm %s7070_s8, 128 }
 0x105   :  { %p6643_p12 = scmp.ne.s32.totalorder %s7070_s8, %s6642_s25  ;;  %p6646_p13 = scmp.lt.u32.totalorder %s6642_s25, %s7070_s8 }
 0x107   :  { %p6648_p0 = pnand %p6646_p13, %p6643_p12 }
 0x109   :  { %6651 = shalt.err (!%p6648_p0)
}
 0x10a   :  { %s6652_s2 = scalar_lea.vmem %s122_s23, 128  ;;  %p6657_p2 = scmp.lt.s32.totalorder %s122_s23, %s122_s23 }
 0x10b   :  { %p6653_p1 = scmp.ne.s32.totalorder %s122_s23, %s6652_s2  ;;  %p6658_p3 = scmp.lt.s32.totalorder %s6652_s2, %s6652_s2 }
 0x10d   :  { %p6659_p4 = por %p6658_p3, %p6657_p2 }
 0x10f   :  { %p6660_p5 = pnand %p6659_p4, %p6653_p1 }
 0x111   :  { %6663 = shalt.err (!%p6660_p5)
}
 0x112   :  { %127 = dma.hbm_to_vmem [thread:$0]  %s7070_s8, 128, %s122_s23, [#allocation6], %s6990_s16, %s6990_s16, %s6991_s3  }
 0x113   :  { %s6664_s29 = scalar_lea.hbm %s7080_s19, 16 }
 0x114   :  { %p6665_p6 = scmp.ne.s32.totalorder %s7080_s19, %s6664_s29  ;;  %p6668_p7 = scmp.lt.u32.totalorder %s6664_s29, %s7080_s19 }
 0x116   :  { %p6670_p8 = pnand %p6668_p7, %p6665_p6 }
 0x118   :  { %6673 = shalt.err (!%p6670_p8)
}
 0x119   :  { %s6674_s24 = scalar_lea.vmem %s147_s1, 16  ;;  %s6678_s7 = scalar_lea.vmem %s147_s1, 32 }
 0x11a   :  { %p6675_p9 = scmp.ne.s32.totalorder %s147_s1, %s6674_s24  ;;  %p6679_p10 = scmp.lt.s32.totalorder %s147_s1, %s147_s1 }
 0x11b   :  { %p6680_p11 = scmp.lt.s32.totalorder %s6678_s7, %s6674_s24 }
 0x11d   :  { %p6681_p12 = por %p6680_p11, %p6679_p10 }
 0x11f   :  { %p6682_p13 = pnand %p6681_p12, %p6675_p9 }
 0x121   :  { %6685 = shalt.err (!%p6682_p13)
}
 0x122   :  { %149 = dma.hbm_to_vmem [thread:$0]  %s7080_s19, 16, %s147_s1, [#allocation9]  }
 0x123   :  { %s7005_s10 = smov [#allocation13]   ;;  %s7006_s6 = smov [#allocation16]  }
 0x124   :  { %s167_s8 = sshll.u32 %s7005_s10, 4  ;;  %s189_s5 = sshll.u32 %s7006_s6, 4  ;;  %s168_s8 = int_to_ptr.vmem [resolvable:$true] %s167_s8  ;;  %s7288_s5 = int_to_ptr.vmem [resolvable:$true] %s189_s5 }
 0x125   :  { %s6686_s11 = scalar_lea.hbm %s7090_s30, 128 }
 0x126   :  { %p6687_p0 = scmp.ne.s32.totalorder %s7090_s30, %s6686_s11  ;;  %p6690_p1 = scmp.lt.u32.totalorder %s6686_s11, %s7090_s30 }
 0x128   :  { %p6692_p2 = pnand %p6690_p1, %p6687_p0 }
 0x12a   :  { %6695 = shalt.err (!%p6692_p2)
}
 0x12b   :  { %s6696_s17 = scalar_lea.vmem %s168_s8, 128  ;;  %p6701_p4 = scmp.lt.s32.totalorder %s168_s8, %s168_s8 }
 0x12c   :  { %p6697_p3 = scmp.ne.s32.totalorder %s168_s8, %s6696_s17  ;;  %p6702_p5 = scmp.lt.s32.totalorder %s6696_s17, %s6696_s17 }
 0x12e   :  { %p6703_p6 = por %p6702_p5, %p6701_p4 }
 0x130   :  { %p6704_p7 = pnand %p6703_p6, %p6697_p3 }
 0x132   :  { %6707 = shalt.err (!%p6704_p7)
}
 0x133   :  { %s7944_s19 = sld [smem:[#allocation61_spill]] }
 0x134   :  { %173 = dma.hbm_to_vmem [thread:$0]  %s7090_s30, 128, %s168_s8, [#allocation12], %s6990_s16, %s6990_s16, %s6991_s3  }
 0x139   :  { %s6708_s15 = scalar_lea.hbm %s7944_s19, 6656 }
 0x13a   :  { %p6709_p8 = scmp.ne.s32.totalorder %s7944_s19, %s6708_s15  ;;  %p6712_p9 = scmp.lt.u32.totalorder %s6708_s15, %s7944_s19 }
 0x13c   :  { %p6714_p10 = pnand %p6712_p9, %p6709_p8 }
 0x13e   :  { %6717 = shalt.err (!%p6714_p10)
}
 0x13f   :  { %s6718_s20 = scalar_lea.vmem %s7288_s5, 6656  ;;  %p6723_p12 = scmp.lt.s32.totalorder %s7288_s5, %s7288_s5 }
 0x140   :  { %p6719_p11 = scmp.ne.s32.totalorder %s7288_s5, %s6718_s20  ;;  %p6724_p13 = scmp.lt.s32.totalorder %s6718_s20, %s6718_s20 }
 0x142   :  { %p6725_p0 = por %p6724_p13, %p6723_p12 }
 0x144   :  { %p6726_p1 = pnand %p6725_p0, %p6719_p11 }
 0x146   :  { %6729 = shalt.err (!%p6726_p1)
}
 0x147   :  { %s7007_s18 = smov 512   ;;  %s7945_s30 = sld [smem:[#allocation62_spill]] }
 0x148   :  { %s7008_s22 = smov 32   ;;  %s7009_s14 = smov [#allocation19]  }
 0x149   :  { %195 = dma.hbm_to_vmem [thread:$0]  %s7944_s19, 6656, %s7288_s5, [#allocation15], %s7007_s18, %s7007_s18, %s7008_s22  }
 0x14a   :  { %s211_s13 = sshll.u32 %s7009_s14, 4  ;;  %s7010_s0 = smov [#allocation22]   ;;  %s212_s13 = int_to_ptr.vmem [resolvable:$true] %s211_s13 }
 0x14b   :  { %s235_s27 = sshll.u32 %s7010_s0, 4  ;;  %s7306_s27 = int_to_ptr.vmem [resolvable:$true] %s235_s27 }
 0x14d   :  { %s6730_s23 = scalar_lea.hbm %s7945_s30, 16384 }
 0x14e   :  { %p6731_p2 = scmp.ne.s32.totalorder %s7945_s30, %s6730_s23  ;;  %p6734_p3 = scmp.lt.u32.totalorder %s6730_s23, %s7945_s30 }
 0x150   :  { %p6736_p4 = pnand %p6734_p3, %p6731_p2 }
 0x152   :  { %6739 = shalt.err (!%p6736_p4)
}
 0x153   :  { %s6740_s28 = scalar_lea.vmem %s212_s13, 16384  ;;  %p6745_p6 = scmp.lt.s32.totalorder %s212_s13, %s212_s13 }
 0x154   :  { %p6741_p5 = scmp.ne.s32.totalorder %s212_s13, %s6740_s28  ;;  %p6746_p7 = scmp.lt.s32.totalorder %s6740_s28, %s6740_s28 }
 0x156   :  { %p6747_p8 = por %p6746_p7, %p6745_p6 }
 0x158   :  { %p6748_p9 = pnand %p6747_p8, %p6741_p5 }
 0x15a   :  { %6751 = shalt.err (!%p6748_p9)
}
 0x15b   :  { %s7946_s1 = sld [smem:[#allocation64_spill]] }
 0x15c   :  { %217 = dma.hbm_to_vmem [thread:$0]  %s7945_s30, 16384, %s212_s13, [#allocation18], %s6997_s4, %s6997_s4, %s6998_s26  }
 0x161   :  { %s6752_s25 = scalar_lea.hbm %s7946_s1, 2048 }
 0x162   :  { %p6753_p10 = scmp.ne.s32.totalorder %s7946_s1, %s6752_s25  ;;  %p6756_p11 = scmp.lt.u32.totalorder %s6752_s25, %s7946_s1 }
 0x164   :  { %p6758_p12 = pnand %p6756_p11, %p6753_p10 }
 0x166   :  { %6761 = shalt.err (!%p6758_p12)
}
 0x167   :  { %s6762_s2 = scalar_lea.vmem %s7306_s27, 2048  ;;  %p6767_p0 = scmp.lt.s32.totalorder %s7306_s27, %s7306_s27 }
 0x168   :  { %p6763_p13 = scmp.ne.s32.totalorder %s7306_s27, %s6762_s2  ;;  %p6768_p1 = scmp.lt.s32.totalorder %s6762_s2, %s6762_s2 }
 0x16a   :  { %p6769_p2 = por %p6768_p1, %p6767_p0 }
 0x16c   :  { %p6770_p3 = pnand %p6769_p2, %p6763_p13 }
 0x16e   :  { %6773 = shalt.err (!%p6770_p3)
}
 0x16f   :  { %s7947_s29 = sld [smem:[#allocation65_spill]]  ;;  %s7011_s24 = smov [#allocation25]  }
 0x170   :  { %241 = dma.hbm_to_vmem [thread:$0]  %s7946_s1, 2048, %s7306_s27, [#allocation21], %s6997_s4, %s6997_s4, %s6998_s26  }
 0x171   :  { %s260_s7 = sshll.u32 %s7011_s24, 4  ;;  %s7012_s10 = smov [#allocation28]   ;;  %s261_s7 = int_to_ptr.vmem [resolvable:$true] %s260_s7 }
 0x172   :  { %s281_s8 = sshll.u32 %s7012_s10, 4  ;;  %s7327_s8 = int_to_ptr.vmem [resolvable:$true] %s281_s8 }
 0x175   :  { %s6774_s6 = scalar_lea.hbm %s7947_s29, 32 }
 0x176   :  { %p6775_p4 = scmp.ne.s32.totalorder %s7947_s29, %s6774_s6  ;;  %p6778_p5 = scmp.lt.u32.totalorder %s6774_s6, %s7947_s29 }
 0x178   :  { %p6780_p6 = pnand %p6778_p5, %p6775_p4 }
 0x17a   :  { %6783 = shalt.err (!%p6780_p6)
}
 0x17b   :  { %s6784_s5 = scalar_lea.vmem %s261_s7, 32  ;;  %p6789_p8 = scmp.lt.s32.totalorder %s261_s7, %s261_s7 }
 0x17c   :  { %p6785_p7 = scmp.ne.s32.totalorder %s261_s7, %s6784_s5  ;;  %p6790_p9 = scmp.lt.s32.totalorder %s6784_s5, %s6784_s5 }
 0x17e   :  { %p6791_p10 = por %p6790_p9, %p6789_p8 }
 0x180   :  { %p6792_p11 = pnand %p6791_p10, %p6785_p7 }
 0x182   :  { %6795 = shalt.err (!%p6792_p11)
}
 0x183   :  { %s7948_s11 = sld [smem:[#allocation66_spill]] }
 0x184   :  { %263 = dma.hbm_to_vmem [thread:$0]  %s7947_s29, 32, %s261_s7, [#allocation24]  }
 0x189   :  { %s6796_s17 = scalar_lea.hbm %s7948_s11, 256 }
 0x18a   :  { %p6797_p12 = scmp.ne.s32.totalorder %s7948_s11, %s6796_s17  ;;  %p6800_p13 = scmp.lt.u32.totalorder %s6796_s17, %s7948_s11 }
 0x18c   :  { %p6802_p0 = pnand %p6800_p13, %p6797_p12 }
 0x18e   :  { %6805 = shalt.err (!%p6802_p0)
}
 0x18f   :  { %s6806_s19 = scalar_lea.vmem %s7327_s8, 256  ;;  %p6811_p2 = scmp.lt.s32.totalorder %s7327_s8, %s7327_s8 }
 0x190   :  { %p6807_p1 = scmp.ne.s32.totalorder %s7327_s8, %s6806_s19  ;;  %p6812_p3 = scmp.lt.s32.totalorder %s6806_s19, %s6806_s19 }
 0x192   :  { %p6813_p4 = por %p6812_p3, %p6811_p2 }
 0x194   :  { %p6814_p5 = pnand %p6813_p4, %p6807_p1 }
 0x196   :  { %6817 = shalt.err (!%p6814_p5)
}
 0x197   :  { %s7949_s15 = sld [smem:[#allocation67_spill]]  ;;  %s7013_s20 = smov [#allocation31]  }
 0x198   :  { %287 = dma.hbm_to_vmem [thread:$0]  %s7948_s11, 256, %s7327_s8, [#allocation27], %s6997_s4, %s6997_s4, %s6998_s26  }
 0x199   :  { %s303_s18 = sshll.u32 %s7013_s20, 4  ;;  %s7014_s30 = smov [#allocation34]   ;;  %s304_s18 = int_to_ptr.vmem [resolvable:$true] %s303_s18 }
 0x19a   :  { %s328_s22 = sshll.u32 %s7014_s30, 4  ;;  %s329_s22 = int_to_ptr.vmem [resolvable:$true] %s328_s22 }
 0x19d   :  { %s6818_s14 = scalar_lea.hbm %s7949_s15, 2048 }
 0x19e   :  { %p6819_p6 = scmp.ne.s32.totalorder %s7949_s15, %s6818_s14  ;;  %p6822_p7 = scmp.lt.u32.totalorder %s6818_s14, %s7949_s15 }
 0x1a0   :  { %p6824_p8 = pnand %p6822_p7, %p6819_p6 }
 0x1a2   :  { %6827 = shalt.err (!%p6824_p8)
}
 0x1a3   :  { %s6828_s13 = scalar_lea.vmem %s304_s18, 2048  ;;  %p6833_p10 = scmp.lt.s32.totalorder %s304_s18, %s304_s18 }
 0x1a4   :  { %p6829_p9 = scmp.ne.s32.totalorder %s304_s18, %s6828_s13  ;;  %p6834_p11 = scmp.lt.s32.totalorder %s6828_s13, %s6828_s13 }
 0x1a6   :  { %p6835_p12 = por %p6834_p11, %p6833_p10 }
 0x1a8   :  { %p6836_p13 = pnand %p6835_p12, %p6829_p9 }
 0x1aa   :  { %6839 = shalt.err (!%p6836_p13)
}
 0x1ab   :  { %s7950_s0 = sld [smem:[#allocation68_spill]] }
 0x1ac   :  { %309 = dma.hbm_to_vmem [thread:$0]  %s7949_s15, 2048, %s304_s18, [#allocation30], %s6997_s4, %s6997_s4, %s6998_s26  }
 0x1b1   :  { %s6840_s27 = scalar_lea.hbm %s7950_s0, 32 }
 0x1b2   :  { %p6841_p0 = scmp.ne.s32.totalorder %s7950_s0, %s6840_s27  ;;  %p6844_p1 = scmp.lt.u32.totalorder %s6840_s27, %s7950_s0 }
 0x1b4   :  { %p6846_p2 = pnand %p6844_p1, %p6841_p0 }
 0x1b6   :  { %6849 = shalt.err (!%p6846_p2)
}
 0x1b7   :  { %s6850_s23 = scalar_lea.vmem %s329_s22, 32  ;;  %p6855_p4 = scmp.lt.s32.totalorder %s329_s22, %s329_s22 }
 0x1b8   :  { %p6851_p3 = scmp.ne.s32.totalorder %s329_s22, %s6850_s23  ;;  %p6856_p5 = scmp.lt.s32.totalorder %s6850_s23, %s6850_s23 }
 0x1ba   :  { %p6857_p6 = por %p6856_p5, %p6855_p4 }
 0x1bc   :  { %p6858_p7 = pnand %p6857_p6, %p6851_p3 }
 0x1be   :  { %6861 = shalt.err (!%p6858_p7)
}
 0x1bf   :  { %331 = dma.hbm_to_vmem [thread:$0]  %s7950_s0, 32, %s329_s22, [#allocation33]  }
 0x1c0   :  { %s7015_s28 = smov [#allocation37]   ;;  %s7016_s25 = smov [#allocation38]  }
 0x1c1   :  { %s349_s1 = sshll.u32 %s7015_s28, 4  ;;  %s362_s2 = sshll.u32 %s7016_s25, 4  ;;  %s350_s1 = int_to_ptr.vmem [resolvable:$true] %s349_s1  ;;  %s363_s2 = int_to_ptr.vmem [resolvable:$true] %s362_s2 }
 0x1c2   :  { %s6862_s29 = scalar_lea.hbm %s7175_s21, 128 }
 0x1c3   :  { %p6863_p8 = scmp.ne.s32.totalorder %s7175_s21, %s6862_s29  ;;  %p6866_p9 = scmp.lt.u32.totalorder %s6862_s29, %s7175_s21 }
 0x1c5   :  { %p6868_p10 = pnand %p6866_p9, %p6863_p8 }
 0x1c7   :  { %6871 = shalt.err (!%p6868_p10)
}
 0x1c8   :  { %s6872_s24 = scalar_lea.vmem %s350_s1, 128  ;;  %p6877_p12 = scmp.lt.s32.totalorder %s350_s1, %s350_s1 }
 0x1c9   :  { %p6873_p11 = scmp.ne.s32.totalorder %s350_s1, %s6872_s24  ;;  %p6878_p13 = scmp.lt.s32.totalorder %s6872_s24, %s6872_s24 }
 0x1cb   :  { %p6879_p0 = por %p6878_p13, %p6877_p12 }
 0x1cd   :  { %p6880_p1 = pnand %p6879_p0, %p6873_p11 }
 0x1cf   :  { %6883 = shalt.err (!%p6880_p1)
}
 0x1d0   :  { %355 = dma.hbm_to_vmem [thread:$0]  %s7175_s21, 128, %s350_s1, [#allocation36], %s6990_s16, %s6990_s16, %s6991_s3  }
 0x1d1   :  { %s6884_s7 = scalar_lea.hbm %s7180_s12, 16 }
 0x1d2   :  { %p6885_p2 = scmp.ne.s32.totalorder %s7180_s12, %s6884_s7  ;;  %p6888_p3 = scmp.lt.u32.totalorder %s6884_s7, %s7180_s12 }
 0x1d4   :  { %p6890_p4 = pnand %p6888_p3, %p6885_p2 }
 0x1d6   :  { %6893 = shalt.err (!%p6890_p4)
}
 0x1d7   :  { %s6894_s10 = scalar_lea.vmem %s363_s2, 16  ;;  %s6898_s8 = scalar_lea.vmem %s363_s2, 32 }
 0x1d8   :  { %p6895_p5 = scmp.ne.s32.totalorder %s363_s2, %s6894_s10  ;;  %p6899_p6 = scmp.lt.s32.totalorder %s363_s2, %s363_s2 }
 0x1d9   :  { %p6900_p7 = scmp.lt.s32.totalorder %s6898_s8, %s6894_s10 }
 0x1db   :  { %p6901_p8 = por %p6900_p7, %p6899_p6 }
 0x1dd   :  { %p6902_p9 = pnand %p6901_p8, %p6895_p5 }
 0x1df   :  { %6905 = shalt.err (!%p6902_p9)
}
 0x1e0   :  { %365 = dma.hbm_to_vmem [thread:$0]  %s7180_s12, 16, %s363_s2, [#allocation39]  }
 0x1e1   :  { %6928 = dma.done.wait [#allocation3], 128  }
 0x1e2   :  { %6929 = vsyncadd [#allocation3], 4294967168 }
 0x1e3   :  { %6930 = dma.done.wait [#allocation6], 144  }
 0x1e4   :  { %6931 = vsyncadd [#allocation6], 4294967152 }
 0x1e5   :  { %6932 = dma.done.wait [#allocation9], 144  }
 0x1e6   :  { %6933 = vsyncadd [#allocation9], 4294967152 }
 0x1e7   :  { %6934 = dma.done.wait [#allocation12], 256  }
 0x1e8   :  { %6935 = vsyncadd [#allocation12], 4294967040 }
 0x1e9   :  { %6936 = dma.done.wait [#allocation15], 6672  }
 0x1ea   :  { %6937 = vsyncadd [#allocation15], 4294960624 }
 0x1eb   :  { %6938 = dma.done.wait [#allocation18], 16512  }
 0x1ec   :  { %6939 = vsyncadd [#allocation18], 4294950784 }
 0x1ed   :  { %6940 = dma.done.wait [#allocation21], 2080  }
 0x1ee   :  { %6941 = vsyncadd [#allocation21], 4294965216 }
 0x1ef   :  { %6942 = dma.done.wait [#allocation24], 288  }
 0x1f0   :  { %6943 = vsyncadd [#allocation24], 4294967008 }
 0x1f1   :  { %6944 = dma.done.wait [#allocation27], 2304  }
 0x1f2   :  { %6945 = vsyncadd [#allocation27], 4294964992 }
 0x1f3   :  { %6946 = dma.done.wait [#allocation30], 2080  }
 0x1f4   :  { %6947 = vsyncadd [#allocation30], 4294965216 }
 0x1f5   :  { %6948 = dma.done.wait [#allocation33], 288  }
 0x1f6   :  { %6949 = vsyncadd [#allocation33], 4294967008 }
 0x1f7   :  { %6950 = dma.done.wait [#allocation36], 1152  }
 0x1f8   :  { %6951 = vsyncadd [#allocation36], 4294966144 }
 0x1f9   :  { %6952 = dma.done.wait [#allocation39], 16  }
 0x1fa   :  { %6953 = vsyncadd [#allocation39], 4294967280  ;;  %s7951_s21 = sld [smem:[#allocation58_spill]]  ;;  %s7952_s12 = sld [smem:[#allocation56_spill]]  ;;  %v7017_v14 = vmov 0.0   ;;  %vm7018_vm0 = vmmov 0   ;;  %v624_v60 = vlaneseq }
 0x1fb   :  { %s7953_s16 = sld [smem:[#allocation59_spill]]  ;;  %5746 = vmatprep.subr.bf16.mxu1 %v7017_v14  ;;  %5750 = vmatprep.mubr.msk.bf16.mxu1 %vm7018_vm0, %v7017_v14  ;;  %vm565_vm1 = vcmask 130048   ;;  %vm636_vm6 = vcmask 261120   ;;  %s7954_s3 = sld [smem:[#allocation60_spill]]  ;;  %vm1109_vm7 = vcmask 1043456   ;;  %vm1106_vm8 = vcmask 64512  }
 0x1fc   :  { %v7394_v62 = vshrl.u32 %v624_v60, 7  ;;  %s7955_s6 = sld [smem:[#allocation63_spill]]  ;;  %vm1421_vm9 = vcmask 1045504   ;;  %vm1422_vm10 = vcmask 1046528   ;;  %s7956_s5 = sld [smem:[#allocation57_spill]]  ;;  %vm1417_vm11 = vcmask 105472  }
 0x1fd   :  { %s7957_s11 = sld [smem:[#allocation55_spill]]  ;;  %vm2162_vm12 = vcmask 1041408   ;;  %vm2158_vm13 = vcmask 818176   ;;  %vm1302_vm14 = vcmask 125952   ;;  %s7021_s17 = smov [#allocation40]  }
 0x1fe   :  { %v7397_v63 = vadd.s32 8, %v7394_v62  ;;  %s5252_s19 = sshll.u32 %s7021_s17, 4  ;;  %s5253_s19 = int_to_ptr.vmem [resolvable:$true] %s5252_s19 }
 0x1ff   :  { %s6906_s15 = scalar_lea.vmem %s5253_s19, 512  ;;  %p6911_p11 = scmp.lt.s32.totalorder %s5253_s19, %s5253_s19 }
 0x200   :  { %v5999_v0 = vld [vmem:[%s7951_s21] sm:$0xff]   ;;  %v6000_v1 = vld [vmem:[%s7951_s21 + $0x8] sm:$0xff]   ;;  %v6001_v2 = vld [vmem:[%s7951_s21 + $0x10] sm:$0xff]   ;;  %p6907_p10 = scmp.ne.s32.totalorder %s5253_s19, %s6906_s15  ;;  %p6912_p12 = scmp.lt.s32.totalorder %s6906_s15, %s6906_s15 }
 0x201   :  { %5718 = vmatprep.subr.bf16.mxu0 %v5999_v0  ;;  %v6002_v3 = vld [vmem:[%s7951_s21 + $0x18] sm:$0xff]   ;;  %v439_v4 = vld [vmem:[%s7952_s12] sm:$0xff]  ;;  %v440_v5 = vld [vmem:[%s7952_s12 + $0x8] sm:$0xff] }
 0x202   :  { %5719 = vmatpush3.bf16.msra.mxu0 %v5999_v0  ;;  %v443_v6 = vpack.c.bf16 %v440_v5, %v439_v4  ;;  %v6003_v7 = vld [vmem:[%s7951_s21 + $0x20] sm:$0xff]   ;;  %v6004_v8 = vld [vmem:[%s7951_s21 + $0x28] sm:$0xff]   ;;  %v6005_v9 = vld [vmem:[%s7951_s21 + $0x30] sm:$0xff]   ;;  %v629_v0 = vmul.u32 2, %v7394_v62  ;;  %p6913_p13 = por %p6912_p12, %p6911_p11 }
 0x203   :  { %5720 = vmatprep.subr.bf16.mxu0 %v6000_v1  ;;  %v6006_v10 = vld [vmem:[%s7951_s21 + $0x38] sm:$0xff]   ;;  %v441_v11 = vld [vmem:[%s7952_s12 + $0x10] sm:$0xff]  ;;  %v5307_v15 = vld [vmem:[%s7953_s16] ss:$0 sm:$0xff] }
 0x204   :  { %5734 = vmatprep.mubr.bf16.mxu0 %v443_v6  ;;  %v442_v12 = vld [vmem:[%s7952_s12 + $0x18] sm:$0xff]  ;;  %v682_v4 = vadd.s32 1, %v629_v0  ;;  %p6914_p0 = pnand %p6913_p13, %p6907_p10 }
 0x205   :  { %v444_v13 = vpack.c.bf16 %v442_v12, %v441_v11 }
 0x206   :  { %5721 = vmatpush3.bf16.msra.mxu0 %v6000_v1  ;;  %v630_v1 = vmul.u32 2, %v7397_v63 }
 0x207   :  { %5722 = vmatprep.subr.bf16.mxu0 %v6001_v2 }
 0x20a   :  { %5723 = vmatpush3.bf16.msra.mxu0 %v6001_v2 }
 0x20b   :  { %5724 = vmatprep.subr.bf16.mxu0 %v6002_v3 }
 0x20e   :  { %5725 = vmatpush3.bf16.msra.mxu0 %v6002_v3  ;;  %v7401_v3 = vand.u32 127, %v624_v60 }
 0x20f   :  { %5726 = vmatprep.subr.bf16.mxu0 %v6003_v7 }
 0x210   :  { %vm684_vm2 = vcmp.eq.s32.totalorder %v7401_v3, %v682_v4  ;;  %vm631_vm4 = vcmp.eq.s32.totalorder %v7401_v3, %v629_v0  ;;  %vm632_vm5 = vcmp.eq.s32.totalorder %v7401_v3, %v630_v1 }
 0x212   :  { %5727 = vmatpush3.bf16.msra.mxu0 %v6003_v7 }
 0x213   :  { %5728 = vmatprep.subr.bf16.mxu0 %v6004_v8 }
 0x216   :  { %5729 = vmatpush3.bf16.msra.mxu0 %v6004_v8 }
 0x217   :  { %5730 = vmatprep.subr.bf16.mxu0 %v6005_v9 }
 0x21a   :  { %5731 = vmatpush3.bf16.msra.mxu0 %v6005_v9  ;;  %v683_v9 = vadd.s32 1, %v630_v1 }
 0x21b   :  { %5732 = vmatprep.subr.bf16.mxu0 %v6006_v10 }
 0x21c   :  { %vm685_vm3 = vcmp.eq.s32.totalorder %v7401_v3, %v683_v9 }
 0x21e   :  { %5733 = vmatpush3.bf16.msra.mxu0 %v6006_v10 }
 0x21f   :  { %5738 = vmatprep.subr.bf16.mxu0 %v7017_v14 }
 0x221   :  { %5735 = vmatmul.mubr.bf16.vlgmr.msra.gmra.mrb[0].mxu0 %v444_v13 }
 0x222   :  { %5742 = vmatprep.mubr.msk.bf16.mxu0 %vm7018_vm0, %v7017_v14 }
 0x2f4   :  { %v5736_v16 = vpop.f32.mrb[0].mxu0 }
 0x2f5   :  { %v550_v17 = vpop.f32.mrb[1].mxu0  ;;  %v559_v21 = vadd.f32 %v5736_v16, %v5307_v15 }
 0x2f6   :  { %v551_v18 = vadd.f32 %v5307_v15, %v550_v17  ;;  %v5737_v19 = vpop.f32.mrb[2].mxu0 }
 0x2f7   :  { %v553_v20 = vpop.f32.mrb[3].mxu0  ;;  %v562_v24 = vadd.f32 %v5737_v19, %v5307_v15  ;;  %v569_v27 = vsel %vm565_vm1, %v559_v21, 0.0 }
 0x2f8   :  { %v554_v22 = vadd.f32 %v5307_v15, %v553_v20  ;;  %v566_v23 = vsel %vm565_vm1, %v551_v18, 0.0 }
 0x2f9   :  { %v571_v29 = vsel %vm565_vm1, %v562_v24, 0.0 }
 0x2fa   :  { %v567_v25 = vsel %vm565_vm1, %v554_v22, 0.0 }
 0x2fb   :  { %v568_v26 = vadd.f32 %v567_v25, %v566_v23  ;;  %v7418_v23 = vsel %vm631_vm4, 1.0, %v7017_v14 }
 0x2fd   :  { %v570_v28 = vadd.f32 %v569_v27, %v568_v26  ;;  %v6007_v27 = vld [vmem:[#allocation2] sm:$0xff]  }
 0x2ff   :  { %v572_v30 = vadd.f32 %v571_v29, %v570_v28 }
 0x301   :  { %v573_v31 = vrot.slane %v572_v30, 4 }
 0x303   :  { %v574_v32 = vadd.f32 %v573_v31, %v572_v30 }
 0x305   :  { %v575_v33 = vrot.slane %v574_v32, 2 }
 0x307   :  { %v576_v34 = vadd.f32 %v575_v33, %v574_v32 }
 0x309   :  { %v577_v35 = vrot.slane %v576_v34, 1 }
 0x30b   :  { %v578_v36 = vadd.f32 %v577_v35, %v576_v34  ;;  %v6008_v34 = vld [vmem:[%s7954_s3] sm:$0xff]  }
 0x30d   :  { %v580_v37 = vmul.f32 0.03125, %v578_v36 }
 0x30f   :  { %v581_v38 = vsub.f32 %v551_v18, %v580_v37  ;;  %v582_v39 = vsub.f32 %v554_v22, %v580_v37  ;;  %v583_v40 = vsub.f32 %v559_v21, %v580_v37  ;;  %v584_v41 = vsub.f32 %v562_v24, %v580_v37 }
 0x310   :  { %v7414_v21 = vsel %vm684_vm2, 1.0, %v7017_v14  ;;  %v687_v22 = vsel %vm685_vm3, 1.0, %v7017_v14  ;;  %v634_v24 = vsel %vm632_vm5, 1.0, %v7017_v14  ;;  %vm3590_vm3 = vcmask 1040384  }
 0x311   :  { %v585_v42 = vmul.f32 %v581_v38, %v581_v38  ;;  %v586_v43 = vmul.f32 %v582_v39, %v582_v39  ;;  %v587_v44 = vmul.f32 %v583_v40, %v583_v40  ;;  %v588_v45 = vmul.f32 %v584_v41, %v584_v41 }
 0x312   :  { %v688_v25 = vpack.c.bf16 %v687_v22, %v7414_v21  ;;  %v635_v26 = vpack.c.bf16 %v634_v24, %v7418_v23  ;;  %vm7929_vm5 = vcmask 15360  }
 0x313   :  { %v589_v46 = vsel %vm565_vm1, %v585_v42, 0.0  ;;  %v590_v47 = vsel %vm565_vm1, %v586_v43, 0.0  ;;  %v592_v49 = vsel %vm565_vm1, %v587_v44, 0.0  ;;  %v594_v51 = vsel %vm565_vm1, %v588_v45, 0.0  ;;  %v5322_v43 = vld [vmem:[#allocation5] ss:$0 sm:$0xff] }
 0x314   :  { %v591_v48 = vadd.f32 %v590_v47, %v589_v46 }
 0x316   :  { %v593_v50 = vadd.f32 %v592_v49, %v591_v48 }
 0x318   :  { %v595_v52 = vadd.f32 %v594_v51, %v593_v50 }
 0x31a   :  { %v596_v53 = vrot.slane %v595_v52, 4 }
 0x31c   :  { %v597_v54 = vadd.f32 %v596_v53, %v595_v52 }
 0x31e   :  { %v598_v55 = vrot.slane %v597_v54, 2 }
 0x320   :  { %v599_v56 = vadd.f32 %v598_v55, %v597_v54 }
 0x322   :  { %v600_v57 = vrot.slane %v599_v56, 1 }
 0x324   :  { %v601_v58 = vadd.f32 %v600_v57, %v599_v56 }
 0x326   :  { %v602_v59 = vmul.f32 0.03125, %v601_v58 }
 0x328   :  { %v603_v61 = vadd.f32 1e-05, %v602_v59 }
 0x32a   :  { %6328 = vrsqrt.f32 %v603_v61 }
 0x334   :  { %v6329_v2 = vpop.eup %6328 }
 0x335   :  { %v606_v5 = vmul.f32 %v6329_v2, %v582_v39  ;;  %v605_v6 = vmul.f32 %v6329_v2, %v581_v38  ;;  %v607_v7 = vmul.f32 %v6329_v2, %v583_v40  ;;  %v608_v8 = vmul.f32 %v6329_v2, %v584_v41 }
 0x337   :  { %v610_v10 = vmul.f32 0.2, %v606_v5  ;;  %v609_v11 = vmul.f32 0.2, %v605_v6  ;;  %v611_v12 = vmul.f32 0.2, %v607_v7 }
 0x338   :  { %v612_v13 = vmul.f32 0.2, %v608_v8 }
 0x339   :  { %v614_v15 = vmax.f32 %v606_v5, %v610_v10  ;;  %v613_v16 = vmax.f32 %v605_v6, %v609_v11  ;;  %v615_v17 = vmax.f32 %v607_v7, %v611_v12 }
 0x33a   :  { %v616_v18 = vmax.f32 %v608_v8, %v612_v13 }
 0x33b   :  { %v7407_v19 = vpack.c.bf16 %v614_v15, %v613_v16 }
 0x33c   :  { %v7409_v20 = vpack.c.bf16 %v616_v18, %v615_v17 }
 0x33d   :  { %5739 = vmatpush3.bf16.msra.mxu0 %v7407_v19  ;;  %5747 = vmatpush3.bf16.msra.mxu1 %v7407_v19 }
 0x33e   :  { %5740 = vmatprep.subr.bf16.mxu0 %v7017_v14  ;;  %5748 = vmatprep.subr.bf16.mxu1 %v7017_v14 }
 0x341   :  { %5741 = vmatpush3.bf16.msra.mxu0 %v7409_v20  ;;  %5749 = vmatpush3.bf16.msra.mxu1 %v7409_v20 }
 0x342   :  { %5754 = vmatprep.subr.bf16.mxu1 %v7017_v14  ;;  %5766 = vmatprep.subr.bf16.mxu0 %v7017_v14 }
 0x344   :  { %5751 = vmatmul.mubr.msk.bf16.vlgmr.msra.gmra.mrb[0].mxu1 %vm636_vm6, %v688_v25  ;;  %5743 = vmatmul.mubr.msk.bf16.vlgmr.msra.gmra.mrb[4].mxu0 %vm636_vm6, %v635_v26 }
 0x345   :  { %5756 = vmatprep.mubr.msk.bf16.mxu1 %vm7018_vm0, %v7017_v14  ;;  %5768 = vmatprep.mubr.msk.bf16.mxu0 %vm7018_vm0, %v7017_v14 }
 0x346   :  { %5755 = vmatpush3.bf16.msra.mxu1 %v6007_v27 }
 0x347   :  { %5760 = vmatprep.subr.bf16.mxu1 %v7017_v14 }
 0x417   :  { %v726_v28 = vpop.f32.mrb[0].mxu1  ;;  %v674_v29 = vpop.f32.mrb[4].mxu0 }
 0x418   :  { %v5752_v30 = vpop.f32.mrb[1].mxu1  ;;  %v5744_v31 = vpop.f32.mrb[5].mxu0 }
 0x419   :  { %v729_v32 = vpop.f32.mrb[2].mxu1  ;;  %v677_v33 = vpop.f32.mrb[6].mxu0  ;;  %v7454_v30 = vpack.c.bf16 %v7418_v23, %v7418_v23  ;;  %v6010_v23 = vld [vmem:[#allocation7] sm:$0xff]  }
 0x41a   :  { %v733_v35 = vpack.c.bf16 %v729_v32, %v726_v28  ;;  %v5753_v36 = vpop.f32.mrb[3].mxu1  ;;  %v681_v37 = vpack.c.bf16 %v677_v33, %v674_v29  ;;  %v5745_v38 = vpop.f32.mrb[7].mxu0  ;;  %v7450_v29 = vpack.c.bf16 %v7414_v21, %v7414_v21  ;;  %v6009_v21 = vld [vmem:[#allocation8] sm:$0xff]  }
 0x41c   :  { %5757 = vmatmul.mubr.msk.bf16.vlgmr.msra.gmra.mrb[4].mxu1 %vm565_vm1, %v733_v35 }
 0x41d   :  { %5761 = vmatpush3.bf16.msra.mxu1 %v6008_v34  ;;  %5762 = vmatprep.mubr.msk.bf16.mxu1 %vm7018_vm0, %v7017_v14 }
 0x41e   :  { %5772 = vmatprep.subr.bf16.mxu1 %v7017_v14 }
 0x424   :  { %5763 = vmatmul.mubr.msk.bf16.vlgmr.msra.gmra.mrb[8].mxu1 %vm565_vm1, %v681_v37 }
 0x425   :  { %5774 = vmatprep.mubr.msk.bf16.mxu1 %vm7018_vm0, %v7017_v14 }
 0x4ef   :  { %v777_v39 = vpop.f32.mrb[4].mxu1 }
 0x4f0   :  { %v5758_v40 = vpop.f32.mrb[5].mxu1 }
 0x4f1   :  { %v780_v41 = vpop.f32.mrb[6].mxu1 }
 0x4f2   :  { %v5759_v42 = vpop.f32.mrb[7].mxu1 }
 0x4f3   :  { %v5329_v42 = vld [vmem:[#allocation10] ss:$0 sm:$0xff] }
 0x4f7   :  { %v827_v44 = vpop.f32.mrb[8].mxu1 }
 0x4f8   :  { %v828_v45 = vadd.f32 %v827_v44, %v777_v39  ;;  %v5764_v46 = vpop.f32.mrb[9].mxu1 }
 0x4f9   :  { %v830_v47 = vpop.f32.mrb[10].mxu1 }
 0x4fa   :  { %v840_v48 = vadd.f32 %v5322_v43, %v828_v45  ;;  %v831_v49 = vadd.f32 %v830_v47, %v780_v41  ;;  %v5765_v50 = vpop.f32.mrb[11].mxu1 }
 0x4fc   :  { %v841_v51 = vadd.f32 %v5322_v43, %v831_v49  ;;  %v842_v52 = vsel %vm565_vm1, %v840_v48, 0.0 }
 0x4fe   :  { %v843_v53 = vsel %vm565_vm1, %v841_v51, 0.0 }
 0x4ff   :  { %v844_v54 = vadd.f32 %v843_v53, %v842_v52 }
 0x501   :  { %v845_v55 = vrot.slane %v844_v54, 4 }
 0x503   :  { %v846_v56 = vadd.f32 %v845_v55, %v844_v54 }
 0x505   :  { %v847_v57 = vrot.slane %v846_v56, 2 }
 0x507   :  { %v848_v58 = vadd.f32 %v847_v57, %v846_v56 }
 0x509   :  { %v849_v59 = vrot.slane %v848_v58, 1 }
 0x50b   :  { %v850_v60 = vadd.f32 %v849_v59, %v848_v58 }
 0x50d   :  { %v852_v61 = vmul.f32 0.0625, %v850_v60 }
 0x50f   :  { %v853_v0 = vsub.f32 %v840_v48, %v852_v61  ;;  %v854_v1 = vsub.f32 %v841_v51, %v852_v61 }
 0x511   :  { %v855_v2 = vmul.f32 %v853_v0, %v853_v0  ;;  %v856_v4 = vmul.f32 %v854_v1, %v854_v1 }
 0x513   :  { %v857_v5 = vsel %vm565_vm1, %v855_v2, 0.0  ;;  %v858_v6 = vsel %vm565_vm1, %v856_v4, 0.0 }
 0x514   :  { %v859_v7 = vadd.f32 %v858_v6, %v857_v5 }
 0x516   :  { %v860_v8 = vrot.slane %v859_v7, 4 }
 0x518   :  { %v861_v9 = vadd.f32 %v860_v8, %v859_v7 }
 0x51a   :  { %v862_v10 = vrot.slane %v861_v9, 2 }
 0x51c   :  { %v863_v11 = vadd.f32 %v862_v10, %v861_v9 }
 0x51e   :  { %v864_v12 = vrot.slane %v863_v11, 1 }
 0x520   :  { %v865_v13 = vadd.f32 %v864_v12, %v863_v11 }
 0x522   :  { %v866_v15 = vmul.f32 0.0625, %v865_v13 }
 0x524   :  { %v867_v16 = vadd.f32 1e-05, %v866_v15 }
 0x526   :  { %6330 = vrsqrt.f32 %v867_v16 }
 0x530   :  { %v6331_v17 = vpop.eup %6330 }
 0x531   :  { %v869_v18 = vmul.f32 %v6331_v17, %v853_v0  ;;  %v870_v22 = vmul.f32 %v6331_v17, %v854_v1  ;;  %v6011_v17 = vld [vmem:[#allocation13] sm:$0xff]  }
 0x533   :  { %v872_v24 = vmul.f32 0.2, %v870_v22  ;;  %v871_v25 = vmul.f32 0.2, %v869_v18 }
 0x535   :  { %v874_v26 = vmax.f32 %v870_v22, %v872_v24  ;;  %v873_v27 = vmax.f32 %v869_v18, %v871_v25  ;;  %v6012_v18 = vld [vmem:[#allocation11] sm:$0xff]   ;;  %v6015_v22 = vld [vmem:[%s7955_s6 + $0x4] ss:$68 sps:$4 sm:$0x7f]   ;;  %v7019_v24 = vmov 65535  }
 0x536   :  { %v1423_v25 = vsel %vm1421_vm9, 4294967295, %v7019_v24 }
 0x537   :  { %v7446_v28 = vpack.c.bf16 %v874_v26, %v873_v27  ;;  %v6018_v26 = vld [vmem:[%s7955_s6 + $0xc] ss:$68 sps:$4 sm:$0x7f]   ;;  %v7494_v27 = vsel %vm1422_vm10, %v1423_v25, 0  ;;  %vm3993_vm10 = vcmask 31744  }
 0x539   :  { %5767 = vmatpush3.bf16.msra.mxu0 %v7446_v28  ;;  %5773 = vmatpush3.bf16.msra.mxu1 %v7446_v28 }
 0x53a   :  { %5778 = vmatprep.subr.bf16.mxu0 %v7017_v14  ;;  %5784 = vmatprep.subr.bf16.mxu1 %v7017_v14 }
 0x53c   :  { %5769 = vmatmul.mubr.msk.bf16.vlgmr.msra.gmra.mrb[8].mxu0 %vm565_vm1, %v7454_v30  ;;  %5775 = vmatmul.mubr.msk.bf16.vlgmr.msra.gmra.mrb[12].mxu1 %vm565_vm1, %v7450_v29 }
 0x53d   :  { %5780 = vmatprep.mubr.msk.bf16.mxu0 %vm7018_vm0, %v7017_v14  ;;  %5786 = vmatprep.mubr.msk.bf16.mxu1 %vm7018_vm0, %v7017_v14 }
 0x53e   :  { %5779 = vmatpush3.bf16.msra.mxu0 %v6009_v21  ;;  %5785 = vmatpush3.bf16.msra.mxu1 %v6010_v23  ;;  %v6013_v21 = vld [vmem:[%s7955_s6] ss:$68 sps:$4 sm:$0x7f]   ;;  %v6016_v23 = vld [vmem:[%s7955_s6 + $0x8] ss:$68 sps:$4 sm:$0x7f]  }
 0x53f   :  { %5790 = vmatprep.subr.bf16.mxu0 %v7017_v14  ;;  %5796 = vmatprep.subr.bf16.mxu1 %v7017_v14 }
 0x60f   :  { %v919_v31 = vpop.f32.mrb[8].mxu0  ;;  %v964_v32 = vpop.f32.mrb[12].mxu1 }
 0x610   :  { %v925_v33 = vpack.c.bf16 %v919_v31, %v919_v31  ;;  %v970_v34 = vpack.c.bf16 %v964_v32, %v964_v32  ;;  %v5770_v35 = vpop.f32.mrb[9].mxu0  ;;  %v5776_v36 = vpop.f32.mrb[13].mxu1  ;;  %v6021_v31 = vld [vmem:[%s7955_s6 + $0x14] ss:$68 sps:$4 sm:$0x7f]  }
 0x611   :  { %v922_v37 = vpop.f32.mrb[10].mxu0  ;;  %v967_v38 = vpop.f32.mrb[14].mxu1  ;;  %v6024_v32 = vld [vmem:[%s7955_s6 + $0x1c] ss:$68 sps:$4 sm:$0x7f]   ;;  %v1426_v35 = vand.u32 %v6013_v21, %v7494_v27  ;;  %v1432_v36 = vand.u32 %v6016_v23, %v7494_v27 }
 0x612   :  { %v5771_v39 = vpop.f32.mrb[11].mxu0  ;;  %v5777_v40 = vpop.f32.mrb[15].mxu1  ;;  %5781 = vmatmul.mubr.msk.bf16.vlgmr.msra.gmra.mrb[12].mxu0 %vm565_vm1, %v970_v34  ;;  %5787 = vmatmul.mubr.msk.bf16.vlgmr.msra.gmra.mrb[16].mxu1 %vm565_vm1, %v925_v33 }
 0x613   :  { %5792 = vmatprep.mubr.msk.bf16.mxu0 %vm7018_vm0, %v7017_v14  ;;  %5798 = vmatprep.mubr.msk.bf16.mxu1 %vm7018_vm0, %v7017_v14 }
 0x6e5   :  { %v1014_v41 = vpop.f32.mrb[12].mxu0  ;;  %v1063_v43 = vpop.f32.mrb[16].mxu1 }
 0x6e6   :  { %v1064_v44 = vadd.f32 %v1063_v43, %v1014_v41  ;;  %v5782_v45 = vpop.f32.mrb[13].mxu0  ;;  %v5788_v46 = vpop.f32.mrb[17].mxu1  ;;  %v1441_v43 = vand.u32 %v6021_v31, %v7494_v27  ;;  %v1870_v31 = vld [vmem:[#allocation16 + $0xc0] sm:$0xff] }
 0x6e7   :  { %v1017_v47 = vpop.f32.mrb[14].mxu0  ;;  %v1066_v48 = vpop.f32.mrb[18].mxu1 }
 0x6e8   :  { %v1075_v49 = vadd.f32 %v5329_v42, %v1064_v44  ;;  %v5783_v50 = vpop.f32.mrb[15].mxu0  ;;  %v5789_v51 = vpop.f32.mrb[19].mxu1  ;;  %v1447_v44 = vand.u32 %v6024_v32, %v7494_v27  ;;  %v1328_v47 = vld [vmem:[%s7956_s5] sm:$0x3]  ;;  %v1855_v32 = vld [vmem:[#allocation16 + $0x48] sm:$0xff] }
 0x6e9   :  { %v6019_v48 = vld [vmem:[%s7955_s6 + $0x10] ss:$68 sps:$4 sm:$0x7f]   ;;  %v7020_v50 = vmov 0  }
 0x6ea   :  { %v1076_v52 = vsel %vm565_vm1, %v1075_v49, 0.0  ;;  %v6027_v51 = vld [vmem:[%s7955_s6 + $0x24] ss:$68 sps:$4 sm:$0x7f]  }
 0x6eb   :  { %v1077_v53 = vrot.slane %v1076_v52, 4 }
 0x6ed   :  { %v1078_v54 = vadd.f32 %v1077_v53, %v1076_v52  ;;  %v6030_v52 = vld [vmem:[%s7955_s6 + $0x2c] ss:$68 sps:$4 sm:$0x7f]   ;;  %v7515_v53 = vpack.c.bf16 %v1328_v47, %v1328_v47 }
 0x6ee   :  { %v1890_v47 = vld [vmem:[#allocation16 + $0x160] sm:$0xff] }
 0x6ef   :  { %v1079_v55 = vrot.slane %v1078_v54, 2 }
 0x6f1   :  { %v1080_v56 = vadd.f32 %v1079_v55, %v1078_v54  ;;  %v1438_v54 = vand.u32 %v6019_v48, %v7494_v27  ;;  %v1871_v48 = vld [vmem:[#allocation16 + $0xc8] sm:$0xff] }
 0x6f3   :  { %v1081_v57 = vrot.slane %v1080_v56, 1 }
 0x6f5   :  { %v1082_v58 = vadd.f32 %v1081_v57, %v1080_v56  ;;  %v1453_v56 = vand.u32 %v6027_v51, %v7494_v27  ;;  %v1459_v57 = vand.u32 %v6030_v52, %v7494_v27 }
 0x6f7   :  { %v1084_v59 = vmul.f32 0.125, %v1082_v58  ;;  %v6025_v58 = vld [vmem:[%s7955_s6 + $0x20] ss:$68 sps:$4 sm:$0x7f]  }
 0x6f9   :  { %v1085_v60 = vsub.f32 %v1075_v49, %v1084_v59  ;;  %v6022_v49 = vld [vmem:[%s7955_s6 + $0x18] ss:$68 sps:$4 sm:$0x7f]   ;;  %v6028_v59 = vld [vmem:[%s7955_s6 + $0x28] ss:$68 sps:$4 sm:$0x7f]  }
 0x6fa   :  { %v1444_v55 = vand.u32 %v6022_v49, %v7494_v27  ;;  %v1875_v49 = vld [vmem:[#allocation16 + $0xe8] sm:$0xff] }
 0x6fb   :  { %v1086_v61 = vmul.f32 %v1085_v60, %v1085_v60 }
 0x6fd   :  { %v1087_v0 = vsel %vm565_vm1, %v1086_v61, 0.0  ;;  %v6036_v61 = vld [vmem:[%s7955_s6 + $0x34] ss:$68 sps:$4 sm:$0x7f]  }
 0x6fe   :  { %v1088_v1 = vrot.slane %v1087_v0, 4 }
 0x700   :  { %v1089_v2 = vadd.f32 %v1088_v1, %v1087_v0  ;;  %v1450_v0 = vand.u32 %v6025_v58, %v7494_v27  ;;  %v1456_v1 = vand.u32 %v6028_v59, %v7494_v27  ;;  %v5389_v59 = vcombine.low %v1871_v48, %v1875_v49 }
 0x702   :  { %v1090_v4 = vrot.slane %v1089_v2, 2 }
 0x704   :  { %v1091_v5 = vadd.f32 %v1090_v4, %v1089_v2  ;;  %v1465_v4 = vand.u32 %v6036_v61, %v7494_v27 }
 0x706   :  { %v1092_v6 = vrot.slane %v1091_v5, 1 }
 0x708   :  { %v1093_v7 = vadd.f32 %v1092_v6, %v1091_v5  ;;  %v6031_v5 = vld [vmem:[%s7955_s6 + $0x38] ss:$68 sps:$4 sm:$0x7f]   ;;  %v6034_v6 = vld [vmem:[%s7955_s6 + $0x30] ss:$68 sps:$4 sm:$0x7f]  }
 0x70a   :  { %v1094_v8 = vmul.f32 0.125, %v1093_v7  ;;  %v1846_v7 = vld [vmem:[#allocation16] sm:$0xff] }
 0x70c   :  { %v1095_v9 = vadd.f32 1e-05, %v1094_v8  ;;  %v1850_v8 = vld [vmem:[#allocation16 + $0x20] sm:$0xff] }
 0x70e   :  { %6332 = vrsqrt.f32 %v1095_v9  ;;  %v1468_v9 = vand.u32 %v6031_v5, %v7494_v27  ;;  %v1852_v5 = vld [vmem:[#allocation16 + $0x30] sm:$0xff] }
 0x718   :  { %v6333_v10 = vpop.eup %6332 }
 0x719   :  { %v1097_v11 = vmul.f32 %v6333_v10, %v1085_v60  ;;  %v6033_v60 = vld [vmem:[%s7955_s6 + $0x3c] ss:$68 sps:$4 sm:$0x7f]   ;;  %v1462_v10 = vand.u32 %v6034_v6, %v7494_v27 }
 0x71a   :  { %v1471_v2 = vand.u32 %v6033_v60, %v7494_v27 }
 0x71b   :  { %v1098_v12 = vmul.f32 0.2, %v1097_v11 }
 0x71d   :  { %v1099_v13 = vmax.f32 %v1097_v11, %v1098_v12  ;;  %v5364_v11 = vcombine.high %v1846_v7, %v1850_v8  ;;  %v6037_v12 = vld [vmem:[%s7955_s6 + $0x40] ss:$68 sps:$4 sm:$0x7f]  }
 0x71e   :  { %v1474_v24 = vand.u32 %v6037_v12, %v7494_v27  ;;  %v1856_v12 = vld [vmem:[#allocation16 + $0x50] sm:$0xff] }
 0x71f   :  { %v7478_v15 = vpack.c.bf16 %v1099_v13, %v1099_v13  ;;  %v1854_v13 = vld [vmem:[#allocation16 + $0x40] sm:$0xff] }
 0x721   :  { %v1111_v16 = vsel %vm1109_vm7, %v7478_v15, 0 }
 0x722   :  { %5791 = vmatpush3.bf16.msra.mxu0 %v1111_v16  ;;  %5797 = vmatpush3.bf16.msra.mxu1 %v1111_v16  ;;  %v1858_v16 = vld [vmem:[#allocation16 + $0x60] sm:$0xff] }
 0x723   :  { %5802 = vmatprep.subr.bf16.mxu0 %v7017_v14  ;;  %5808 = vmatprep.subr.bf16.mxu1 %v7017_v14  ;;  %v5372_v25 = vcombine.high %v1854_v13, %v1858_v16  ;;  %v5371_v21 = vcombine.low %v1854_v13, %v1858_v16  ;;  %v1860_v13 = vld [vmem:[#allocation16 + $0x70] sm:$0xff] }
 0x725   :  { %5793 = vmatmul.mubr.msk.bf16.vlgmr.msra.gmra.mrb[16].mxu0 %vm1106_vm8, %v7454_v30  ;;  %5799 = vmatmul.mubr.msk.bf16.vlgmr.msra.gmra.mrb[20].mxu1 %vm1106_vm8, %v7450_v29  ;;  %v1429_v29 = vand.u32 %v6015_v22, %v7494_v27  ;;  %v1435_v30 = vand.u32 %v6018_v26, %v7494_v27  ;;  %v5363_v22 = vcombine.low %v1846_v7, %v1850_v8  ;;  %v1862_v26 = vld [vmem:[#allocation16 + $0x80] sm:$0xff]  ;;  %v1844_v7 = vld [vmem:[%s7957_s11] sm:$0x3] }
 0x726   :  { %5804 = vmatprep.mubr.msk.bf16.mxu0 %vm7018_vm0, %v7017_v14  ;;  %5810 = vmatprep.mubr.msk.bf16.mxu1 %vm7018_vm0, %v7017_v14  ;;  %v1874_v27 = vld [vmem:[#allocation16 + $0xe0] sm:$0xff]  ;;  %v7567_v16 = vpack.c.bf16 %v1844_v7, %v1844_v7 }
 0x727   :  { %5803 = vmatpush3.bf16.msra.mxu0 %v6011_v17  ;;  %5809 = vmatpush3.bf16.msra.mxu1 %v6012_v18  ;;  %v1847_v17 = vld [vmem:[#allocation16 + $0x8] sm:$0xff] }
 0x728   :  { %1476 = vmatprep.subr.bf16.mxu0 %v1429_v29  ;;  %1517 = vmatprep.subr.bf16.mxu1 %v1435_v30  ;;  %v1851_v18 = vld [vmem:[#allocation16 + $0x28] sm:$0xff]  ;;  %v1866_v29 = vld [vmem:[#allocation16 + $0xa0] sm:$0xff] }
 0x729   :  { %v5366_v30 = vcombine.high %v1847_v17, %v1851_v18  ;;  %v5380_v23 = vcombine.high %v1862_v26, %v1866_v29 }
 0x7f8   :  { %v1147_v33 = vpop.f32.mrb[16].mxu0  ;;  %v1190_v34 = vpop.f32.mrb[20].mxu1 }
 0x7f9   :  { %v1153_v37 = vpack.c.bf16 %v1147_v33, %v1147_v33  ;;  %v1196_v38 = vpack.c.bf16 %v1190_v34, %v1190_v34  ;;  %v5800_v39 = vpop.f32.mrb[21].mxu1  ;;  %v5794_v40 = vpop.f32.mrb[17].mxu0  ;;  %v1859_v33 = vld [vmem:[#allocation16 + $0x68] sm:$0xff]  ;;  %v5379_v34 = vcombine.low %v1862_v26, %v1866_v29  ;;  %v1864_v26 = vld [vmem:[#allocation16 + $0x90] sm:$0xff] }
 0x7fa   :  { %v1193_v41 = vpop.f32.mrb[22].mxu1  ;;  %v1150_v42 = vpop.f32.mrb[18].mxu0  ;;  %v1882_v39 = vld [vmem:[#allocation16 + $0x120] sm:$0xff]  ;;  %v1863_v40 = vld [vmem:[#allocation16 + $0x88] sm:$0xff]  ;;  %v1868_v29 = vld [vmem:[#allocation16 + $0xb0] sm:$0xff] }
 0x7fb   :  { %v5801_v45 = vpop.f32.mrb[23].mxu1  ;;  %5805 = vmatmul.mubr.msk.bf16.vlgmr.msra.gmra.mrb[20].mxu0 %vm565_vm1, %v1196_v38  ;;  %5811 = vmatmul.mubr.msk.bf16.vlgmr.msra.gmra.mrb[24].mxu1 %vm565_vm1, %v1153_v37  ;;  %v5795_v46 = vpop.f32.mrb[19].mxu0  ;;  %v5374_v37 = vcombine.high %v1855_v32, %v1859_v33  ;;  %v1878_v38 = vld [vmem:[#allocation16 + $0x100] sm:$0xff]  ;;  %v1867_v41 = vld [vmem:[#allocation16 + $0xa8] sm:$0xff]  ;;  %v5387_v42 = vcombine.low %v1870_v31, %v1874_v27 }
 0x7fc   :  { %1477 = vmatpush1.bf16.msra.mxu0 %v1426_v35  ;;  %1518 = vmatpush1.bf16.msra.mxu1 %v1432_v36  ;;  %v5365_v35 = vcombine.low %v1847_v17, %v1851_v18  ;;  %v5388_v36 = vcombine.high %v1870_v31, %v1874_v27  ;;  %v5382_v45 = vcombine.high %v1863_v40, %v1867_v41  ;;  %v1886_v46 = vld [vmem:[#allocation16 + $0x140] sm:$0xff] }
 0x7fd   :  { %1508 = vmatprep.mubr.bf16.mxu0 %v7020_v50  ;;  %1549 = vmatprep.mubr.bf16.mxu1 %v7020_v50  ;;  %v5395_v51 = vcombine.low %v1878_v38, %v1882_v39  ;;  %v5381_v52 = vcombine.low %v1863_v40, %v1867_v41  ;;  %v5403_v58 = vcombine.low %v1886_v46, %v1890_v47  ;;  %v1880_v41 = vld [vmem:[#allocation16 + $0x110] sm:$0xff] }
 0x7fe   :  { %1558 = vmatprep.subr.bf16.mxu0 %v1441_v43  ;;  %1599 = vmatprep.subr.bf16.mxu1 %v1447_v44  ;;  %v5373_v43 = vcombine.low %v1855_v32, %v1859_v33  ;;  %v5396_v44 = vcombine.high %v1878_v38, %v1882_v39  ;;  %v5384_v27 = vcombine.high %v1864_v26, %v1868_v29  ;;  %v1872_v33 = vld [vmem:[#allocation16 + $0xd0] sm:$0xff] }
 0x803   :  { %5354 = vmatmul.mubr.msk.bf16.vlgmr.msra.gmra.mrb[24].mxu0 %vm1417_vm11, %v7515_v53  ;;  %5355 = vmatmul.mubr.msk.bf16.vlgmr.msra.gmra.mrb[28].mxu1 %vm1417_vm11, %v7515_v53 }
 0x804   :  { %1559 = vmatpush1.bf16.msra.mxu0 %v1438_v54  ;;  %1600 = vmatpush1.bf16.msra.mxu1 %v1444_v55  ;;  %v5390_v54 = vcombine.high %v1871_v48, %v1875_v49  ;;  %v1894_v55 = vld [vmem:[#allocation16 + $0x180] sm:$0x33]  ;;  %v1888_v49 = vld [vmem:[#allocation16 + $0x150] sm:$0xff] }
 0x805   :  { %1590 = vmatprep.mubr.bf16.mxu0 %v7020_v50  ;;  %1631 = vmatprep.mubr.bf16.mxu1 %v7020_v50  ;;  %v5412_v60 = vcombine.high %v1894_v55, %v1894_v55 }
 0x806   :  { %1640 = vmatprep.subr.bf16.mxu0 %v1453_v56  ;;  %1681 = vmatprep.subr.bf16.mxu1 %v1459_v57  ;;  %v1879_v56 = vld [vmem:[#allocation16 + $0x108] sm:$0xff] }
 0x807   :  { %v1883_v57 = vld [vmem:[#allocation16 + $0x128] sm:$0xff] }
 0x808   :  { %v5398_v61 = vcombine.high %v1879_v56, %v1883_v57  ;;  %v5397_v6 = vcombine.low %v1879_v56, %v1883_v57 }
 0x80b   :  { %5356 = vmatmul.mubr.msk.bf16.vlgmr.msra.gmra.mrb[28].mxu0 %vm1417_vm11, %v7515_v53  ;;  %5357 = vmatmul.mubr.msk.bf16.vlgmr.msra.gmra.mrb[32].mxu1 %vm1417_vm11, %v7515_v53 }
 0x80c   :  { %1641 = vmatpush1.bf16.msra.mxu0 %v1450_v0  ;;  %1682 = vmatpush1.bf16.msra.mxu1 %v1456_v1  ;;  %v5411_v0 = vcombine.low %v1894_v55, %v1894_v55  ;;  %v1887_v1 = vld [vmem:[#allocation16 + $0x148] sm:$0xff] }
 0x80d   :  { %1672 = vmatprep.mubr.bf16.mxu0 %v7020_v50  ;;  %1713 = vmatprep.mubr.bf16.mxu1 %v7020_v50 }
 0x80e   :  { %1763 = vmatprep.subr.bf16.mxu1 %v1471_v2  ;;  %1722 = vmatprep.subr.bf16.mxu0 %v1465_v4  ;;  %v1891_v2 = vld [vmem:[#allocation16 + $0x168] sm:$0xff]  ;;  %v1848_v4 = vld [vmem:[#allocation16 + $0x10] sm:$0xff]  ;;  %v2164_v8 = vsel %vm2162_vm12, %v5411_v0, 0 }
 0x80f   :  { %v5405_v17 = vcombine.low %v1887_v1, %v1891_v2  ;;  %v5367_v18 = vcombine.low %v1848_v4, %v1852_v5 }
 0x813   :  { %5358 = vmatmul.mubr.msk.bf16.vlgmr.msra.gmra.mrb[32].mxu0 %vm1417_vm11, %v7515_v53  ;;  %5359 = vmatmul.mubr.msk.bf16.vlgmr.msra.gmra.mrb[36].mxu1 %vm1417_vm11, %v7515_v53 }
 0x814   :  { %1764 = vmatpush1.bf16.msra.mxu1 %v1468_v9  ;;  %1723 = vmatpush1.bf16.msra.mxu0 %v1462_v10  ;;  %v5406_v9 = vcombine.high %v1887_v1, %v1891_v2  ;;  %v5368_v10 = vcombine.high %v1848_v4, %v1852_v5  ;;  %v1889_v5 = vld [vmem:[#allocation16 + $0x158] sm:$0xff] }
 0x815   :  { %1754 = vmatprep.mubr.bf16.mxu0 %v7020_v50  ;;  %1795 = vmatprep.mubr.bf16.mxu1 %v7020_v50 }
 0x816   :  { %2187 = vmatprep.subr.bf16.mxu1 %v5364_v11  ;;  %5814 = vmatprep.subr.bf16.mxu0 %v7017_v14  ;;  %v1895_v11 = vld [vmem:[#allocation16 + $0x188] sm:$0x33] }
 0x81b   :  { %5360 = vmatmul.mubr.msk.bf16.vlgmr.msra.gmra.mrb[36].mxu0 %vm1417_vm11, %v7515_v53  ;;  %5361 = vmatmul.mubr.msk.bf16.vlgmr.msra.gmra.mrb[40].mxu1 %vm1417_vm11, %v7515_v53 }
 0x81c   :  { %2188 = vmatpush1.bf16.msra.mxu1 %v5363_v22  ;;  %5815 = vmatpush3.bf16.msra.mxu0 %v1474_v24  ;;  %v5414_v22 = vcombine.high %v1895_v11, %v1895_v11  ;;  %v5376_v24 = vcombine.high %v1856_v12, %v1860_v13 }
 0x81d   :  { %2189 = vmatprep.subr.bf16.mxu1 %v5372_v25  ;;  %5816 = vmatprep.mubr.msk.bf16.mxu0 %vm7018_vm0, %v7017_v14  ;;  %v5413_v25 = vcombine.low %v1895_v11, %v1895_v11 }
 0x81e   :  { %2228 = vmatprep.subr.bf16.mxu0 %v5366_v30  ;;  %2219 = vmatprep.mubr.bf16.mxu1 %v7020_v50  ;;  %v1849_v30 = vld [vmem:[#allocation16 + $0x18] sm:$0xff] }
 0x81f   :  { %v2170_v31 = vsel %vm2162_vm12, %v5413_v25, 0  ;;  %v6049_v25 = vld [vmem:[#allocation19 + $0x10] ss:$8 sps:$4 sm:$0xff]  }
 0x820   :  { %2190 = vmatpush1.bf16.msra.mxu1 %v5371_v21  ;;  %v1853_v21 = vld [vmem:[#allocation16 + $0x38] sm:$0xff] }
 0x821   :  { %2191 = vmatprep.subr.bf16.mxu1 %v5380_v23  ;;  %v5375_v23 = vcombine.low %v1856_v12, %v1860_v13  ;;  %v5370_v32 = vcombine.high %v1849_v30, %v1853_v21  ;;  %v5369_v38 = vcombine.low %v1849_v30, %v1853_v21  ;;  %v6052_v30 = vld [vmem:[#allocation19 + $0x20] ss:$8 sps:$4 sm:$0xff]  }
 0x822   :  { %v6055_v21 = vld [vmem:[#allocation19 + $0x100] ss:$8 sps:$4 sm:$0xff]  }
 0x823   :  { %5817 = vmatmul.mubr.msk.bf16.vlgmr.msra.gmra.mrb[40].mxu0 %vm1417_vm11, %v7515_v53  ;;  %v5404_v53 = vcombine.high %v1886_v46, %v1890_v47 }
 0x824   :  { %2192 = vmatpush1.bf16.msra.mxu1 %v5379_v34  ;;  %2229 = vmatpush1.bf16.msra.mxu0 %v5365_v35  ;;  %v1876_v34 = vld [vmem:[#allocation16 + $0xf0] sm:$0xff]  ;;  %v1857_v35 = vld [vmem:[#allocation16 + $0x58] sm:$0xff] }
 0x825   :  { %2193 = vmatprep.subr.bf16.mxu1 %v5388_v36  ;;  %2230 = vmatprep.subr.bf16.mxu0 %v5374_v37  ;;  %v1861_v36 = vld [vmem:[#allocation16 + $0x78] sm:$0xff]  ;;  %v5383_v37 = vcombine.low %v1864_v26, %v1868_v29  ;;  %v5392_v39 = vcombine.high %v1872_v33, %v1876_v34  ;;  %v6054_v26 = vld [vmem:[#allocation19 + $0x24] ss:$8 sps:$4 sm:$0xff]  }
 0x826   :  { %2260 = vmatprep.mubr.bf16.mxu0 %v7020_v50  ;;  %v5378_v40 = vcombine.high %v1857_v35, %v1861_v36  ;;  %v5377_v46 = vcombine.low %v1857_v35, %v1861_v36  ;;  %v6057_v29 = vld [vmem:[#allocation19 + $0x104] ss:$8 sps:$4 sm:$0xff]   ;;  %v6067_v35 = vld [vmem:[#allocation19 + $0x120] ss:$8 sps:$4 sm:$0xff]   ;;  %v6072_v36 = vld [vmem:[#allocation19 + $0x54] ss:$8 sps:$4 sm:$0xff]  }
 0x828   :  { %2194 = vmatpush1.bf16.msra.mxu1 %v5387_v42  ;;  %2231 = vmatpush1.bf16.msra.mxu0 %v5373_v43  ;;  %v1884_v42 = vld [vmem:[#allocation16 + $0x130] sm:$0xff]  ;;  %v1865_v43 = vld [vmem:[#allocation16 + $0x98] sm:$0xff] }
 0x829   :  { %2195 = vmatprep.subr.bf16.mxu1 %v5396_v44  ;;  %2232 = vmatprep.subr.bf16.mxu0 %v5382_v45  ;;  %v1869_v44 = vld [vmem:[#allocation16 + $0xb8] sm:$0xff]  ;;  %v5391_v45 = vcombine.low %v1872_v33, %v1876_v34  ;;  %v5400_v47 = vcombine.high %v1880_v41, %v1884_v42  ;;  %v6069_v33 = vld [vmem:[#allocation19 + $0x124] ss:$8 sps:$4 sm:$0xff]   ;;  %v6064_v34 = vld [vmem:[#allocation19 + $0x40] ss:$8 sps:$4 sm:$0xff]  }
 0x82a   :  { %v5386_v48 = vcombine.high %v1865_v43, %v1869_v44  ;;  %v5385_v55 = vcombine.low %v1865_v43, %v1869_v44  ;;  %v6079_v43 = vld [vmem:[#allocation19 + $0x140] ss:$8 sps:$4 sm:$0xff]   ;;  %v6084_v44 = vld [vmem:[#allocation19 + $0x74] ss:$8 sps:$4 sm:$0xff]  }
 0x82c   :  { %2196 = vmatpush1.bf16.msra.mxu1 %v5395_v51  ;;  %2233 = vmatpush1.bf16.msra.mxu0 %v5381_v52  ;;  %v1892_v51 = vld [vmem:[#allocation16 + $0x170] sm:$0xff]  ;;  %v1873_v52 = vld [vmem:[#allocation16 + $0xd8] sm:$0xff] }
 0x82d   :  { %2197 = vmatprep.subr.bf16.mxu1 %v5404_v53  ;;  %2234 = vmatprep.subr.bf16.mxu0 %v5390_v54  ;;  %v1877_v53 = vld [vmem:[#allocation16 + $0xf8] sm:$0xff]  ;;  %v5399_v54 = vcombine.low %v1880_v41, %v1884_v42  ;;  %v5408_v56 = vcombine.high %v1888_v49, %v1892_v51  ;;  %v6081_v41 = vld [vmem:[#allocation19 + $0x144] ss:$8 sps:$4 sm:$0xff]   ;;  %v6076_v42 = vld [vmem:[#allocation19 + $0x60] ss:$8 sps:$4 sm:$0xff]  }
 0x82e   :  { %v5394_v57 = vcombine.high %v1873_v52, %v1877_v53  ;;  %v5393_v0 = vcombine.low %v1873_v52, %v1877_v53  ;;  %v6091_v52 = vld [vmem:[#allocation19 + $0x160] ss:$8 sps:$4 sm:$0xff]   ;;  %v6096_v53 = vld [vmem:[#allocation19 + $0x94] ss:$8 sps:$4 sm:$0xff]  }
 0x830   :  { %2198 = vmatpush1.bf16.msra.mxu1 %v5403_v58  ;;  %2235 = vmatpush1.bf16.msra.mxu0 %v5389_v59  ;;  %v1896_v58 = vld [vmem:[#allocation16 + $0x190] sm:$0x33]  ;;  %v1881_v59 = vld [vmem:[#allocation16 + $0x118] sm:$0xff] }
 0x831   :  { %5419 = vmatprep.subr.msk.bf16.mxu1 %vm2162_vm12, %v5412_v60  ;;  %2236 = vmatprep.subr.bf16.mxu0 %v5398_v61  ;;  %v1885_v60 = vld [vmem:[#allocation16 + $0x138] sm:$0xff]  ;;  %v5407_v61 = vcombine.low %v1888_v49, %v1892_v51  ;;  %v5416_v1 = vcombine.high %v1896_v58, %v1896_v58  ;;  %v5415_v4 = vcombine.low %v1896_v58, %v1896_v58  ;;  %v6093_v49 = vld [vmem:[#allocation19 + $0x164] ss:$8 sps:$4 sm:$0xff]   ;;  %v6088_v51 = vld [vmem:[#allocation19 + $0x80] ss:$8 sps:$4 sm:$0xff]  }
 0x832   :  { %v5402_v2 = vcombine.high %v1881_v59, %v1885_v60  ;;  %v5401_v7 = vcombine.low %v1881_v59, %v1885_v60  ;;  %v6105_v58 = vld [vmem:[#allocation19 + $0x184] ss:$8 sps:$4 sm:$0xff]   ;;  %v6100_v59 = vld [vmem:[#allocation19 + $0xa0] ss:$8 sps:$4 sm:$0xff]  }
 0x833   :  { %v6103_v60 = vld [vmem:[#allocation19 + $0x180] ss:$8 sps:$4 sm:$0xff]  }
 0x834   :  { %2200 = vmatpush1.bf16.msra.mxu1 %v2164_v8  ;;  %2237 = vmatpush1.bf16.msra.mxu0 %v5397_v6  ;;  %v1893_v6 = vld [vmem:[#allocation16 + $0x178] sm:$0xff]  ;;  %v2176_v8 = vsel %vm2162_vm12, %v5415_v4, 0  ;;  %v6114_v4 = vld [vmem:[#allocation19 + $0xc4] ss:$8 sps:$4 sm:$0xff]  }
 0x835   :  { %2238 = vmatprep.subr.bf16.mxu0 %v5406_v9  ;;  %2269 = vmatprep.subr.bf16.mxu1 %v5368_v10  ;;  %v5410_v9 = vcombine.high %v1889_v5, %v1893_v6  ;;  %v1897_v10 = vld [vmem:[#allocation16 + $0x198] sm:$0x33]  ;;  %v5409_v11 = vcombine.low %v1889_v5, %v1893_v6  ;;  %v6117_v5 = vld [vmem:[#allocation19 + $0x1a4] ss:$8 sps:$4 sm:$0xff]   ;;  %v6112_v6 = vld [vmem:[#allocation19 + $0xc0] ss:$8 sps:$4 sm:$0xff]  }
 0x836   :  { %v5418_v12 = vcombine.high %v1897_v10, %v1897_v10  ;;  %v5417_v13 = vcombine.low %v1897_v10, %v1897_v10  ;;  %v6118_v10 = vld [vmem:[#allocation19 + $0xd0] ss:$8 sps:$4 sm:$0xff]  }
 0x837   :  { %5420 = vmatmul.mubr.msk.bf16.vlgmr.msra.gmra.mrb[44].mxu1 %vm2158_vm13, %v7567_v16 }
 0x838   :  { %2239 = vmatpush1.bf16.msra.mxu0 %v5405_v17  ;;  %2270 = vmatpush1.bf16.msra.mxu1 %v5367_v18  ;;  %v2182_v17 = vsel %vm2162_vm12, %v5417_v13, 0  ;;  %v6048_v18 = vld [vmem:[#allocation19 + $0x4] ss:$8 sps:$4 sm:$0xff]  }
 0x839   :  { %5421 = vmatprep.subr.msk.bf16.mxu0 %vm2162_vm12, %v5414_v22  ;;  %2271 = vmatprep.subr.bf16.mxu1 %v5376_v24  ;;  %v6046_v22 = vld [vmem:[#allocation19] ss:$8 sps:$4 sm:$0xff]   ;;  %v6051_v24 = vld [vmem:[#allocation19 + $0x14] ss:$8 sps:$4 sm:$0xff]   ;;  %v6129_v13 = vld [vmem:[#allocation19 + $0x1c4] ss:$8 sps:$4 sm:$0xff]  }
 0x83a   :  { %2301 = vmatprep.mubr.bf16.mxu1 %v7020_v50 }
 0x83c   :  { %2241 = vmatpush1.bf16.msra.mxu0 %v2170_v31  ;;  %2272 = vmatpush1.bf16.msra.mxu1 %v5375_v23  ;;  %v6060_v23 = vld [vmem:[#allocation19 + $0x34] ss:$8 sps:$4 sm:$0xff]  }
 0x83d   :  { %2273 = vmatprep.subr.bf16.mxu1 %v5384_v27  ;;  %2310 = vmatprep.subr.bf16.mxu0 %v5370_v32  ;;  %v6063_v31 = vld [vmem:[#allocation19 + $0x114] ss:$8 sps:$4 sm:$0xff]   ;;  %v6058_v27 = vld [vmem:[#allocation19 + $0x30] ss:$8 sps:$4 sm:$0xff]   ;;  %v6066_v32 = vld [vmem:[#allocation19 + $0x44] ss:$8 sps:$4 sm:$0xff]  }
 0x83f   :  { %5422 = vmatmul.mubr.msk.bf16.vlgmr.msra.gmra.mrb[44].mxu0 %vm2158_vm13, %v7567_v16 }
 0x840   :  { %2274 = vmatpush1.bf16.msra.mxu1 %v5383_v37  ;;  %2311 = vmatpush1.bf16.msra.mxu0 %v5369_v38  ;;  %v6075_v37 = vld [vmem:[#allocation19 + $0x134] ss:$8 sps:$4 sm:$0xff]   ;;  %v6070_v38 = vld [vmem:[#allocation19 + $0x50] ss:$8 sps:$4 sm:$0xff]  }
 0x841   :  { %2275 = vmatprep.subr.bf16.mxu1 %v5392_v39  ;;  %2312 = vmatprep.subr.bf16.mxu0 %v5378_v40  ;;  %v6073_v39 = vld [vmem:[#allocation19 + $0x130] ss:$8 sps:$4 sm:$0xff]   ;;  %v6078_v40 = vld [vmem:[#allocation19 + $0x64] ss:$8 sps:$4 sm:$0xff]  }
 0x842   :  { %2342 = vmatprep.mubr.bf16.mxu0 %v7020_v50 }
 0x844   :  { %2276 = vmatpush1.bf16.msra.mxu1 %v5391_v45  ;;  %2313 = vmatpush1.bf16.msra.mxu0 %v5377_v46  ;;  %v6087_v45 = vld [vmem:[#allocation19 + $0x154] ss:$8 sps:$4 sm:$0xff]   ;;  %v6082_v46 = vld [vmem:[#allocation19 + $0x70] ss:$8 sps:$4 sm:$0xff]  }
 0x845   :  { %2277 = vmatprep.subr.bf16.mxu1 %v5400_v47  ;;  %2314 = vmatprep.subr.bf16.mxu0 %v5386_v48  ;;  %v6085_v47 = vld [vmem:[#allocation19 + $0x150] ss:$8 sps:$4 sm:$0xff]   ;;  %v6090_v48 = vld [vmem:[#allocation19 + $0x84] ss:$8 sps:$4 sm:$0xff]  }
 0x848   :  { %2278 = vmatpush1.bf16.msra.mxu1 %v5399_v54  ;;  %2315 = vmatpush1.bf16.msra.mxu0 %v5385_v55  ;;  %v6099_v54 = vld [vmem:[#allocation19 + $0x174] ss:$8 sps:$4 sm:$0xff]   ;;  %v6094_v55 = vld [vmem:[#allocation19 + $0x90] ss:$8 sps:$4 sm:$0xff]  }
 0x849   :  { %2279 = vmatprep.subr.bf16.mxu1 %v5408_v56  ;;  %2316 = vmatprep.subr.bf16.mxu0 %v5394_v57  ;;  %v6097_v56 = vld [vmem:[#allocation19 + $0x170] ss:$8 sps:$4 sm:$0xff]   ;;  %v6102_v57 = vld [vmem:[#allocation19 + $0xa4] ss:$8 sps:$4 sm:$0xff]  }
 0x84c   :  { %2280 = vmatpush1.bf16.msra.mxu1 %v5407_v61  ;;  %2317 = vmatpush1.bf16.msra.mxu0 %v5393_v0  ;;  %v6108_v61 = vld [vmem:[#allocation19 + $0xb4] ss:$8 sps:$4 sm:$0xff]  }
 0x84d   :  { %5423 = vmatprep.subr.msk.bf16.mxu1 %vm2162_vm12, %v5416_v1  ;;  %2318 = vmatprep.subr.bf16.mxu0 %v5402_v2  ;;  %v6111_v0 = vld [vmem:[#allocation19 + $0x194] ss:$8 sps:$4 sm:$0xff]   ;;  %v6106_v1 = vld [vmem:[#allocation19 + $0xb0] ss:$8 sps:$4 sm:$0xff]  }
 0x84e   :  { %v6109_v2 = vld [vmem:[#allocation19 + $0x190] ss:$8 sps:$4 sm:$0xff]  }
 0x850   :  { %2282 = vmatpush1.bf16.msra.mxu1 %v2176_v8  ;;  %2319 = vmatpush1.bf16.msra.mxu0 %v5401_v7  ;;  %v6115_v7 = vld [vmem:[#allocation19 + $0x1a0] ss:$8 sps:$4 sm:$0xff]   ;;  %v6120_v8 = vld [vmem:[#allocation19 + $0xd4] ss:$8 sps:$4 sm:$0xff]  }
 0x851   :  { %2320 = vmatprep.subr.bf16.mxu0 %v5410_v9  ;;  %3354 = vmatprep.subr.bf16.mxu1 %v6048_v18  ;;  %v6123_v9 = vld [vmem:[#allocation19 + $0x1b4] ss:$8 sps:$4 sm:$0xff]   ;;  %v6127_v18 = vld [vmem:[#allocation19 + $0x1c0] ss:$8 sps:$4 sm:$0xff]  }
 0x853   :  { %5424 = vmatmul.mubr.msk.bf16.vlgmr.msra.gmra.mrb[48].mxu1 %vm2158_vm13, %v7567_v16 }
 0x854   :  { %2321 = vmatpush1.bf16.msra.mxu0 %v5409_v11  ;;  %3355 = vmatpush1.bf16.msra.mxu1 %v6046_v22  ;;  %v6121_v11 = vld [vmem:[#allocation19 + $0x1b0] ss:$8 sps:$4 sm:$0xff]   ;;  %v6132_v22 = vld [vmem:[#allocation19 + $0xf4] ss:$8 sps:$4 sm:$0xff]  }
 0x855   :  { %5425 = vmatprep.subr.msk.bf16.mxu0 %vm2162_vm12, %v5418_v12  ;;  %3356 = vmatprep.subr.bf16.mxu1 %v6051_v24  ;;  %v6126_v12 = vld [vmem:[#allocation19 + $0xe4] ss:$8 sps:$4 sm:$0xff]   ;;  %v6135_v24 = vld [vmem:[#allocation19 + $0x1d4] ss:$8 sps:$4 sm:$0xff]  }
 0x858   :  { %2323 = vmatpush1.bf16.msra.mxu0 %v2182_v17  ;;  %3357 = vmatpush1.bf16.msra.mxu1 %v6049_v25  ;;  %v6124_v17 = vld [vmem:[#allocation19 + $0xe0] ss:$8 sps:$4 sm:$0xff]   ;;  %v6130_v25 = vld [vmem:[#allocation19 + $0xf0] ss:$8 sps:$4 sm:$0xff]  }
 0x859   :  { %3358 = vmatprep.subr.bf16.mxu1 %v6054_v26  ;;  %3395 = vmatprep.subr.bf16.mxu0 %v6057_v29  ;;  %v6133_v26 = vld [vmem:[#allocation19 + $0x1d0] ss:$8 sps:$4 sm:$0xff]   ;;  %v6138_v29 = vld [vmem:[#allocation19 + $0x1e4] ss:$8 sps:$4 sm:$0xff]  }
 0x85b   :  { %5426 = vmatmul.mubr.msk.bf16.vlgmr.msra.gmra.mrb[48].mxu0 %vm2158_vm13, %v7567_v16  ;;  %v6061_v16 = vld [vmem:[#allocation19 + $0x110] ss:$8 sps:$4 sm:$0xff]  }
 0x85c   :  { %3359 = vmatpush1.bf16.msra.mxu1 %v6052_v30  ;;  %3396 = vmatpush1.bf16.msra.mxu0 %v6055_v21  ;;  %v6141_v30 = vld [vmem:[#allocation19 + $0x204] ss:$8 sps:$4 sm:$0xff]   ;;  %v6136_v21 = vld [vmem:[#allocation19 + $0x1e0] ss:$8 sps:$4 sm:$0xff]  }
 0x85d   :  { %3360 = vmatprep.subr.bf16.mxu1 %v6060_v23  ;;  %3397 = vmatprep.subr.bf16.mxu0 %v6063_v31  ;;  %v6144_v23 = vld [vmem:[#allocation19 + $0x1f4] ss:$8 sps:$4 sm:$0xff]   ;;  %v6142_v31 = vld [vmem:[#allocation19 + $0x1f0] ss:$8 sps:$4 sm:$0xff]  }
 0x860   :  { %3361 = vmatpush1.bf16.msra.mxu1 %v6058_v27  ;;  %3398 = vmatpush1.bf16.msra.mxu0 %v6061_v16  ;;  %v6153_v27 = vld [vmem:[#allocation19 + $0x304] ss:$8 sps:$4 sm:$0xff]  }
 0x861   :  { %3362 = vmatprep.subr.bf16.mxu1 %v6066_v32  ;;  %3399 = vmatprep.subr.bf16.mxu0 %v6069_v33 }
 0x864   :  { %3363 = vmatpush1.bf16.msra.mxu1 %v6064_v34  ;;  %3400 = vmatpush1.bf16.msra.mxu0 %v6067_v35 }
 0x865   :  { %3364 = vmatprep.subr.bf16.mxu1 %v6072_v36  ;;  %3401 = vmatprep.subr.bf16.mxu0 %v6075_v37 }
 0x868   :  { %3365 = vmatpush1.bf16.msra.mxu1 %v6070_v38  ;;  %3402 = vmatpush1.bf16.msra.mxu0 %v6073_v39 }
 0x869   :  { %3366 = vmatprep.subr.bf16.mxu1 %v6078_v40  ;;  %3403 = vmatprep.subr.bf16.mxu0 %v6081_v41 }
 0x86c   :  { %3367 = vmatpush1.bf16.msra.mxu1 %v6076_v42  ;;  %3404 = vmatpush1.bf16.msra.mxu0 %v6079_v43 }
 0x86d   :  { %3368 = vmatprep.subr.bf16.mxu1 %v6084_v44  ;;  %3405 = vmatprep.subr.bf16.mxu0 %v6087_v45 }
 0x870   :  { %3369 = vmatpush1.bf16.msra.mxu1 %v6082_v46  ;;  %3406 = vmatpush1.bf16.msra.mxu0 %v6085_v47 }
 0x871   :  { %3370 = vmatprep.subr.bf16.mxu1 %v6090_v48  ;;  %3407 = vmatprep.subr.bf16.mxu0 %v6093_v49 }
 0x874   :  { %3371 = vmatpush1.bf16.msra.mxu1 %v6088_v51  ;;  %3408 = vmatpush1.bf16.msra.mxu0 %v6091_v52 }
 0x875   :  { %3372 = vmatprep.subr.bf16.mxu1 %v6096_v53  ;;  %3409 = vmatprep.subr.bf16.mxu0 %v6099_v54 }
 0x878   :  { %3373 = vmatpush1.bf16.msra.mxu1 %v6094_v55  ;;  %3410 = vmatpush1.bf16.msra.mxu0 %v6097_v56 }
 0x879   :  { %3374 = vmatprep.subr.bf16.mxu1 %v6102_v57  ;;  %3411 = vmatprep.subr.bf16.mxu0 %v6105_v58 }
 0x87c   :  { %3375 = vmatpush1.bf16.msra.mxu1 %v6100_v59  ;;  %3412 = vmatpush1.bf16.msra.mxu0 %v6103_v60 }
 0x87d   :  { %3376 = vmatprep.subr.bf16.mxu1 %v6108_v61  ;;  %3413 = vmatprep.subr.bf16.mxu0 %v6111_v0 }
 0x880   :  { %3377 = vmatpush1.bf16.msra.mxu1 %v6106_v1  ;;  %3414 = vmatpush1.bf16.msra.mxu0 %v6109_v2 }
 0x881   :  { %3378 = vmatprep.subr.bf16.mxu1 %v6114_v4  ;;  %3415 = vmatprep.subr.bf16.mxu0 %v6117_v5 }
 0x884   :  { %3379 = vmatpush1.bf16.msra.mxu1 %v6112_v6  ;;  %3416 = vmatpush1.bf16.msra.mxu0 %v6115_v7 }
 0x885   :  { %3380 = vmatprep.subr.bf16.mxu1 %v6120_v8  ;;  %3417 = vmatprep.subr.bf16.mxu0 %v6123_v9 }
 0x888   :  { %3381 = vmatpush1.bf16.msra.mxu1 %v6118_v10  ;;  %3418 = vmatpush1.bf16.msra.mxu0 %v6121_v11 }
 0x889   :  { %3382 = vmatprep.subr.bf16.mxu1 %v6126_v12  ;;  %3419 = vmatprep.subr.bf16.mxu0 %v6129_v13 }
 0x88c   :  { %3383 = vmatpush1.bf16.msra.mxu1 %v6124_v17  ;;  %3420 = vmatpush1.bf16.msra.mxu0 %v6127_v18 }
 0x88d   :  { %3384 = vmatprep.subr.bf16.mxu1 %v6132_v22  ;;  %3421 = vmatprep.subr.bf16.mxu0 %v6135_v24  ;;  %v7614_v22 = vsub.s32 0, %v7394_v62  ;;  %v7616_v24 = vld [vmem:[#allocation17] sm:$0xff] }
 0x890   :  { %3385 = vmatpush1.bf16.msra.mxu1 %v6130_v25  ;;  %3422 = vmatpush1.bf16.msra.mxu0 %v6133_v26  ;;  %v7619_v25 = vsub.s32 1, %v7394_v62  ;;  %v2356_v26 = vrot.slane %v7616_v24, %v7614_v22 }
 0x891   :  { %3423 = vmatprep.subr.bf16.mxu0 %v6138_v29  ;;  %3436 = vmatprep.subr.bf16.mxu1 %v6141_v30 }
 0x892   :  { %v2360_v30 = vrot.slane %v7616_v24, %v7619_v25 }
 0x894   :  { %3424 = vmatpush1.bf16.msra.mxu0 %v6136_v21 }
 0x895   :  { %3425 = vmatprep.subr.bf16.mxu0 %v6144_v23 }
 0x898   :  { %3426 = vmatpush1.bf16.msra.mxu0 %v6142_v31 }
 0x899   :  { %3477 = vmatprep.subr.bf16.mxu0 %v6153_v27 }
 0x8ce   :  { %v1240_v16 = vpop.f32.mrb[20].mxu0  ;;  %v1289_v32 = vpop.f32.mrb[24].mxu1 }
 0x8cf   :  { %v7585_v33 = vadd.f32 %v1289_v32, %v1240_v16  ;;  %v5806_v34 = vpop.f32.mrb[21].mxu0  ;;  %v5812_v35 = vpop.f32.mrb[25].mxu1 }
 0x8d0   :  { %v1243_v36 = vpop.f32.mrb[22].mxu0  ;;  %v1292_v37 = vpop.f32.mrb[26].mxu1  ;;  %v2363_v34 = vsub.s32 2, %v7394_v62 }
 0x8d1   :  { %v5807_v38 = vpop.f32.mrb[23].mxu0  ;;  %v5813_v39 = vpop.f32.mrb[27].mxu1  ;;  %v2367_v36 = vsub.s32 3, %v7394_v62 }
 0x8d6   :  { %v1510_v40 = vpop.f32.mrb[24].mxu0  ;;  %v1551_v41 = vpop.f32.mrb[28].mxu1 }
 0x8d7   :  { %v1512_v42 = vpop.f32.mrb[25].mxu0  ;;  %v1553_v43 = vpop.f32.mrb[29].mxu1 }
 0x8d8   :  { %v1514_v44 = vpop.f32.mrb[26].mxu0  ;;  %v1555_v45 = vpop.f32.mrb[30].mxu1 }
 0x8d9   :  { %v1515_v46 = vpop.f32.mrb[27].mxu0  ;;  %v1556_v47 = vpop.f32.mrb[31].mxu1  ;;  %v2364_v45 = vrot.slane %v7616_v24, %v2363_v34 }
 0x8de   :  { %v7587_v48 = vpop.f32.mrb[28].mxu0  ;;  %v7589_v49 = vpop.f32.mrb[32].mxu1 }
 0x8df   :  { %v7591_v51 = vpop.f32.mrb[29].mxu0  ;;  %v7593_v52 = vpop.f32.mrb[33].mxu1 }
 0x8e0   :  { %v1596_v53 = vpop.f32.mrb[30].mxu0  ;;  %v1637_v54 = vpop.f32.mrb[34].mxu1 }
 0x8e1   :  { %v1597_v55 = vpop.f32.mrb[31].mxu0  ;;  %v1638_v56 = vpop.f32.mrb[35].mxu1 }
 0x8e6   :  { %v7595_v57 = vpop.f32.mrb[32].mxu0  ;;  %v7597_v58 = vpop.f32.mrb[36].mxu1 }
 0x8e7   :  { %v7599_v59 = vpop.f32.mrb[33].mxu0  ;;  %v7601_v60 = vpop.f32.mrb[37].mxu1 }
 0x8e8   :  { %v1678_v61 = vpop.f32.mrb[34].mxu0  ;;  %v1719_v0 = vpop.f32.mrb[38].mxu1 }
 0x8e9   :  { %v1679_v1 = vpop.f32.mrb[35].mxu0  ;;  %v1720_v2 = vpop.f32.mrb[39].mxu1 }
 0x8ee   :  { %v7603_v4 = vpop.f32.mrb[36].mxu0  ;;  %v7605_v5 = vpop.f32.mrb[40].mxu1 }
 0x8ef   :  { %v7607_v6 = vpop.f32.mrb[37].mxu0  ;;  %v7609_v7 = vpop.f32.mrb[41].mxu1 }
 0x8f0   :  { %v1760_v8 = vpop.f32.mrb[38].mxu0  ;;  %v1801_v9 = vpop.f32.mrb[42].mxu1 }
 0x8f1   :  { %v1761_v10 = vpop.f32.mrb[39].mxu0  ;;  %v1802_v11 = vpop.f32.mrb[43].mxu1 }
 0x8f6   :  { %v7611_v12 = vpop.f32.mrb[40].mxu0 }
 0x8f7   :  { %v5818_v13 = vpop.f32.mrb[41].mxu0 }
 0x8f8   :  { %v1841_v17 = vpop.f32.mrb[42].mxu0 }
 0x8f9   :  { %v5819_v18 = vpop.f32.mrb[43].mxu0 }
 0x90a   :  { %v2221_v29 = vpop.f32.mrb[44].mxu1 }
 0x90b   :  { %v2222_v21 = vadd.f32 %v2221_v29, %v1510_v40  ;;  %v2223_v23 = vpop.f32.mrb[45].mxu1 }
 0x90c   :  { %v2224_v31 = vadd.f32 %v2223_v23, %v1512_v42  ;;  %v2225_v27 = vpop.f32.mrb[46].mxu1  ;;  %v2368_v42 = vrot.slane %v7616_v24, %v2367_v36 }
 0x90d   :  { %v2393_v16 = vadd.f32 %v2356_v26, %v2222_v21  ;;  %v2226_v32 = vpop.f32.mrb[47].mxu1 }
 0x90e   :  { %v2394_v35 = vadd.f32 %v2360_v30, %v2224_v31 }
 0x90f   :  { %v2401_v37 = vsel %vm2162_vm12, %v2393_v16, 0.0 }
 0x910   :  { %v2402_v38 = vrot.slane %v2401_v37, 4  ;;  %v2408_v39 = vsel %vm2162_vm12, %v2394_v35, 0.0 }
 0x911   :  { %v2409_v44 = vrot.slane %v2408_v39, 4 }
 0x912   :  { %v2403_v46 = vadd.f32 %v2402_v38, %v2401_v37  ;;  %v2262_v40 = vpop.f32.mrb[44].mxu0 }
 0x913   :  { %v2410_v47 = vadd.f32 %v2409_v44, %v2408_v39  ;;  %v2263_v53 = vadd.f32 %v2262_v40, %v1551_v41  ;;  %v2264_v54 = vpop.f32.mrb[45].mxu0  ;;  %v2371_v40 = vsub.s32 4, %v7394_v62 }
 0x914   :  { %v2404_v55 = vrot.slane %v2403_v46, 2  ;;  %v2265_v56 = vadd.f32 %v2264_v54, %v1553_v43  ;;  %v2266_v61 = vpop.f32.mrb[46].mxu0 }
 0x915   :  { %v2411_v0 = vrot.slane %v2410_v47, 2  ;;  %v2395_v1 = vadd.f32 %v2364_v45, %v2263_v53  ;;  %v2267_v2 = vpop.f32.mrb[47].mxu0 }
 0x916   :  { %v2405_v8 = vadd.f32 %v2404_v55, %v2403_v46  ;;  %v2396_v9 = vadd.f32 %v2368_v42, %v2265_v56  ;;  %v2372_v2 = vrot.slane %v7616_v24, %v2371_v40 }
 0x917   :  { %v2412_v10 = vadd.f32 %v2411_v0, %v2410_v47  ;;  %v2415_v11 = vsel %vm2162_vm12, %v2395_v1, 0.0 }
 0x918   :  { %v2406_v13 = vrot.slane %v2405_v8, 1  ;;  %v2416_v17 = vrot.slane %v2415_v11, 4  ;;  %v2422_v18 = vsel %vm2162_vm12, %v2396_v9, 0.0 }
 0x919   :  { %v2413_v26 = vrot.slane %v2412_v10, 1  ;;  %v2423_v29 = vrot.slane %v2422_v18, 4 }
 0x91a   :  { %v2407_v30 = vadd.f32 %v2406_v13, %v2405_v8  ;;  %v2417_v41 = vadd.f32 %v2416_v17, %v2415_v11  ;;  %v2379_v17 = vsub.s32 6, %v7394_v62 }
 0x91b   :  { %v2414_v21 = vadd.f32 %v2413_v26, %v2412_v10  ;;  %v2424_v23 = vadd.f32 %v2423_v29, %v2422_v18 }
 0x91c   :  { %v2458_v43 = vmul.f32 0.5, %v2407_v30  ;;  %v2418_v31 = vrot.slane %v2417_v41, 2 }
 0x91d   :  { %v2459_v27 = vmul.f32 0.5, %v2414_v21  ;;  %v2425_v32 = vrot.slane %v2424_v23, 2 }
 0x91e   :  { %v7633_v34 = vsub.f32 %v2393_v16, %v2458_v43  ;;  %v2419_v36 = vadd.f32 %v2418_v31, %v2417_v41  ;;  %v2375_v16 = vsub.s32 5, %v7394_v62 }
 0x91f   :  { %v7635_v37 = vsub.f32 %v2394_v35, %v2459_v27  ;;  %v2426_v38 = vadd.f32 %v2425_v32, %v2424_v23  ;;  %v2383_v32 = vsub.s32 7, %v7394_v62 }
 0x920   :  { %v2474_v39 = vmul.f32 %v7633_v34, %v7633_v34  ;;  %v2420_v44 = vrot.slane %v2419_v36, 1  ;;  %v2376_v13 = vrot.slane %v7616_v24, %v2375_v16 }
 0x921   :  { %v2475_v45 = vmul.f32 %v7635_v37, %v7635_v37  ;;  %v2427_v46 = vrot.slane %v2426_v38, 1 }
 0x922   :  { %v2482_v42 = vsel %vm2162_vm12, %v2474_v39, 0.0  ;;  %v2421_v47 = vadd.f32 %v2420_v44, %v2419_v36  ;;  %v2380_v39 = vrot.slane %v7616_v24, %v2379_v17  ;;  %v5336_v44 = vld [vmem:[#allocation14] ss:$0 sm:$0xff] }
 0x923   :  { %v2483_v53 = vrot.slane %v2482_v42, 4  ;;  %v2489_v35 = vsel %vm2162_vm12, %v2475_v45, 0.0  ;;  %v2428_v54 = vadd.f32 %v2427_v46, %v2426_v38 }
 0x924   :  { %v2490_v55 = vrot.slane %v2489_v35, 4  ;;  %v2460_v56 = vmul.f32 0.5, %v2421_v47 }
 0x925   :  { %v2484_v61 = vadd.f32 %v2483_v53, %v2482_v42  ;;  %v2461_v0 = vmul.f32 0.5, %v2428_v54 }
 0x926   :  { %v2491_v8 = vadd.f32 %v2490_v55, %v2489_v35  ;;  %v7646_v10 = vsub.f32 %v2395_v1, %v2460_v56  ;;  %v2303_v11 = vpop.f32.mrb[48].mxu1  ;;  %v2384_v56 = vrot.slane %v7616_v24, %v2383_v32 }
 0x927   :  { %v2485_v18 = vrot.slane %v2484_v61, 2  ;;  %v7650_v26 = vsub.f32 %v2396_v9, %v2461_v0  ;;  %v2304_v29 = vadd.f32 %v2303_v11, %v7587_v48  ;;  %v2305_v30 = vpop.f32.mrb[49].mxu1 }
 0x928   :  { %v2492_v41 = vrot.slane %v2491_v8, 2  ;;  %v2476_v21 = vmul.f32 %v7646_v10, %v7646_v10  ;;  %v2306_v23 = vadd.f32 %v2305_v30, %v7591_v51  ;;  %v2307_v43 = vpop.f32.mrb[50].mxu1 }
 0x929   :  { %v2486_v1 = vadd.f32 %v2485_v18, %v2484_v61  ;;  %v2477_v31 = vmul.f32 %v7650_v26, %v7650_v26  ;;  %v7658_v27 = vadd.f32 %v2372_v2, %v2304_v29  ;;  %v2308_v9 = vpop.f32.mrb[51].mxu1  ;;  %v7672_v61 = vadd.f32 %v5336_v44, %v7585_v33 }
 0x92a   :  { %v2493_v36 = vadd.f32 %v2492_v41, %v2491_v8  ;;  %v2496_v48 = vsel %vm2162_vm12, %v2476_v21, 0.0  ;;  %v7662_v38 = vadd.f32 %v2376_v13, %v2306_v23 }
 0x92b   :  { %v2487_v45 = vrot.slane %v2486_v1, 1  ;;  %v2497_v51 = vrot.slane %v2496_v48, 4  ;;  %v2503_v46 = vsel %vm2162_vm12, %v2477_v31, 0.0  ;;  %v2429_v40 = vsel %vm2162_vm12, %v7658_v27, 0.0 }
 0x92c   :  { %v2494_v42 = vrot.slane %v2493_v36, 1  ;;  %v2504_v47 = vrot.slane %v2503_v46, 4  ;;  %v2430_v16 = vrot.slane %v2429_v40, 4  ;;  %v2436_v53 = vsel %vm2162_vm12, %v7662_v38, 0.0 }
 0x92d   :  { %v2488_v35 = vadd.f32 %v2487_v45, %v2486_v1  ;;  %v2498_v54 = vadd.f32 %v2497_v51, %v2496_v48  ;;  %v2437_v55 = vrot.slane %v2436_v53, 4 }
 0x92e   :  { %v2495_v0 = vadd.f32 %v2494_v42, %v2493_v36  ;;  %v2505_v2 = vadd.f32 %v2504_v47, %v2503_v46  ;;  %v2431_v8 = vadd.f32 %v2430_v16, %v2429_v40  ;;  %v2344_v11 = vpop.f32.mrb[48].mxu0 }
 0x92f   :  { %v2538_v13 = vmul.f32 0.5, %v2488_v35  ;;  %v2499_v17 = vrot.slane %v2498_v54, 2  ;;  %v2438_v18 = vadd.f32 %v2437_v55, %v2436_v53  ;;  %v2345_v29 = vadd.f32 %v2344_v11, %v7589_v49  ;;  %v2346_v30 = vpop.f32.mrb[49].mxu0 }
 0x930   :  { %v2539_v41 = vmul.f32 0.5, %v2495_v0  ;;  %v2506_v21 = vrot.slane %v2505_v2, 2  ;;  %v2432_v23 = vrot.slane %v2431_v8, 2  ;;  %v2347_v43 = vadd.f32 %v2346_v30, %v7593_v52  ;;  %v2348_v1 = vpop.f32.mrb[50].mxu0 }
 0x931   :  { %v2546_v24 = vadd.f32 1e-05, %v2538_v13  ;;  %v2500_v31 = vadd.f32 %v2499_v17, %v2498_v54  ;;  %v2439_v33 = vrot.slane %v2438_v18, 2  ;;  %v7676_v32 = vadd.f32 %v2380_v39, %v2345_v29  ;;  %v2349_v9 = vpop.f32.mrb[51].mxu0 }
 0x932   :  { %v2547_v36 = vadd.f32 1e-05, %v2539_v41  ;;  %v2507_v48 = vadd.f32 %v2506_v21, %v2505_v2  ;;  %v2433_v44 = vadd.f32 %v2432_v23, %v2431_v8  ;;  %v2400_v45 = vadd.f32 %v2384_v56, %v2347_v43 }
 0x933   :  { %6334 = vrsqrt.f32 %v2546_v24  ;;  %v2501_v51 = vrot.slane %v2500_v31, 1  ;;  %v2440_v49 = vadd.f32 %v2439_v33, %v2438_v18  ;;  %v2443_v46 = vsel %vm2162_vm12, %v7676_v32, 0.0 }
 0x934   :  { %6336 = vrsqrt.f32 %v2547_v36  ;;  %v2508_v52 = vrot.slane %v2507_v48, 1  ;;  %v2444_v40 = vrot.slane %v2443_v46, 4  ;;  %v2450_v39 = vsel %vm2162_vm12, %v2400_v45, 0.0 }
 0x935   :  { %v2502_v42 = vadd.f32 %v2501_v51, %v2500_v31  ;;  %v2441_v47 = vrot.slane %v2440_v49, 1  ;;  %v2451_v35 = vrot.slane %v2450_v39, 4  ;;  %v1303_v54 = vsel %vm1302_vm14, %v7672_v61, 0.0 }
 0x936   :  { %v2509_v16 = vadd.f32 %v2508_v52, %v2507_v48  ;;  %v2445_v53 = vadd.f32 %v2444_v40, %v2443_v46  ;;  %v2434_v56 = vrot.slane %v2433_v44, 1  ;;  %v1304_v18 = vrot.slane %v1303_v54, 4 }
 0x937   :  { %v2540_v55 = vmul.f32 0.5, %v2502_v42  ;;  %v2442_v0 = vadd.f32 %v2441_v47, %v2440_v49  ;;  %v2452_v11 = vadd.f32 %v2451_v35, %v2450_v39  ;;  %v6139_v35 = vld [vmem:[#allocation19 + $0x200] ss:$8 sps:$4 sm:$0xff]  }
 0x938   :  { %v2541_v2 = vmul.f32 0.5, %v2509_v16  ;;  %v2446_v8 = vrot.slane %v2445_v53, 2  ;;  %v2435_v41 = vadd.f32 %v2434_v56, %v2433_v44  ;;  %v1305_v33 = vadd.f32 %v1304_v18, %v1303_v54  ;;  %v6145_v18 = vld [vmem:[#allocation19 + $0x210] ss:$8 sps:$4 sm:$0xff]  }
 0x939   :  { %v2548_v13 = vadd.f32 1e-05, %v2540_v55  ;;  %v2463_v17 = vmul.f32 0.5, %v2442_v0  ;;  %v2453_v30 = vrot.slane %v2452_v11, 2  ;;  %v6147_v0 = vld [vmem:[#allocation19 + $0x214] ss:$8 sps:$4 sm:$0xff]  }
 0x93a   :  { %v2549_v29 = vadd.f32 1e-05, %v2541_v2  ;;  %v2447_v23 = vadd.f32 %v2446_v8, %v2445_v53  ;;  %v2462_v48 = vmul.f32 0.5, %v2435_v41  ;;  %v1306_v42 = vrot.slane %v1305_v33, 2 }
 0x93b   :  { %6338 = vrsqrt.f32 %v2548_v13  ;;  %v7684_v21 = vsub.f32 %v7662_v38, %v2463_v17  ;;  %v2454_v43 = vadd.f32 %v2453_v30, %v2452_v11 }
 0x93c   :  { %6340 = vrsqrt.f32 %v2549_v29  ;;  %v2448_v46 = vrot.slane %v2447_v23, 1  ;;  %v7692_v16 = vsub.f32 %v7658_v27, %v2462_v48  ;;  %v1307_v8 = vadd.f32 %v1306_v42, %v1305_v33  ;;  %v6151_v48 = vld [vmem:[#allocation19 + $0x300] ss:$8 sps:$4 sm:$0xff]  }
 0x93d   :  { %v6335_v1 = vpop.eup %6334  ;;  %v2479_v24 = vmul.f32 %v7684_v21, %v7684_v21  ;;  %v2455_v36 = vrot.slane %v2454_v43, 1 }
 0x93e   :  { %v6337_v31 = vpop.eup %6336  ;;  %v2562_v9 = vmul.f32 %v6335_v1, %v7633_v34  ;;  %v2449_v54 = vadd.f32 %v2448_v46, %v2447_v23  ;;  %v2478_v27 = vmul.f32 %v7692_v16, %v7692_v16  ;;  %v6159_v46 = vld [vmem:[#allocation19 + $0x314] ss:$8 sps:$4 sm:$0xff]  }
 0x93f   :  { %v2517_v51 = vsel %vm2162_vm12, %v2479_v24, 0.0  ;;  %v2563_v44 = vmul.f32 %v6337_v31, %v7635_v37  ;;  %v2456_v52 = vadd.f32 %v2455_v36, %v2454_v43  ;;  %v6150_v43 = vld [vmem:[#allocation19 + $0x224] ss:$8 sps:$4 sm:$0xff]   ;;  %v1308_v24 = vrot.slane %v1307_v8, 1  ;;  %v6148_v36 = vld [vmem:[#allocation19 + $0x220] ss:$8 sps:$4 sm:$0xff]  }
 0x940   :  { %v2570_v49 = vmax.f32 %v2562_v9, 0.0  ;;  %v2518_v38 = vrot.slane %v2517_v51, 4  ;;  %v2464_v41 = vmul.f32 0.5, %v2449_v54  ;;  %v6165_v54 = vld [vmem:[#allocation19 + $0x324] ss:$8 sps:$4 sm:$0xff]  }
 0x941   :  { %v2571_v40 = vmax.f32 %v2563_v44, 0.0  ;;  %v2465_v39 = vmul.f32 0.5, %v2456_v52 }
 0x942   :  { %v2519_v47 = vadd.f32 %v2518_v38, %v2517_v51  ;;  %v2578_v56 = vpack.c.bf16 %v2570_v49, %v2570_v49  ;;  %v2510_v51 = vsel %vm2162_vm12, %v2478_v27, 0.0  ;;  %v6156_v38 = vld [vmem:[#allocation19 + $0x234] ss:$8 sps:$4 sm:$0xff]  }
 0x943   :  { %v2579_v53 = vpack.c.bf16 %v2571_v40, %v2571_v40  ;;  %v7694_v55 = vsub.f32 %v2400_v45, %v2465_v39  ;;  %v1309_v40 = vadd.f32 %v1308_v24, %v1307_v8  ;;  %v6160_v8 = vld [vmem:[#allocation19 + $0x240] ss:$8 sps:$4 sm:$0xff]   ;;  %v6171_v27 = vld [vmem:[#allocation19 + $0x334] ss:$8 sps:$4 sm:$0xff]  }
 0x944   :  { %v2520_v34 = vrot.slane %v2519_v47, 2 }
 0x945   :  { %v6339_v37 = vpop.eup %6338  ;;  %3386 = vmatprep.mubr.bf16.mxu1 %v2579_v53  ;;  %v2481_v17 = vmul.f32 %v7694_v55, %v7694_v55  ;;  %v6154_v53 = vld [vmem:[#allocation19 + $0x230] ss:$8 sps:$4 sm:$0xff]  }
 0x946   :  { %v6341_v2 = vpop.eup %6340  ;;  %v2564_v11 = vmul.f32 %v6339_v37, %v7646_v10  ;;  %v2521_v13 = vadd.f32 %v2520_v34, %v2519_v47  ;;  %3387 = vmatmul.mubr.bf16.vlgmr.msra.gmra.mrb[52].mxu1 %v2578_v56  ;;  %v2511_v47 = vrot.slane %v2510_v51, 4  ;;  %v6162_v34 = vld [vmem:[#allocation19 + $0x244] ss:$8 sps:$4 sm:$0xff]  }
 0x947   :  { %3437 = vmatpush1.bf16.msra.mxu1 %v6139_v35  ;;  %v2565_v45 = vmul.f32 %v6341_v2, %v7650_v26  ;;  %v2531_v23 = vsel %vm2162_vm12, %v2481_v17, 0.0  ;;  %v7705_v26 = vsub.f32 %v7676_v32, %v2464_v41  ;;  %v6157_v35 = vld [vmem:[#allocation19 + $0x310] ss:$8 sps:$4 sm:$0xff]   ;;  %v6168_v17 = vld [vmem:[#allocation19 + $0x254] ss:$8 sps:$4 sm:$0xff]  }
 0x948   :  { %v2572_v29 = vmax.f32 %v2564_v11, 0.0  ;;  %v2522_v30 = vrot.slane %v2521_v13, 1  ;;  %3438 = vmatprep.subr.bf16.mxu1 %v6147_v0  ;;  %v2532_v10 = vrot.slane %v2531_v23, 4  ;;  %v1311_v0 = vmul.f32 0.25, %v1309_v40  ;;  %v6163_v11 = vld [vmem:[#allocation19 + $0x320] ss:$8 sps:$4 sm:$0xff]  }
 0x949   :  { %v2573_v1 = vmax.f32 %v2565_v45, 0.0  ;;  %v2480_v32 = vmul.f32 %v7705_v26, %v7705_v26  ;;  %v2512_v37 = vadd.f32 %v2511_v47, %v2510_v51  ;;  %v6180_v51 = vld [vmem:[#allocation19 + $0x274] ss:$8 sps:$4 sm:$0xff]   ;;  %v6181_v47 = vld [vmem:[#allocation19 + $0x350] ss:$8 sps:$4 sm:$0xff]  }
 0x94a   :  { %v2523_v31 = vadd.f32 %v2522_v30, %v2521_v13  ;;  %v2533_v33 = vadd.f32 %v2532_v10, %v2531_v23  ;;  %v2580_v49 = vpack.c.bf16 %v2572_v29, %v2572_v29  ;;  %v7711_v45 = vsub.f32 %v7672_v61, %v1311_v0  ;;  %v6166_v29 = vld [vmem:[#allocation19 + $0x250] ss:$8 sps:$4 sm:$0xff]   ;;  %v6174_v10 = vld [vmem:[#allocation19 + $0x264] ss:$8 sps:$4 sm:$0xff]   ;;  %v6172_v61 = vld [vmem:[#allocation19 + $0x260] ss:$8 sps:$4 sm:$0xff]  }
 0x94b   :  { %3439 = vmatpush1.bf16.msra.mxu1 %v6145_v18  ;;  %v2581_v9 = vpack.c.bf16 %v2573_v1, %v2573_v1  ;;  %v2524_v13 = vsel %vm2162_vm12, %v2480_v32, 0.0  ;;  %v2513_v30 = vrot.slane %v2512_v37, 2  ;;  %v6177_v1 = vld [vmem:[#allocation19 + $0x344] ss:$8 sps:$4 sm:$0xff]   ;;  %v6192_v0 = vld [vmem:[#allocation19 + $0x294] ss:$8 sps:$4 sm:$0xff]  }
 0x94c   :  { %v2543_v44 = vmul.f32 0.5, %v2523_v31  ;;  %3440 = vmatprep.subr.bf16.mxu1 %v6150_v43  ;;  %v2534_v52 = vrot.slane %v2533_v33, 2  ;;  %v2525_v41 = vrot.slane %v2524_v13, 4  ;;  %v6169_v43 = vld [vmem:[#allocation19 + $0x330] ss:$8 sps:$4 sm:$0xff]   ;;  %v1313_v31 = vmul.f32 %v7711_v45, %v7711_v45 }
 0x94d   :  { %3427 = vmatprep.mubr.bf16.mxu0 %v2581_v9 }
 0x94e   :  { %v2551_v42 = vadd.f32 1e-05, %v2543_v44  ;;  %3428 = vmatmul.mubr.bf16.vlgmr.msra.gmra.mrb[52].mxu0 %v2580_v49  ;;  %v2535_v39 = vadd.f32 %v2534_v52, %v2533_v33  ;;  %v2514_v33 = vadd.f32 %v2513_v30, %v2512_v37  ;;  %v2526_v9 = vadd.f32 %v2525_v41, %v2524_v13  ;;  %v6183_v44 = vld [vmem:[#allocation19 + $0x354] ss:$8 sps:$4 sm:$0xff]   ;;  %v6198_v30 = vld [vmem:[#allocation19 + $0x2a4] ss:$8 sps:$4 sm:$0xff]  }
 0x94f   :  { %3441 = vmatpush1.bf16.msra.mxu1 %v6148_v36  ;;  %3478 = vmatpush1.bf16.msra.mxu0 %v6151_v48  ;;  %v6175_v36 = vld [vmem:[#allocation19 + $0x340] ss:$8 sps:$4 sm:$0xff]   ;;  %v6195_v37 = vld [vmem:[#allocation19 + $0x374] ss:$8 sps:$4 sm:$0xff]   ;;  %v6201_v41 = vld [vmem:[#allocation19 + $0x384] ss:$8 sps:$4 sm:$0xff]  }
 0x950   :  { %6342 = vrsqrt.f32 %v2551_v42  ;;  %3442 = vmatprep.subr.bf16.mxu1 %v6156_v38  ;;  %3479 = vmatprep.subr.bf16.mxu0 %v6159_v46  ;;  %v2536_v56 = vrot.slane %v2535_v39, 1  ;;  %v6178_v38 = vld [vmem:[#allocation19 + $0x270] ss:$8 sps:$4 sm:$0xff]   ;;  %v1314_v46 = vsel %vm1302_vm14, %v1313_v31, 0.0  ;;  %v2515_v52 = vrot.slane %v2514_v33, 1 }
 0x951   :  { %v2527_v40 = vrot.slane %v2526_v9, 2  ;;  %v6207_v31 = vld [vmem:[#allocation19 + $0x394] ss:$8 sps:$4 sm:$0xff]  }
 0x952   :  { %v2537_v2 = vadd.f32 %v2536_v56, %v2535_v39  ;;  %v6186_v39 = vld [vmem:[#allocation19 + $0x284] ss:$8 sps:$4 sm:$0xff]   ;;  %v2516_v32 = vadd.f32 %v2515_v52, %v2514_v33  ;;  %v6187_v56 = vld [vmem:[#allocation19 + $0x360] ss:$8 sps:$4 sm:$0xff]   ;;  %v6216_v52 = vld [vmem:[#allocation19 + $0x2d4] ss:$8 sps:$4 sm:$0xff]  }
 0x953   :  { %3443 = vmatpush1.bf16.msra.mxu1 %v6154_v53  ;;  %3480 = vmatpush1.bf16.msra.mxu0 %v6157_v35  ;;  %v6189_v53 = vld [vmem:[#allocation19 + $0x364] ss:$8 sps:$4 sm:$0xff]  }
 0x954   :  { %3444 = vmatprep.subr.bf16.mxu1 %v6162_v34  ;;  %3481 = vmatprep.subr.bf16.mxu0 %v6165_v54  ;;  %v2545_v18 = vmul.f32 0.5, %v2537_v2  ;;  %v2528_v34 = vadd.f32 %v2527_v40, %v2526_v9  ;;  %v6184_v54 = vld [vmem:[#allocation19 + $0x280] ss:$8 sps:$4 sm:$0xff]   ;;  %v2542_v13 = vmul.f32 0.5, %v2516_v32  ;;  %v6219_v40 = vld [vmem:[#allocation19 + $0x3b4] ss:$8 sps:$4 sm:$0xff]  }
 0x956   :  { %v2553_v23 = vadd.f32 1e-05, %v2545_v18  ;;  %v6193_v18 = vld [vmem:[#allocation19 + $0x370] ss:$8 sps:$4 sm:$0xff]  }
 0x957   :  { %3445 = vmatpush1.bf16.msra.mxu1 %v6160_v8  ;;  %3482 = vmatpush1.bf16.msra.mxu0 %v6163_v11 }
 0x958   :  { %3446 = vmatprep.subr.bf16.mxu1 %v6168_v17  ;;  %3483 = vmatprep.subr.bf16.mxu0 %v6171_v27  ;;  %6344 = vrsqrt.f32 %v2553_v23  ;;  %v2529_v17 = vrot.slane %v2528_v34, 1  ;;  %v6190_v27 = vld [vmem:[#allocation19 + $0x290] ss:$8 sps:$4 sm:$0xff]  }
 0x95a   :  { %v6343_v24 = vpop.eup %6342 }
 0x95b   :  { %3447 = vmatpush1.bf16.msra.mxu1 %v6166_v29  ;;  %3484 = vmatpush1.bf16.msra.mxu0 %v6169_v43  ;;  %v2567_v48 = vmul.f32 %v6343_v24, %v7684_v21  ;;  %v1315_v21 = vrot.slane %v1314_v46, 4  ;;  %v2550_v43 = vadd.f32 1e-05, %v2542_v13  ;;  %v6204_v24 = vld [vmem:[#allocation19 + $0x2b4] ss:$8 sps:$4 sm:$0xff]  }
 0x95c   :  { %3448 = vmatprep.subr.bf16.mxu1 %v6174_v10  ;;  %3485 = vmatprep.subr.bf16.mxu0 %v6177_v1  ;;  %v2530_v10 = vadd.f32 %v2529_v17, %v2528_v34  ;;  %v6199_v1 = vld [vmem:[#allocation19 + $0x380] ss:$8 sps:$4 sm:$0xff]   ;;  %v6234_v17 = vld [vmem:[#allocation19 + $0x3e4] ss:$8 sps:$4 sm:$0xff]  }
 0x95d   :  { %v2575_v49 = vmax.f32 %v2567_v48, 0.0  ;;  %v1316_v8 = vadd.f32 %v1315_v21, %v1314_v46  ;;  %6346 = vrsqrt.f32 %v2550_v43  ;;  %v6210_v48 = vld [vmem:[#allocation19 + $0x2c4] ss:$8 sps:$4 sm:$0xff]   ;;  %v6211_v46 = vld [vmem:[#allocation19 + $0x3a0] ss:$8 sps:$4 sm:$0xff]  }
 0x95e   :  { %v2544_v9 = vmul.f32 0.5, %v2530_v10  ;;  %v6225_v21 = vld [vmem:[#allocation19 + $0x3c4] ss:$8 sps:$4 sm:$0xff]   ;;  %v6220_v34 = vld [vmem:[#allocation19 + $0x2e0] ss:$8 sps:$4 sm:$0xff]  }
 0x95f   :  { %3449 = vmatpush1.bf16.msra.mxu1 %v6172_v61  ;;  %3486 = vmatpush1.bf16.msra.mxu0 %v6175_v36  ;;  %v2583_v42 = vpack.c.bf16 %v2575_v49, %v2575_v49  ;;  %v1317_v23 = vrot.slane %v1316_v8, 2  ;;  %v6202_v61 = vld [vmem:[#allocation19 + $0x2b0] ss:$8 sps:$4 sm:$0xff]  }
 0x960   :  { %3450 = vmatprep.subr.bf16.mxu1 %v6180_v51  ;;  %3487 = vmatprep.subr.bf16.mxu0 %v6183_v44  ;;  %v6205_v36 = vld [vmem:[#allocation19 + $0x390] ss:$8 sps:$4 sm:$0xff]   ;;  %v6213_v51 = vld [vmem:[#allocation19 + $0x3a4] ss:$8 sps:$4 sm:$0xff]   ;;  %v2552_v49 = vadd.f32 1e-05, %v2544_v9 }
 0x961   :  { %3468 = vmatprep.mubr.bf16.mxu1 %v2583_v42  ;;  %v1318_v33 = vadd.f32 %v1317_v23, %v1316_v8  ;;  %v6226_v8 = vld [vmem:[#allocation19 + $0x2f0] ss:$8 sps:$4 sm:$0xff]   ;;  %v7725_v23 = vmul.u32 2, %v7401_v3 }
 0x962   :  { %v6345_v35 = vpop.eup %6344  ;;  %6348 = vrsqrt.f32 %v2552_v49  ;;  %v6235_v10 = vld [vmem:[#allocation19 + $0x3f0] ss:$8 sps:$4 sm:$0xff]  }
 0x963   :  { %3451 = vmatpush1.bf16.msra.mxu1 %v6178_v38  ;;  %3488 = vmatpush1.bf16.msra.mxu0 %v6181_v47  ;;  %v2569_v2 = vmul.f32 %v6345_v35, %v7694_v55  ;;  %v6196_v55 = vld [vmem:[#allocation19 + $0x2a0] ss:$8 sps:$4 sm:$0xff]   ;;  %v1319_v44 = vrot.slane %v1318_v33, 1  ;;  %v6214_v47 = vld [vmem:[#allocation19 + $0x2d0] ss:$8 sps:$4 sm:$0xff]   ;;  %vm3700_vm15 = vcmp.ge.s32.totalorder %v7394_v62, %v7725_v23  ;;  %vm3579_vm9 = vcmp.eq.s32.totalorder %v7394_v62, %v7725_v23 }
 0x964   :  { %3452 = vmatprep.subr.bf16.mxu1 %v6186_v39  ;;  %3489 = vmatprep.subr.bf16.mxu0 %v6189_v53  ;;  %v6208_v38 = vld [vmem:[#allocation19 + $0x2c0] ss:$8 sps:$4 sm:$0xff]   ;;  %v6217_v39 = vld [vmem:[#allocation19 + $0x3b0] ss:$8 sps:$4 sm:$0xff]   ;;  %v6222_v53 = vld [vmem:[#allocation19 + $0x2e4] ss:$8 sps:$4 sm:$0xff]  }
 0x965   :  { %v2577_v11 = vmax.f32 %v2569_v2, 0.0  ;;  %v1320_v42 = vadd.f32 %v1319_v44, %v1318_v33 }
 0x967   :  { %3453 = vmatpush1.bf16.msra.mxu1 %v6184_v54  ;;  %3490 = vmatpush1.bf16.msra.mxu0 %v6187_v56  ;;  %v2585_v29 = vpack.c.bf16 %v2577_v11, %v2577_v11  ;;  %v6347_v35 = vpop.eup %6346  ;;  %v1321_v32 = vmul.f32 0.25, %v1320_v42  ;;  %v6223_v54 = vld [vmem:[#allocation19 + $0x3c0] ss:$8 sps:$4 sm:$0xff]   ;;  %v6229_v11 = vld [vmem:[#allocation19 + $0x3d0] ss:$8 sps:$4 sm:$0xff]  }
 0x968   :  { %3454 = vmatprep.subr.bf16.mxu1 %v6192_v0  ;;  %3491 = vmatprep.subr.bf16.mxu0 %v6195_v37  ;;  %v2566_v56 = vmul.f32 %v6347_v35, %v7692_v16  ;;  %v6228_v0 = vld [vmem:[#allocation19 + $0x2f4] ss:$8 sps:$4 sm:$0xff]   ;;  %v6232_v16 = vld [vmem:[#allocation19 + $0x3e0] ss:$8 sps:$4 sm:$0xff]  }
 0x969   :  { %3509 = vmatprep.mubr.bf16.mxu0 %v2585_v29  ;;  %v6231_v37 = vld [vmem:[#allocation19 + $0x3d4] ss:$8 sps:$4 sm:$0xff]   ;;  %v1322_v2 = vadd.f32 1e-05, %v1321_v32 }
 0x96a   :  { %v2574_v13 = vmax.f32 %v2566_v56, 0.0 }
 0x96b   :  { %3455 = vmatpush1.bf16.msra.mxu1 %v6190_v27  ;;  %3492 = vmatpush1.bf16.msra.mxu0 %v6193_v18  ;;  %v7720_v18 = vadd.s32 1, %v7401_v3  ;;  %6350 = vrsqrt.f32 %v1322_v2  ;;  %v3518_v2 = vld [vmem:[#allocation20] sm:$0x3] }
 0x96c   :  { %3456 = vmatprep.subr.bf16.mxu1 %v6198_v30  ;;  %3493 = vmatprep.subr.bf16.mxu0 %v6201_v41  ;;  %v6349_v27 = vpop.eup %6348  ;;  %v2582_v30 = vpack.c.bf16 %v2574_v13, %v2574_v13  ;;  %v6237_v41 = vld [vmem:[#allocation19 + $0x3f4] ss:$8 sps:$4 sm:$0xff]  }
 0x96d   :  { %v2568_v29 = vmul.f32 %v6349_v27, %v7705_v26  ;;  %v3702_v43 = vmul.u32 2, %v7720_v18  ;;  %v3707_v26 = vpack.c.bf16 %v7597_v58, %v7597_v58 }
 0x96f   :  { %3457 = vmatpush1.bf16.msra.mxu1 %v6196_v55  ;;  %3494 = vmatpush1.bf16.msra.mxu0 %v6199_v1  ;;  %v2576_v55 = vmax.f32 %v2568_v29, 0.0  ;;  %vm3703_vm2 = vcmp.lt.s32.totalorder %v7394_v62, %v3702_v43  ;;  %v3708_v1 = vpack.c.bf16 %v7601_v60, %v7601_v60  ;;  %v3713_v9 = vsel %vm3590_vm3, %v3707_v26, 0 }
 0x970   :  { %3458 = vmatprep.subr.bf16.mxu1 %v6204_v24  ;;  %3495 = vmatprep.subr.bf16.mxu0 %v6207_v31  ;;  %vm3704_vm4 = vmand %vm3700_vm15, %vm3703_vm2  ;;  %v6240_v31 = vld [vmem:[#allocation23 + $0x4] ss:$8 sps:$4 sm:$0xff]   ;;  %vm4392_vm15 = vcmp.eq.s32.totalorder %v7397_v63, %v7725_v23 }
 0x971   :  { %v2584_v24 = vpack.c.bf16 %v2576_v55, %v2576_v55 }
 0x973   :  { %3459 = vmatpush1.bf16.msra.mxu1 %v6202_v61  ;;  %3496 = vmatpush1.bf16.msra.mxu0 %v6205_v36  ;;  %v3705_v61 = vsel %vm3704_vm4, 1.0, %v7017_v14  ;;  %v6238_v36 = vld [vmem:[#allocation23] ss:$8 sps:$4 sm:$0xff]  }
 0x974   :  { %3460 = vmatprep.subr.bf16.mxu1 %v6210_v48  ;;  %3497 = vmatprep.subr.bf16.mxu0 %v6213_v51  ;;  %v3706_v60 = vpack.c.bf16 %v3705_v61, %v3705_v61 }
 0x975   :  { %v6351_v33 = vpop.eup %6350 }
 0x976   :  { %v1324_v58 = vmul.f32 %v6351_v33, %v7711_v45 }
 0x977   :  { %3461 = vmatpush1.bf16.msra.mxu1 %v6208_v38  ;;  %3498 = vmatpush1.bf16.msra.mxu0 %v6211_v46 }
 0x978   :  { %3462 = vmatprep.subr.bf16.mxu1 %v6216_v52  ;;  %3499 = vmatprep.subr.bf16.mxu0 %v6219_v40  ;;  %v1325_v48 = vmul.f32 0.2, %v1324_v58 }
 0x97a   :  { %v1326_v51 = vmax.f32 %v1324_v58, %v1325_v48 }
 0x97b   :  { %3463 = vmatpush1.bf16.msra.mxu1 %v6214_v47  ;;  %3500 = vmatpush1.bf16.msra.mxu0 %v6217_v39 }
 0x97c   :  { %3464 = vmatprep.subr.bf16.mxu1 %v6222_v53  ;;  %3501 = vmatprep.subr.bf16.mxu0 %v6225_v21  ;;  %v1327_v44 = vpack.c.bf16 %v1326_v51, %v1326_v51 }
 0x97f   :  { %3465 = vmatpush1.bf16.msra.mxu1 %v6220_v34  ;;  %3502 = vmatpush1.bf16.msra.mxu0 %v6223_v54 }
 0x980   :  { %3466 = vmatprep.subr.bf16.mxu1 %v6228_v0  ;;  %3503 = vmatprep.subr.bf16.mxu0 %v6231_v37 }
 0x983   :  { %3467 = vmatpush1.bf16.msra.mxu1 %v6226_v8  ;;  %3504 = vmatpush1.bf16.msra.mxu0 %v6229_v11 }
 0x984   :  { %3505 = vmatprep.subr.bf16.mxu0 %v6234_v17  ;;  %5820 = vmatprep.subr.bf16.mxu1 %v7017_v14 }
 0x986   :  { %3469 = vmatmul.mubr.bf16.vlgmr.msra.gmra.mrb[56].mxu1 %v2582_v30 }
 0x987   :  { %3506 = vmatpush1.bf16.msra.mxu0 %v6232_v16  ;;  %5822 = vmatprep.mubr.msk.bf16.mxu1 %vm7018_vm0, %v7017_v14 }
 0x988   :  { %3507 = vmatprep.subr.bf16.mxu0 %v6237_v41 }
 0x98b   :  { %3508 = vmatpush1.bf16.msra.mxu0 %v6235_v10 }
 0x98c   :  { %5557 = vmatprep.subr.msk.bf16.mxu0 %vm3590_vm3, %v3708_v1 }
 0x98e   :  { %3510 = vmatmul.mubr.bf16.vlgmr.msra.gmra.mrb[56].mxu0 %v2584_v24 }
 0x98f   :  { %3719 = vmatpush1.bf16.msra.mxu0 %v3713_v9  ;;  %3750 = vmatprep.mubr.bf16.mxu0 %v7020_v50 }
 0x990   :  { %3772 = vmatprep.subr.bf16.mxu0 %v6240_v31 }
 0x996   :  { %5558 = vmatmul.mubr.msk.bf16.vlgmr.msra.gmra.mrb[60].mxu0 %vm7929_vm5, %v3706_v60 }
 0x997   :  { %3773 = vmatpush1.bf16.msra.mxu0 %v6238_v36  ;;  %3804 = vmatprep.mubr.bf16.mxu0 %v7020_v50 }
 0x998   :  { %5832 = vmatprep.subr.bf16.mxu0 %v7017_v14 }
 0x99e   :  { %5561 = vmatmul.mubr.msk.bf16.vlgmr.msra.gmra.mrb[64].mxu0 %vm565_vm1, %v1327_v44 }
 0x99f   :  { %5834 = vmatprep.mubr.msk.bf16.mxu0 %vm7018_vm0, %v7017_v14 }
 0xa19   :  { %v3388_v45 = vpop.f32.mrb[52].mxu1 }
 0xa1a   :  { %v3389_v49 = vadd.f32 %v3388_v45, %v7595_v57  ;;  %v3390_v38 = vpop.f32.mrb[53].mxu1  ;;  %v3523_v57 = vrot.slane %v3518_v2, %v7614_v22 }
 0xa1b   :  { %v3391_v46 = vadd.f32 %v3390_v38, %v7599_v59  ;;  %v3392_v52 = vpop.f32.mrb[54].mxu1  ;;  %v3527_v59 = vrot.slane %v3518_v2, %v7619_v25 }
 0xa1c   :  { %v3393_v40 = vpop.f32.mrb[55].mxu1 }
 0xa21   :  { %v3429_v42 = vpop.f32.mrb[52].mxu0 }
 0xa22   :  { %v3430_v47 = vadd.f32 %v3429_v42, %v3389_v49  ;;  %v3431_v39 = vpop.f32.mrb[53].mxu0 }
 0xa23   :  { %v3432_v53 = vadd.f32 %v3431_v39, %v3391_v46  ;;  %v3433_v21 = vpop.f32.mrb[54].mxu0 }
 0xa24   :  { %v3434_v35 = vpop.f32.mrb[55].mxu0 }
 0xa59   :  { %v3470_v32 = vpop.f32.mrb[56].mxu1 }
 0xa5a   :  { %v3471_v34 = vadd.f32 %v3470_v32, %v3430_v47  ;;  %v3472_v54 = vpop.f32.mrb[57].mxu1 }
 0xa5b   :  { %v3473_v56 = vadd.f32 %v3472_v54, %v3432_v53  ;;  %v3474_v0 = vpop.f32.mrb[58].mxu1 }
 0xa5c   :  { %v3475_v37 = vpop.f32.mrb[59].mxu1 }
 0xa61   :  { %v3511_v8 = vpop.f32.mrb[56].mxu0 }
 0xa62   :  { %v3512_v11 = vadd.f32 %v3511_v8, %v3471_v34  ;;  %v3513_v13 = vpop.f32.mrb[57].mxu0 }
 0xa63   :  { %v3514_v17 = vadd.f32 %v3513_v13, %v3473_v56  ;;  %v3515_v27 = vpop.f32.mrb[58].mxu0 }
 0xa64   :  { %v3530_v16 = vadd.f32 %v3523_v57, %v3512_v11  ;;  %v3516_v29 = vpop.f32.mrb[59].mxu0 }
 0xa65   :  { %v3531_v30 = vadd.f32 %v3527_v59, %v3514_v17 }
 0xa66   :  { %v3532_v41 = vsel %vm2162_vm12, %v3530_v16, 0.0 }
 0xa67   :  { %v3533_v43 = vrot.slane %v3532_v41, 4  ;;  %v3539_v10 = vsel %vm2162_vm12, %v3531_v30, 0.0 }
 0xa68   :  { %v3540_v55 = vrot.slane %v3539_v10, 4 }
 0xa69   :  { %v3534_v26 = vadd.f32 %v3533_v43, %v3532_v41  ;;  %v7754_v1 = vpop.f32.mrb[60].mxu0  ;;  %v7765_v41 = vadd.s32 1, %v7725_v23 }
 0xa6a   :  { %v3541_v24 = vadd.f32 %v3540_v55, %v3539_v10  ;;  %v7756_v31 = vpop.f32.mrb[61].mxu0 }
 0xa6b   :  { %v3535_v33 = vrot.slane %v3534_v26, 2  ;;  %v3756_v9 = vpop.f32.mrb[62].mxu0  ;;  %vm3583_vm6 = vcmp.eq.s32.totalorder %v7394_v62, %v7765_v41 }
 0xa6c   :  { %v3542_v61 = vrot.slane %v3541_v24, 2  ;;  %v3757_v58 = vpop.f32.mrb[63].mxu0  ;;  %v7770_v9 = vsel %vm3583_vm6, 1.0, %v7017_v14 }
 0xa6d   :  { %v3536_v60 = vadd.f32 %v3535_v33, %v3534_v26 }
 0xa6e   :  { %v3543_v36 = vadd.f32 %v3542_v61, %v3541_v24 }
 0xa6f   :  { %v3537_v48 = vrot.slane %v3536_v60, 1 }
 0xa70   :  { %v3544_v51 = vrot.slane %v3543_v36, 1 }
 0xa71   :  { %v3538_v44 = vadd.f32 %v3537_v48, %v3536_v60  ;;  %v7758_v45 = vpop.f32.mrb[64].mxu0  ;;  %v7775_v60 = vpack.c.bf16 %v7770_v9, %v7770_v9  ;;  %v6243_v48 = vld [vmem:[#allocation22 + $0x4] ss:$8 sps:$4 sm:$0xff]  }
 0xa72   :  { %v3545_v49 = vadd.f32 %v3544_v51, %v3543_v36  ;;  %v7760_v38 = vpop.f32.mrb[65].mxu0 }
 0xa73   :  { %v3546_v46 = vmul.f32 0.5, %v3538_v44  ;;  %v3810_v52 = vpop.f32.mrb[66].mxu0  ;;  %v7786_v44 = vsel %vm3579_vm9, 1.0, %v7017_v14 }
 0xa74   :  { %v3547_v40 = vmul.f32 0.5, %v3545_v49  ;;  %v3811_v42 = vpop.f32.mrb[67].mxu0  ;;  %v7790_v49 = vpack.c.bf16 %v7786_v44, %v7786_v44  ;;  %v6246_v52 = vld [vmem:[#allocation22 + $0x14] ss:$8 sps:$4 sm:$0xff]  }
 0xa75   :  { %v3548_v47 = vsub.f32 %v3530_v16, %v3546_v46  ;;  %v6241_v46 = vld [vmem:[#allocation22] ss:$8 sps:$4 sm:$0xff]   ;;  %v6249_v42 = vld [vmem:[#allocation22 + $0x24] ss:$8 sps:$4 sm:$0xff]  }
 0xa76   :  { %v3549_v39 = vsub.f32 %v3531_v30, %v3547_v40  ;;  %v6244_v40 = vld [vmem:[#allocation22 + $0x10] ss:$8 sps:$4 sm:$0xff]  }
 0xa77   :  { %v3550_v53 = vmul.f32 %v3548_v47, %v3548_v47 }
 0xa78   :  { %v3551_v21 = vmul.f32 %v3549_v39, %v3549_v39 }
 0xa79   :  { %v3552_v35 = vsel %vm2162_vm12, %v3550_v53, 0.0  ;;  %v6250_v53 = vld [vmem:[#allocation22 + $0x30] ss:$8 sps:$4 sm:$0xff]  }
 0xa7a   :  { %v3553_v32 = vrot.slane %v3552_v35, 4  ;;  %v3559_v34 = vsel %vm2162_vm12, %v3551_v21, 0.0  ;;  %v6255_v21 = vld [vmem:[#allocation22 + $0x44] ss:$8 sps:$4 sm:$0xff]  }
 0xa7b   :  { %v3560_v54 = vrot.slane %v3559_v34, 4 }
 0xa7c   :  { %v3554_v56 = vadd.f32 %v3553_v32, %v3552_v35  ;;  %v6253_v35 = vld [vmem:[#allocation22 + $0x40] ss:$8 sps:$4 sm:$0xff]   ;;  %v6258_v32 = vld [vmem:[#allocation22 + $0x54] ss:$8 sps:$4 sm:$0xff]  }
 0xa7d   :  { %v3561_v0 = vadd.f32 %v3560_v54, %v3559_v34  ;;  %v6256_v34 = vld [vmem:[#allocation22 + $0x50] ss:$8 sps:$4 sm:$0xff]   ;;  %v6261_v54 = vld [vmem:[#allocation22 + $0x64] ss:$8 sps:$4 sm:$0xff]  }
 0xa7e   :  { %v3555_v37 = vrot.slane %v3554_v56, 2 }
 0xa7f   :  { %v3562_v2 = vrot.slane %v3561_v0, 2 }
 0xa80   :  { %v3556_v57 = vadd.f32 %v3555_v37, %v3554_v56  ;;  %v6259_v56 = vld [vmem:[#allocation22 + $0x60] ss:$8 sps:$4 sm:$0xff]   ;;  %v6262_v37 = vld [vmem:[#allocation22 + $0x70] ss:$8 sps:$4 sm:$0xff]  }
 0xa81   :  { %v3563_v8 = vadd.f32 %v3562_v2, %v3561_v0  ;;  %v6264_v0 = vld [vmem:[#allocation22 + $0x74] ss:$8 sps:$4 sm:$0xff]  }
 0xa82   :  { %v3557_v59 = vrot.slane %v3556_v57, 1 }
 0xa83   :  { %v3564_v11 = vrot.slane %v3563_v8, 1 }
 0xa84   :  { %v3558_v13 = vadd.f32 %v3557_v59, %v3556_v57 }
 0xa85   :  { %v3565_v17 = vadd.f32 %v3564_v11, %v3563_v8 }
 0xa86   :  { %v3566_v27 = vmul.f32 0.5, %v3558_v13  ;;  %v6268_v13 = vld [vmem:[#allocation26] ss:$8 sps:$4 sm:$0xff]  }
 0xa87   :  { %v3567_v16 = vmul.f32 0.5, %v3565_v17  ;;  %v6270_v17 = vld [vmem:[#allocation26 + $0x4] ss:$8 sps:$4 sm:$0xff]  }
 0xa88   :  { %v3568_v29 = vadd.f32 1e-05, %v3566_v27  ;;  %v6273_v27 = vld [vmem:[#allocation26 + $0x14] ss:$8 sps:$4 sm:$0xff]  }
 0xa89   :  { %v3569_v30 = vadd.f32 1e-05, %v3567_v16  ;;  %v6271_v16 = vld [vmem:[#allocation26 + $0x10] ss:$8 sps:$4 sm:$0xff]  }
 0xa8a   :  { %6352 = vrsqrt.f32 %v3568_v29  ;;  %v6276_v29 = vld [vmem:[#allocation26 + $0x24] ss:$8 sps:$4 sm:$0xff]  }
 0xa8b   :  { %6354 = vrsqrt.f32 %v3569_v30  ;;  %v6274_v30 = vld [vmem:[#allocation26 + $0x20] ss:$8 sps:$4 sm:$0xff]  }
 0xa94   :  { %v6353_v43 = vpop.eup %6352 }
 0xa95   :  { %v6355_v10 = vpop.eup %6354  ;;  %v3572_v55 = vmul.f32 %v6353_v43, %v3548_v47  ;;  %v6247_v47 = vld [vmem:[#allocation22 + $0x20] ss:$8 sps:$4 sm:$0xff]  }
 0xa96   :  { %v3573_v26 = vmul.f32 %v6355_v10, %v3549_v39  ;;  %v6252_v39 = vld [vmem:[#allocation22 + $0x34] ss:$8 sps:$4 sm:$0xff]   ;;  %v6279_v43 = vld [vmem:[#allocation26 + $0x34] ss:$8 sps:$4 sm:$0xff]   ;;  %v6277_v10 = vld [vmem:[#allocation26 + $0x30] ss:$8 sps:$4 sm:$0xff]  }
 0xa97   :  { %v3574_v33 = vmax.f32 %v3572_v55, 0.0  ;;  %v6282_v55 = vld [vmem:[#allocation26 + $0x44] ss:$8 sps:$4 sm:$0xff]  }
 0xa98   :  { %v3575_v24 = vmax.f32 %v3573_v26, 0.0  ;;  %v6280_v26 = vld [vmem:[#allocation26 + $0x40] ss:$8 sps:$4 sm:$0xff]  }
 0xa99   :  { %v3576_v36 = vpack.c.bf16 %v3574_v33, %v3574_v33  ;;  %v6283_v33 = vld [vmem:[#allocation26 + $0x50] ss:$8 sps:$4 sm:$0xff]  }
 0xa9a   :  { %v3577_v61 = vpack.c.bf16 %v3575_v24, %v3575_v24  ;;  %v6285_v24 = vld [vmem:[#allocation26 + $0x54] ss:$8 sps:$4 sm:$0xff]  }
 0xa9b   :  { %v3638_v51 = vsel %vm3590_vm3, %v3576_v36, 0  ;;  %v6291_v36 = vld [vmem:[#allocation26 + $0x74] ss:$8 sps:$4 sm:$0xff]  }
 0xa9c   :  { %v3592_v58 = vsel %vm3590_vm3, %v3577_v61, 0  ;;  %v6288_v61 = vld [vmem:[#allocation26 + $0x64] ss:$8 sps:$4 sm:$0xff]  }
 0xa9d   :  { %5821 = vmatpush3.bf16.msra.mxu1 %v3592_v58  ;;  %v6286_v58 = vld [vmem:[#allocation26 + $0x60] ss:$8 sps:$4 sm:$0xff]  }
 0xa9e   :  { %5826 = vmatprep.subr.bf16.mxu1 %v7017_v14 }
 0xaa0   :  { %5823 = vmatmul.mubr.msk.bf16.vlgmr.msra.gmra.mrb[60].mxu1 %vm7929_vm5, %v7775_v60 }
 0xaa1   :  { %5827 = vmatpush3.bf16.msra.mxu1 %v3638_v51  ;;  %5828 = vmatprep.mubr.msk.bf16.mxu1 %vm7018_vm0, %v7017_v14  ;;  %v3699_v51 = vld [vmem:[#allocation25] sm:$0x3] }
 0xaa2   :  { %3893 = vmatprep.subr.bf16.mxu1 %v6243_v48  ;;  %v6289_v48 = vld [vmem:[#allocation26 + $0x70] ss:$8 sps:$4 sm:$0xff]  }
 0xaac   :  { %5829 = vmatmul.mubr.msk.bf16.vlgmr.msra.gmra.mrb[60].mxu1 %vm7929_vm5, %v7790_v49 }
 0xaad   :  { %3894 = vmatpush1.bf16.msra.mxu1 %v6241_v46  ;;  %3925 = vmatprep.mubr.bf16.mxu1 %v7020_v50 }
 0xaae   :  { %3895 = vmatprep.subr.bf16.mxu1 %v6246_v52 }
 0xab1   :  { %3896 = vmatpush1.bf16.msra.mxu1 %v6244_v40  ;;  %v3940_v40 = vrot.slane %v3699_v51, %v7614_v22 }
 0xab2   :  { %3897 = vmatprep.subr.bf16.mxu1 %v6249_v42 }
 0xab5   :  { %3898 = vmatpush1.bf16.msra.mxu1 %v6247_v47 }
 0xab6   :  { %3899 = vmatprep.subr.bf16.mxu1 %v6252_v39  ;;  %v3944_v39 = vrot.slane %v3699_v51, %v7619_v25 }
 0xab9   :  { %3900 = vmatpush1.bf16.msra.mxu1 %v6250_v53 }
 0xaba   :  { %3901 = vmatprep.subr.bf16.mxu1 %v6255_v21 }
 0xabd   :  { %3902 = vmatpush1.bf16.msra.mxu1 %v6253_v35 }
 0xabe   :  { %3903 = vmatprep.subr.bf16.mxu1 %v6258_v32 }
 0xac1   :  { %3904 = vmatpush1.bf16.msra.mxu1 %v6256_v34 }
 0xac2   :  { %3905 = vmatprep.subr.bf16.mxu1 %v6261_v54 }
 0xac5   :  { %3906 = vmatpush1.bf16.msra.mxu1 %v6259_v56 }
 0xac6   :  { %3907 = vmatprep.subr.bf16.mxu1 %v6264_v0 }
 0xac9   :  { %3908 = vmatpush1.bf16.msra.mxu1 %v6262_v37 }
 0xaca   :  { %4296 = vmatprep.subr.bf16.mxu1 %v6270_v17 }
 0xb7f   :  { %v3674_v2 = vpop.f32.mrb[60].mxu1 }
 0xb80   :  { %v3680_v57 = vpack.c.bf16 %v3674_v2, %v3674_v2  ;;  %v5830_v8 = vpop.f32.mrb[61].mxu1 }
 0xb81   :  { %v3677_v59 = vpop.f32.mrb[62].mxu1 }
 0xb82   :  { %v5831_v11 = vpop.f32.mrb[63].mxu1  ;;  %3926 = vmatmul.mubr.bf16.vlgmr.msra.gmra.mrb[64].mxu1 %v3680_v57 }
 0xb83   :  { %4328 = vmatprep.mubr.bf16.mxu1 %v7020_v50  ;;  %4297 = vmatpush1.bf16.msra.mxu1 %v6268_v13 }
 0xb84   :  { %4298 = vmatprep.subr.bf16.mxu1 %v6273_v27 }
 0xb87   :  { %4299 = vmatpush1.bf16.msra.mxu1 %v6271_v16 }
 0xb88   :  { %4300 = vmatprep.subr.bf16.mxu1 %v6276_v29 }
 0xb8b   :  { %4301 = vmatpush1.bf16.msra.mxu1 %v6274_v30 }
 0xb8c   :  { %4302 = vmatprep.subr.bf16.mxu1 %v6279_v43 }
 0xb8f   :  { %4303 = vmatpush1.bf16.msra.mxu1 %v6277_v10 }
 0xb90   :  { %4304 = vmatprep.subr.bf16.mxu1 %v6282_v55 }
 0xb93   :  { %4305 = vmatpush1.bf16.msra.mxu1 %v6280_v26 }
 0xb94   :  { %4306 = vmatprep.subr.bf16.mxu1 %v6285_v24 }
 0xb97   :  { %4307 = vmatpush1.bf16.msra.mxu1 %v6283_v33 }
 0xb98   :  { %4308 = vmatprep.subr.bf16.mxu1 %v6288_v61 }
 0xb9b   :  { %4309 = vmatpush1.bf16.msra.mxu1 %v6286_v58 }
 0xb9c   :  { %4310 = vmatprep.subr.bf16.mxu1 %v6291_v36 }
 0xb9f   :  { %4311 = vmatpush1.bf16.msra.mxu1 %v6289_v48 }
 0xc55   :  { %v3927_v46 = vpop.f32.mrb[64].mxu1 }
 0xc56   :  { %v3928_v52 = vadd.f32 %v3927_v46, %v7758_v45  ;;  %v3929_v42 = vpop.f32.mrb[65].mxu1 }
 0xc57   :  { %v3930_v47 = vadd.f32 %v3929_v42, %v7760_v38  ;;  %v3931_v53 = vpop.f32.mrb[66].mxu1 }
 0xc58   :  { %v3934_v21 = vadd.f32 %v3928_v52, %v7754_v1  ;;  %v3932_v35 = vpop.f32.mrb[67].mxu1 }
 0xc59   :  { %v3935_v32 = vadd.f32 %v3930_v47, %v7756_v31 }
 0xc5a   :  { %v3947_v34 = vadd.f32 %v3940_v40, %v3934_v21 }
 0xc5b   :  { %v3948_v54 = vadd.f32 %v3944_v39, %v3935_v32 }
 0xc5c   :  { %v3949_v56 = vsel %vm1109_vm7, %v3947_v34, 0.0 }
 0xc5d   :  { %v3950_v0 = vrot.slane %v3949_v56, 4  ;;  %v3956_v45 = vsel %vm1109_vm7, %v3948_v54, 0.0 }
 0xc5e   :  { %v3957_v37 = vrot.slane %v3956_v45, 4 }
 0xc5f   :  { %v3951_v2 = vadd.f32 %v3950_v0, %v3949_v56 }
 0xc60   :  { %v3958_v57 = vadd.f32 %v3957_v37, %v3956_v45 }
 0xc61   :  { %v3952_v8 = vrot.slane %v3951_v2, 2 }
 0xc62   :  { %v3959_v38 = vrot.slane %v3958_v57, 2 }
 0xc63   :  { %v3953_v59 = vadd.f32 %v3952_v8, %v3951_v2  ;;  %v4112_v2 = vpack.c.bf16 %v7607_v6, %v7607_v6  ;;  %v4104_v8 = vmul.u32 4, %v7401_v3  ;;  %v4111_v6 = vpack.c.bf16 %v7603_v4, %v7603_v4 }
 0xc64   :  { %v3960_v11 = vadd.f32 %v3959_v38, %v3958_v57  ;;  %v4106_v38 = vmul.u32 4, %v7720_v18 }
 0xc65   :  { %v3954_v13 = vrot.slane %v3953_v59, 1  ;;  %vm4105_vm11 = vcmp.ge.s32.totalorder %v7394_v62, %v4104_v8 }
 0xc66   :  { %v3961_v17 = vrot.slane %v3960_v11, 1  ;;  %vm4107_vm13 = vcmp.lt.s32.totalorder %v7394_v62, %v4106_v38 }
 0xc67   :  { %v3955_v1 = vadd.f32 %v3954_v13, %v3953_v59  ;;  %vm4108_vm14 = vmand %vm4105_vm11, %vm4107_vm13  ;;  %v4117_v59 = vsel %vm3590_vm3, %v4111_v6, 0 }
 0xc68   :  { %v3962_v27 = vadd.f32 %v3961_v17, %v3960_v11  ;;  %v4109_v11 = vsel %vm4108_vm14, 1.0, %v7017_v14  ;;  %v6265_v17 = vld [vmem:[#allocation28] ss:$8 sps:$4 sm:$0xff]  }
 0xc69   :  { %v4110_v13 = vpack.c.bf16 %v4109_v11, %v4109_v11 }
 0xc6a   :  { %v3963_v16 = vadd.f32 %v3962_v27, %v3955_v1 }
 0xc6c   :  { %v3964_v31 = vmul.f32 0.125, %v3963_v16 }
 0xc6e   :  { %v3965_v29 = vsub.f32 %v3947_v34, %v3964_v31  ;;  %v3966_v30 = vsub.f32 %v3948_v54, %v3964_v31 }
 0xc70   :  { %v3967_v43 = vmul.f32 %v3965_v29, %v3965_v29  ;;  %v3975_v10 = vmul.f32 %v3966_v30, %v3966_v30 }
 0xc72   :  { %v3968_v55 = vsel %vm1109_vm7, %v3967_v43, 0.0  ;;  %v3976_v26 = vsel %vm1109_vm7, %v3975_v10, 0.0 }
 0xc73   :  { %v3969_v24 = vrot.slane %v3968_v55, 4  ;;  %v3977_v33 = vrot.slane %v3976_v26, 4 }
 0xc75   :  { %v3970_v61 = vadd.f32 %v3969_v24, %v3968_v55  ;;  %v3978_v58 = vadd.f32 %v3977_v33, %v3976_v26 }
 0xc77   :  { %v3971_v36 = vrot.slane %v3970_v61, 2  ;;  %v3979_v48 = vrot.slane %v3978_v58, 2 }
 0xc79   :  { %v3972_v51 = vadd.f32 %v3971_v36, %v3970_v61  ;;  %v3980_v46 = vadd.f32 %v3979_v48, %v3978_v58  ;;  %v4103_v61 = vld [vmem:[#allocation29] sm:$0x3] }
 0xc7a   :  { %v4343_v48 = vrot.slane %v4103_v61, %v7614_v22 }
 0xc7b   :  { %v3973_v52 = vrot.slane %v3972_v51, 1  ;;  %v3981_v40 = vrot.slane %v3980_v46, 1 }
 0xc7d   :  { %v3974_v42 = vadd.f32 %v3973_v52, %v3972_v51  ;;  %v3982_v47 = vadd.f32 %v3981_v40, %v3980_v46  ;;  %v4347_v52 = vrot.slane %v4103_v61, %v7619_v25 }
 0xc7f   :  { %v3983_v39 = vadd.f32 %v3982_v47, %v3974_v42 }
 0xc81   :  { %v3984_v53 = vmul.f32 0.125, %v3983_v39 }
 0xc83   :  { %v3985_v21 = vadd.f32 1e-05, %v3984_v53 }
 0xc85   :  { %6356 = vrsqrt.f32 %v3985_v21 }
 0xc8f   :  { %v6357_v35 = vpop.eup %6356 }
 0xc90   :  { %v3988_v32 = vmul.f32 %v6357_v35, %v3966_v30  ;;  %v3987_v34 = vmul.f32 %v6357_v35, %v3965_v29 }
 0xc92   :  { %v3991_v54 = vmax.f32 %v3988_v32, 0.0  ;;  %v3989_v56 = vmax.f32 %v3987_v34, 0.0 }
 0xc94   :  { %v3992_v0 = vpack.c.bf16 %v3991_v54, %v3991_v54  ;;  %v3990_v37 = vpack.c.bf16 %v3989_v56, %v3989_v56 }
 0xc96   :  { %v3997_v45 = vsel %vm2162_vm12, %v3992_v0, 0  ;;  %v4042_v57 = vsel %vm2162_vm12, %v3990_v37, 0  ;;  %vm4395_vm12 = vcmp.eq.s32.totalorder %v7397_v63, %v7765_v41 }
 0xc97   :  { %5833 = vmatpush3.bf16.msra.mxu0 %v3997_v45 }
 0xc98   :  { %5838 = vmatprep.subr.bf16.mxu0 %v7017_v14 }
 0xc9a   :  { %5835 = vmatmul.mubr.msk.bf16.vlgmr.msra.gmra.mrb[68].mxu0 %vm3993_vm10, %v7775_v60  ;;  %v6267_v60 = vld [vmem:[#allocation28 + $0x4] ss:$8 sps:$4 sm:$0xff]  }
 0xc9b   :  { %5839 = vmatpush3.bf16.msra.mxu0 %v4042_v57  ;;  %5840 = vmatprep.mubr.msk.bf16.mxu0 %vm7018_vm0, %v7017_v14 }
 0xc9c   :  { %5580 = vmatprep.subr.msk.bf16.mxu0 %vm3590_vm3, %v4112_v2 }
 0xca6   :  { %5841 = vmatmul.mubr.msk.bf16.vlgmr.msra.gmra.mrb[68].mxu0 %vm3993_vm10, %v7790_v49 }
 0xca7   :  { %4123 = vmatpush1.bf16.msra.mxu0 %v4117_v59  ;;  %4154 = vmatprep.mubr.bf16.mxu0 %v7020_v50 }
 0xca8   :  { %4175 = vmatprep.subr.bf16.mxu0 %v6267_v60 }
 0xcae   :  { %5581 = vmatmul.mubr.msk.bf16.vlgmr.msra.gmra.mrb[72].mxu0 %vm7929_vm5, %v4110_v13 }
 0xcaf   :  { %4176 = vmatpush1.bf16.msra.mxu0 %v6265_v17  ;;  %4207 = vmatprep.mubr.bf16.mxu0 %v7020_v50 }
 0xcb0   :  { %5844 = vmatprep.subr.bf16.mxu0 %v7017_v14 }
 0xcb6   :  { %5584 = vmatmul.mubr.msk.bf16.vlgmr.msra.gmra.mrb[76].mxu0 %vm565_vm1, %v7478_v15  ;;  %v4396_v15 = vsel %vm4395_vm12, 1.0, %v7017_v14 }
 0xcb7   :  { %5846 = vmatprep.mubr.msk.bf16.mxu0 %vm7018_vm0, %v7017_v14  ;;  %v4397_v33 = vpack.c.bf16 %v4396_v15, %v7770_v9 }
 0xd79   :  { %v4078_v4 = vpop.f32.mrb[68].mxu0 }
 0xd7a   :  { %v4084_v49 = vpack.c.bf16 %v4078_v4, %v4078_v4  ;;  %v5842_v1 = vpop.f32.mrb[69].mxu0 }
 0xd7b   :  { %v4081_v27 = vpop.f32.mrb[70].mxu0 }
 0xd7c   :  { %v5843_v16 = vpop.f32.mrb[71].mxu0  ;;  %4329 = vmatmul.mubr.bf16.vlgmr.msra.gmra.mrb[68].mxu1 %v4084_v49 }
 0xd7d   :  { %5858 = vmatprep.mubr.msk.bf16.mxu1 %vm565_vm1, %v4397_v33 }
 0xd81   :  { %v4156_v31 = vpop.f32.mrb[72].mxu0 }
 0xd82   :  { %v4158_v29 = vpop.f32.mrb[73].mxu0 }
 0xd83   :  { %v4160_v30 = vpop.f32.mrb[74].mxu0 }
 0xd84   :  { %v4161_v43 = vpop.f32.mrb[75].mxu0 }
 0xd89   :  { %v4209_v10 = vpop.f32.mrb[76].mxu0 }
 0xd8a   :  { %v4211_v55 = vpop.f32.mrb[77].mxu0 }
 0xd8b   :  { %v4213_v26 = vpop.f32.mrb[78].mxu0 }
 0xd8c   :  { %v4214_v24 = vpop.f32.mrb[79].mxu0 }
 0xe4f   :  { %v4330_v58 = vpop.f32.mrb[68].mxu1 }
 0xe50   :  { %v4331_v36 = vadd.f32 %v4330_v58, %v4209_v10  ;;  %v4332_v51 = vpop.f32.mrb[69].mxu1 }
 0xe51   :  { %v4333_v46 = vadd.f32 %v4332_v51, %v4211_v55  ;;  %v4334_v40 = vpop.f32.mrb[70].mxu1 }
 0xe52   :  { %v4337_v42 = vadd.f32 %v4331_v36, %v4156_v31  ;;  %v4335_v47 = vpop.f32.mrb[71].mxu1 }
 0xe53   :  { %v4338_v39 = vadd.f32 %v4333_v46, %v4158_v29 }
 0xe54   :  { %v4350_v53 = vadd.f32 %v4343_v48, %v4337_v42  ;;  %v4524_v42 = vpack.c.bf16 %v7609_v7, %v7609_v7  ;;  %v4523_v7 = vpack.c.bf16 %v7605_v5, %v7605_v5 }
 0xe55   :  { %v4351_v21 = vadd.f32 %v4347_v52, %v4338_v39  ;;  %v4512_v39 = vmul.u32 8, %v7401_v3 }
 0xe56   :  { %v4352_v35 = vrot.slane %v4350_v53, 4 }
 0xe57   :  { %v4358_v32 = vrot.slane %v4351_v21, 4  ;;  %vm4513_vm2 = vcmp.ge.s32.totalorder %v7394_v62, %v4512_v39 }
 0xe58   :  { %v4353_v9 = vadd.f32 %v4352_v35, %v4350_v53  ;;  %v6294_v35 = vld [vmem:[#allocation32 + $0x4] ss:$8 sps:$4 sm:$0xff]  }
 0xe59   :  { %v4359_v34 = vadd.f32 %v4358_v32, %v4351_v21  ;;  %v4529_v32 = vsel %vm3590_vm3, %v4523_v7, 0 }
 0xe5a   :  { %v4354_v54 = vrot.slane %v4353_v9, 2 }
 0xe5b   :  { %v4360_v56 = vrot.slane %v4359_v34, 2 }
 0xe5c   :  { %v4355_v0 = vadd.f32 %v4354_v54, %v4353_v9  ;;  %v6292_v54 = vld [vmem:[#allocation32] ss:$8 sps:$4 sm:$0xff]  }
 0xe5d   :  { %v4361_v45 = vadd.f32 %v4360_v56, %v4359_v34  ;;  %v6295_v56 = vld [vmem:[#allocation31] ss:$8 sps:$4 sm:$0xff]  }
 0xe5e   :  { %v4356_v37 = vrot.slane %v4355_v0, 1 }
 0xe5f   :  { %v4362_v2 = vrot.slane %v4361_v45, 1 }
 0xe60   :  { %v4357_v57 = vadd.f32 %v4356_v37, %v4355_v0  ;;  %v6300_v0 = vld [vmem:[#allocation31 + $0x14] ss:$8 sps:$4 sm:$0xff]   ;;  %v6303_v37 = vld [vmem:[#allocation31 + $0x24] ss:$8 sps:$4 sm:$0xff]  }
 0xe61   :  { %v4363_v8 = vadd.f32 %v4362_v2, %v4361_v45  ;;  %v6298_v45 = vld [vmem:[#allocation31 + $0x10] ss:$8 sps:$4 sm:$0xff]   ;;  %v6301_v2 = vld [vmem:[#allocation31 + $0x20] ss:$8 sps:$4 sm:$0xff]  }
 0xe63   :  { %v4364_v38 = vadd.f32 %v4363_v8, %v4357_v57  ;;  %v6306_v57 = vld [vmem:[#allocation31 + $0x34] ss:$8 sps:$4 sm:$0xff]   ;;  %v6304_v8 = vld [vmem:[#allocation31 + $0x30] ss:$8 sps:$4 sm:$0xff]  }
 0xe65   :  { %v4365_v6 = vmul.f32 0.0625, %v4364_v38  ;;  %v6309_v38 = vld [vmem:[#allocation31 + $0x44] ss:$8 sps:$4 sm:$0xff]  }
 0xe67   :  { %v4366_v60 = vsub.f32 %v4350_v53, %v4365_v6  ;;  %v4367_v59 = vsub.f32 %v4351_v21, %v4365_v6  ;;  %v4515_v53 = vmul.u32 8, %v7720_v18  ;;  %v4393_v21 = vsel %vm4392_vm15, 1.0, %v7017_v14  ;;  %v6307_v6 = vld [vmem:[#allocation31 + $0x40] ss:$8 sps:$4 sm:$0xff]  }
 0xe69   :  { %v4368_v11 = vmul.f32 %v4366_v60, %v4366_v60  ;;  %v4375_v13 = vmul.f32 %v4367_v59, %v4367_v59  ;;  %vm4516_vm4 = vcmp.lt.s32.totalorder %v7394_v62, %v4515_v53  ;;  %vm4517_vm6 = vcmp.lt.s32.totalorder %v7397_v63, %v4515_v53 }
 0xe6b   :  { %v4369_v17 = vrot.slane %v4368_v11, 4  ;;  %v4376_v4 = vrot.slane %v4375_v13, 4 }
 0xe6d   :  { %v4370_v49 = vadd.f32 %v4369_v17, %v4368_v11  ;;  %v4377_v1 = vadd.f32 %v4376_v4, %v4375_v13  ;;  %v6318_v11 = vld [vmem:[#allocation31 + $0x74] ss:$8 sps:$4 sm:$0xff]   ;;  %v6316_v13 = vld [vmem:[#allocation31 + $0x70] ss:$8 sps:$4 sm:$0xff]  }
 0xe6f   :  { %v4371_v27 = vrot.slane %v4370_v49, 2  ;;  %v4378_v16 = vrot.slane %v4377_v1, 2 }
 0xe71   :  { %v4372_v31 = vadd.f32 %v4371_v27, %v4370_v49  ;;  %v4379_v29 = vadd.f32 %v4378_v16, %v4377_v1  ;;  %v4511_v16 = vld [vmem:[#allocation34] sm:$0x3] }
 0xe73   :  { %v4373_v30 = vrot.slane %v4372_v31, 1  ;;  %v4380_v43 = vrot.slane %v4379_v29, 1 }
 0xe75   :  { %v4374_v10 = vadd.f32 %v4373_v30, %v4372_v31  ;;  %v4381_v55 = vadd.f32 %v4380_v43, %v4379_v29  ;;  %v4764_v31 = vrot.slane %v4511_v16, %v7614_v22  ;;  %v4768_v30 = vrot.slane %v4511_v16, %v7619_v25 }
 0xe76   :  { %v4828_v16 = vadd.s32 24, %v7394_v62 }
 0xe77   :  { %v4382_v26 = vadd.f32 %v4381_v55, %v4374_v10 }
 0xe78   :  { %vm4835_vm10 = vcmp.eq.s32.totalorder %v4828_v16, %v7765_v41 }
 0xe79   :  { %v4383_v24 = vmul.f32 0.0625, %v4382_v26 }
 0xe7b   :  { %v4384_v15 = vadd.f32 1e-05, %v4383_v24 }
 0xe7d   :  { %6358 = vrsqrt.f32 %v4384_v15 }
 0xe87   :  { %v6359_v61 = vpop.eup %6358 }
 0xe88   :  { %v4387_v58 = vmul.f32 %v6359_v61, %v4367_v59  ;;  %v4386_v36 = vmul.f32 %v6359_v61, %v4366_v60  ;;  %v6312_v60 = vld [vmem:[#allocation31 + $0x54] ss:$8 sps:$4 sm:$0xff]   ;;  %v6315_v59 = vld [vmem:[#allocation31 + $0x64] ss:$8 sps:$4 sm:$0xff]  }
 0xe8a   :  { %v4390_v48 = vmax.f32 %v4387_v58, 0.0  ;;  %v4388_v51 = vmax.f32 %v4386_v36, 0.0 }
 0xe8c   :  { %v4391_v46 = vpack.c.bf16 %v4390_v48, %v4390_v48  ;;  %v4389_v40 = vpack.c.bf16 %v4388_v51, %v4388_v51 }
 0xe8e   :  { %v4402_v52 = vsel %vm1109_vm7, %v4391_v46, 0  ;;  %v4449_v47 = vsel %vm1109_vm7, %v4389_v40, 0  ;;  %vm4514_vm7 = vcmp.ge.s32.totalorder %v7397_v63, %v4512_v39 }
 0xe8f   :  { %5845 = vmatpush3.bf16.msra.mxu0 %v4402_v52  ;;  %vm4519_vm9 = vmand %vm4514_vm7, %vm4517_vm6 }
 0xe90   :  { %5850 = vmatprep.subr.bf16.mxu0 %v7017_v14  ;;  %v4521_v34 = vsel %vm4519_vm9, 1.0, %v7017_v14 }
 0xe92   :  { %5847 = vmatmul.mubr.msk.bf16.vlgmr.msra.gmra.mrb[80].mxu0 %vm1106_vm8, %v4397_v33  ;;  %v7862_v33 = vpack.c.bf16 %v4393_v21, %v7786_v44  ;;  %v6297_v44 = vld [vmem:[#allocation31 + $0x4] ss:$8 sps:$4 sm:$0xff]  }
 0xe93   :  { %5851 = vmatpush3.bf16.msra.mxu0 %v4449_v47  ;;  %5852 = vmatprep.mubr.msk.bf16.mxu0 %vm7018_vm0, %v7017_v14  ;;  %vm4518_vm0 = vmand %vm4513_vm2, %vm4516_vm4  ;;  %vm4830_vm2 = vcmp.eq.s32.totalorder %v4828_v16, %v7725_v23 }
 0xe94   :  { %5603 = vmatprep.subr.msk.bf16.mxu0 %vm3590_vm3, %v4524_v42  ;;  %v4520_v9 = vsel %vm4518_vm0, 1.0, %v7017_v14 }
 0xe95   :  { %v4522_v5 = vpack.c.bf16 %v4521_v34, %v4520_v9 }
 0xe9e   :  { %5853 = vmatmul.mubr.msk.bf16.vlgmr.msra.gmra.mrb[80].mxu0 %vm1106_vm8, %v7862_v33 }
 0xe9f   :  { %4535 = vmatpush1.bf16.msra.mxu0 %v4529_v32  ;;  %4566 = vmatprep.mubr.bf16.mxu0 %v7020_v50 }
 0xea0   :  { %4590 = vmatprep.subr.bf16.mxu0 %v6294_v35 }
 0xea6   :  { %5604 = vmatmul.mubr.msk.bf16.vlgmr.msra.gmra.mrb[84].mxu0 %vm7929_vm5, %v4522_v5 }
 0xea7   :  { %4591 = vmatpush1.bf16.msra.mxu0 %v6292_v54  ;;  %4622 = vmatprep.mubr.bf16.mxu0 %v7020_v50 }
 0xea8   :  { %4713 = vmatprep.subr.bf16.mxu0 %v6297_v44 }
 0xeb2   :  { %5607 = vmatmul.mubr.msk.bf16.vlgmr.msra.gmra.mrb[84].mxu0 %vm565_vm1, %v7446_v28  ;;  %v6310_v28 = vld [vmem:[#allocation31 + $0x50] ss:$8 sps:$4 sm:$0xff]  }
 0xeb3   :  { %4714 = vmatpush1.bf16.msra.mxu0 %v6295_v56  ;;  %4745 = vmatprep.mubr.bf16.mxu0 %v7020_v50  ;;  %v6313_v50 = vld [vmem:[#allocation31 + $0x60] ss:$8 sps:$4 sm:$0xff]  }
 0xeb4   :  { %4715 = vmatprep.subr.bf16.mxu0 %v6300_v0 }
 0xeb7   :  { %4716 = vmatpush1.bf16.msra.mxu0 %v6298_v45 }
 0xeb8   :  { %4717 = vmatprep.subr.bf16.mxu0 %v6303_v37 }
 0xebb   :  { %4718 = vmatpush1.bf16.msra.mxu0 %v6301_v2 }
 0xebc   :  { %4719 = vmatprep.subr.bf16.mxu0 %v6306_v57 }
 0xebf   :  { %4720 = vmatpush1.bf16.msra.mxu0 %v6304_v8 }
 0xec0   :  { %4721 = vmatprep.subr.bf16.mxu0 %v6309_v38 }
 0xec3   :  { %4722 = vmatpush1.bf16.msra.mxu0 %v6307_v6 }
 0xec4   :  { %4723 = vmatprep.subr.bf16.mxu0 %v6312_v60 }
 0xec7   :  { %4724 = vmatpush1.bf16.msra.mxu0 %v6310_v28 }
 0xec8   :  { %4725 = vmatprep.subr.bf16.mxu0 %v6315_v59 }
 0xecb   :  { %4726 = vmatpush1.bf16.msra.mxu0 %v6313_v50 }
 0xecc   :  { %4727 = vmatprep.subr.bf16.mxu0 %v6318_v11 }
 0xecf   :  { %4728 = vmatpush1.bf16.msra.mxu0 %v6316_v13 }
 0xf71   :  { %v4485_v17 = vpop.f32.mrb[80].mxu0 }
 0xf72   :  { %v5854_v4 = vpop.f32.mrb[81].mxu0 }
 0xf73   :  { %v4488_v49 = vpop.f32.mrb[82].mxu0 }
 0xf74   :  { %v4492_v1 = vpack.c.bf16 %v4488_v49, %v4485_v17  ;;  %v5855_v27 = vpop.f32.mrb[83].mxu0 }
 0xf75   :  { %v4827_v27 = vadd.s32 16, %v7394_v62 }
 0xf76   :  { %4746 = vmatmul.mubr.bf16.vlgmr.msra.gmra.mrb[84].mxu0 %v4492_v1 }
 0xf77   :  { %vm4834_vm8 = vcmp.eq.s32.totalorder %v4827_v27, %v7765_v41  ;;  %vm4829_vm15 = vcmp.eq.s32.totalorder %v4827_v27, %v7725_v23 }
0x1049   :  { %v4747_v29 = vpop.f32.mrb[84].mxu0 }
0x104a   :  { %v4749_v43 = vpop.f32.mrb[85].mxu0  ;;  %v4771_v55 = vadd.f32 %v4764_v31, %v4747_v29 }
0x104b   :  { %v4751_v10 = vpop.f32.mrb[86].mxu0  ;;  %v4772_v15 = vadd.f32 %v4768_v30, %v4749_v43 }
0x104c   :  { %v4773_v26 = vadd.f32 %v4764_v31, %v4751_v10  ;;  %v4753_v24 = vpop.f32.mrb[87].mxu0 }
0x104d   :  { %v4774_v61 = vadd.f32 %v4768_v30, %v4753_v24 }
0x104e   :  { %v4775_v58 = vadd.f32 %v4773_v26, %v4771_v55 }
0x104f   :  { %v4782_v36 = vadd.f32 %v4774_v61, %v4772_v15 }
0x1050   :  { %v4776_v48 = vrot.slane %v4775_v58, 4 }
0x1051   :  { %v4783_v51 = vrot.slane %v4782_v36, 4 }
0x1052   :  { %v4777_v46 = vadd.f32 %v4776_v48, %v4775_v58  ;;  %v4837_v58 = vsel %vm4835_vm10, 1.0, %v7017_v14 }
0x1053   :  { %v4784_v52 = vadd.f32 %v4783_v51, %v4782_v36  ;;  %v4949_v51 = vmul.u32 16, %v7401_v3  ;;  %v4832_v3 = vsel %vm4830_vm2, 1.0, %v7017_v14 }
0x1054   :  { %v4778_v40 = vrot.slane %v4777_v46, 2 }
0x1055   :  { %v4785_v42 = vrot.slane %v4784_v52, 2  ;;  %vm4950_vm11 = vcmp.ge.s32.totalorder %v7394_v62, %v4949_v51  ;;  %vm4951_vm14 = vcmp.ge.s32.totalorder %v7397_v63, %v4949_v51  ;;  %vm4952_vm6 = vcmp.ge.s32.totalorder %v4827_v27, %v4949_v51 }
0x1056   :  { %v4779_v47 = vadd.f32 %v4778_v40, %v4777_v46  ;;  %v4954_v46 = vmul.u32 16, %v7720_v18  ;;  %vm4953_vm9 = vcmp.ge.s32.totalorder %v4828_v16, %v4949_v51  ;;  %v6319_v40 = vld [vmem:[#allocation37] sm:$0xff]  }
0x1057   :  { %v4786_v22 = vadd.f32 %v4785_v42, %v4784_v52  ;;  %v4969_v52 = vpack.c.bf16 %v7611_v12, %v7611_v12 }
0x1058   :  { %v4780_v39 = vrot.slane %v4779_v47, 1  ;;  %vm4955_vm13 = vcmp.lt.s32.totalorder %v7394_v62, %v4954_v46  ;;  %vm4956_vm12 = vcmp.lt.s32.totalorder %v7397_v63, %v4954_v46  ;;  %v4831_v62 = vsel %vm4829_vm15, 1.0, %v7017_v14 }
0x1059   :  { %v4787_v53 = vrot.slane %v4786_v22, 1  ;;  %vm4959_vm4 = vmand %vm4950_vm11, %vm4955_vm13  ;;  %vm4957_vm0 = vcmp.lt.s32.totalorder %v4827_v27, %v4954_v46  ;;  %v4833_v18 = vpack.c.bf16 %v4832_v3, %v4831_v62  ;;  %v4977_v23 = vsel %vm3590_vm3, %v4969_v52, 0 }
0x105a   :  { %v4781_v25 = vadd.f32 %v4780_v39, %v4779_v47  ;;  %vm4960_vm7 = vmand %vm4951_vm14, %vm4956_vm12  ;;  %v4963_v12 = vsel %vm4959_vm4, 1.0, %v7017_v14  ;;  %vm7958_vm11 = vcmask 15360   ;;  %v6320_v39 = vld [vmem:[#allocation35] sm:$0xff]  }
0x105b   :  { %v4788_v21 = vadd.f32 %v4787_v53, %v4786_v22  ;;  %v4964_v63 = vsel %vm4960_vm7, 1.0, %v7017_v14  ;;  %vm4961_vm10 = vmand %vm4952_vm6, %vm4957_vm0  ;;  %v6321_v53 = vld [vmem:[#allocation35 + $0x8] sm:$0xff]  }
0x105c   :  { %v4965_v42 = vsel %vm4961_vm10, 1.0, %v7017_v14  ;;  %vm7959_vm13 = vmmov %vm7958_vm11 }
0x105d   :  { %v4789_v7 = vadd.f32 %v4788_v21, %v4781_v25  ;;  %v6322_v25 = vld [vmem:[#allocation35 + $0x10] sm:$0xff]   ;;  %v6324_v21 = vld [vmem:[#allocation35 + $0x20] sm:$0xff]  }
0x105f   :  { %v4790_v35 = vmul.f32 0.03125, %v4789_v7  ;;  %v6325_v7 = vld [vmem:[#allocation35 + $0x28] sm:$0xff]  }
0x1061   :  { %v4791_v32 = vsub.f32 %v4771_v55, %v4790_v35  ;;  %v4792_v9 = vsub.f32 %v4773_v26, %v4790_v35  ;;  %v4793_v34 = vsub.f32 %v4772_v15, %v4790_v35  ;;  %v4794_v5 = vsub.f32 %v4774_v61, %v4790_v35  ;;  %v6327_v35 = vld [vmem:[#allocation35 + $0x38] sm:$0xff]  }
0x1062   :  { %v4836_v61 = vsel %vm4834_vm8, 1.0, %v7017_v14  ;;  %vm4958_vm8 = vcmp.lt.s32.totalorder %v4828_v16, %v4954_v46 }
0x1063   :  { %v4795_v54 = vmul.f32 %v4791_v32, %v4791_v32  ;;  %v4796_v44 = vmul.f32 %v4792_v9, %v4792_v9  ;;  %v4804_v56 = vmul.f32 %v4793_v34, %v4793_v34  ;;  %v4805_v0 = vmul.f32 %v4794_v5, %v4794_v5  ;;  %vm4962_vm5 = vmand %vm4953_vm9, %vm4958_vm8 }
0x1064   :  { %v4838_v41 = vpack.c.bf16 %v4837_v58, %v4836_v61  ;;  %v4966_v47 = vsel %vm4962_vm5, 1.0, %v7017_v14  ;;  %v6323_v14 = vld [vmem:[#allocation35 + $0x18] sm:$0xff]  }
0x1065   :  { %v4797_v45 = vadd.f32 %v4796_v44, %v4795_v54  ;;  %v4806_v37 = vadd.f32 %v4805_v0, %v4804_v56  ;;  %v4968_v22 = vpack.c.bf16 %v4966_v47, %v4965_v42  ;;  %v5641_v44 = vld [vmem:[#allocation38] ss:$0 sm:$0xff] }
0x1067   :  { %v4798_v2 = vrot.slane %v4797_v45, 4  ;;  %v4807_v57 = vrot.slane %v4806_v37, 4 }
0x1069   :  { %v4799_v8 = vadd.f32 %v4798_v2, %v4797_v45  ;;  %v4808_v38 = vadd.f32 %v4807_v57, %v4806_v37 }
0x106b   :  { %v4800_v6 = vrot.slane %v4799_v8, 2  ;;  %v4809_v60 = vrot.slane %v4808_v38, 2 }
0x106d   :  { %v4801_v28 = vadd.f32 %v4800_v6, %v4799_v8  ;;  %v4810_v59 = vadd.f32 %v4809_v60, %v4808_v38 }
0x106f   :  { %v4802_v50 = vrot.slane %v4801_v28, 1  ;;  %v4811_v11 = vrot.slane %v4810_v59, 1 }
0x1071   :  { %v4803_v13 = vadd.f32 %v4802_v50, %v4801_v28  ;;  %v4812_v17 = vadd.f32 %v4811_v11, %v4810_v59 }
0x1073   :  { %v4813_v4 = vadd.f32 %v4812_v17, %v4803_v13 }
0x1075   :  { %v4814_v49 = vmul.f32 0.03125, %v4813_v4 }
0x1077   :  { %v4815_v1 = vadd.f32 1e-05, %v4814_v49 }
0x1079   :  { %6360 = vrsqrt.f32 %v4815_v1 }
0x1083   :  { %v6361_v31 = vpop.eup %6360 }
0x1084   :  { %v4820_v29 = vmul.f32 %v6361_v31, %v4794_v5  ;;  %v4819_v30 = vmul.f32 %v6361_v31, %v4793_v34  ;;  %v4817_v43 = vmul.f32 %v6361_v31, %v4791_v32  ;;  %v4818_v10 = vmul.f32 %v6361_v31, %v4792_v9 }
0x1086   :  { %v4825_v55 = vmax.f32 %v4820_v29, 0.0  ;;  %v4824_v26 = vmax.f32 %v4819_v30, 0.0  ;;  %v4821_v24 = vmax.f32 %v4817_v43, 0.0  ;;  %v4822_v15 = vmax.f32 %v4818_v10, 0.0 }
0x1088   :  { %v4826_v36 = vpack.c.bf16 %v4825_v55, %v4824_v26  ;;  %v4823_v48 = vpack.c.bf16 %v4822_v15, %v4821_v24 }
0x108a   :  { %5856 = vmatprep.subr.bf16.mxu1 %v4826_v36 }
0x108b   :  { %5857 = vmatpush3.bf16.msra.mxu1 %v4826_v36 }
0x108c   :  { %5862 = vmatprep.subr.bf16.mxu1 %v4823_v48 }
0x108e   :  { %5859 = vmatmul.mubr.msk.bf16.vlgmr.msra.gmra.mrb[72].mxu1 %vm565_vm1, %v4838_v41 }
0x108f   :  { %5863 = vmatpush3.bf16.msra.mxu1 %v4823_v48  ;;  %5864 = vmatprep.mubr.msk.bf16.mxu1 %vm565_vm1, %v7862_v33  ;;  %v4967_v33 = vpack.c.bf16 %v4964_v63, %v4963_v12 }
0x1090   :  { %5932 = vmatprep.subr.msk.bf16.mxu1 %vm3590_vm3, %v4969_v52 }
0x109a   :  { %5865 = vmatmul.mubr.msk.bf16.vlgmr.msra.gmra.mrb[72].mxu1 %vm565_vm1, %v4833_v18 }
0x109b   :  { %5869 = vmatpush3.bf16.msra.mxu1 %v4977_v23  ;;  %5870 = vmatprep.mubr.msk.bf16.mxu1 %vm7958_vm11, %v4967_v33 }
0x109c   :  { %5874 = vmatprep.subr.bf16.mxu1 %v6319_v40 }
0x10a2   :  { %5871 = vmatmul.mubr.msk.bf16.vlgmr.msra.gmra.mrb[76].mxu1 %vm7959_vm13, %v4968_v22 }
0x10a3   :  { %5876 = vmatprep.mubr.msk.bf16.mxu1 %vm565_vm1, %v7407_v19  ;;  %5875 = vmatpush3.bf16.msra.mxu1 %v6319_v40  ;;  %v6326_v19 = vld [vmem:[#allocation35 + $0x30] sm:$0xff]  }
0x10a4   :  { %5880 = vmatprep.subr.bf16.mxu1 %v6320_v39 }
0x10ae   :  { %5877 = vmatmul.mubr.msk.bf16.vlgmr.msra.gmra.mrb[76].mxu1 %vm565_vm1, %v7409_v20 }
0x10af   :  { %5881 = vmatpush3.bf16.msra.mxu1 %v6320_v39 }
0x10b0   :  { %5882 = vmatprep.subr.bf16.mxu1 %v6321_v53 }
0x10b3   :  { %5883 = vmatpush3.bf16.msra.mxu1 %v6321_v53 }
0x10b4   :  { %5884 = vmatprep.subr.bf16.mxu1 %v6322_v25 }
0x10b7   :  { %5885 = vmatpush3.bf16.msra.mxu1 %v6322_v25 }
0x10b8   :  { %5886 = vmatprep.subr.bf16.mxu1 %v6323_v14 }
0x10bb   :  { %5887 = vmatpush3.bf16.msra.mxu1 %v6323_v14 }
0x10bc   :  { %5888 = vmatprep.subr.bf16.mxu1 %v6324_v21 }
0x10bf   :  { %5889 = vmatpush3.bf16.msra.mxu1 %v6324_v21 }
0x10c0   :  { %5890 = vmatprep.subr.bf16.mxu1 %v6325_v7 }
0x10c3   :  { %5891 = vmatpush3.bf16.msra.mxu1 %v6325_v7 }
0x10c4   :  { %5892 = vmatprep.subr.bf16.mxu1 %v6326_v19 }
0x10c7   :  { %5893 = vmatpush3.bf16.msra.mxu1 %v6326_v19 }
0x10c8   :  { %5894 = vmatprep.subr.bf16.mxu1 %v6327_v35 }
0x10cb   :  { %5895 = vmatpush3.bf16.msra.mxu1 %v6327_v35 }
0x116d   :  { %v5866_v20 = vpop.f32.mrb[72].mxu1 }
0x116e   :  { %v4932_v32 = vpop.f32.mrb[73].mxu1 }
0x116f   :  { %v5867_v9 = vpop.f32.mrb[74].mxu1 }
0x1170   :  { %v4948_v34 = vpack.c.bf16 %v5867_v9, %v5866_v20  ;;  %v4935_v5 = vpop.f32.mrb[75].mxu1 }
0x1171   :  { %v4947_v54 = vpack.c.bf16 %v4935_v5, %v4932_v32 }
0x1173   :  { %5896 = vmatprep.mubr.bf16.mxu1 %v4947_v54 }
0x1174   :  { %5897 = vmatmul.mubr.bf16.vlgmr.msra.gmra.mrb[76].mxu1 %v4948_v34 }
0x1247   :  { %v5898_v56 = vpop.f32.mrb[76].mxu1 }
0x1248   :  { %v5217_v0 = vadd.f32 %v5898_v56, %v5641_v44  ;;  %v5189_v45 = vpop.f32.mrb[77].mxu1 }
0x1249   :  { %v5215_v37 = vadd.f32 %v5641_v44, %v5189_v45  ;;  %v5899_v2 = vpop.f32.mrb[78].mxu1 }
0x124a   :  { %v5644_v57 = vmul.f32 -1.442695, %v5217_v0  ;;  %v5218_v8 = vadd.f32 %v5899_v2, %v5641_v44  ;;  %v5192_v38 = vpop.f32.mrb[79].mxu1 }
0x124b   :  { %v5642_v6 = vmul.f32 -1.442695, %v5215_v37  ;;  %v5216_v60 = vadd.f32 %v5641_v44, %v5192_v38 }
0x124c   :  { %6362 = vpow2.f32 %v5644_v57  ;;  %v5645_v28 = vmul.f32 -1.442695, %v5218_v8 }
0x124d   :  { %6364 = vpow2.f32 %v5642_v6  ;;  %v5643_v59 = vmul.f32 -1.442695, %v5216_v60 }
0x124e   :  { %6366 = vpow2.f32 %v5645_v28 }
0x124f   :  { %6368 = vpow2.f32 %v5643_v59 }
0x1256   :  { %v6363_v50 = vpop.eup %6362 }
0x1257   :  { %v6365_v11 = vpop.eup %6364  ;;  %v5233_v13 = vadd.f32 1.0, %v6363_v50 }
0x1258   :  { %v6367_v17 = vpop.eup %6366  ;;  %v5231_v4 = vadd.f32 1.0, %v6365_v11 }
0x1259   :  { %v6369_v49 = vpop.eup %6368  ;;  %6370 = vrcp.f32 %v5233_v13  ;;  %v5234_v1 = vadd.f32 1.0, %v6367_v17 }
0x125a   :  { %6372 = vrcp.f32 %v5231_v4  ;;  %v5232_v27 = vadd.f32 1.0, %v6369_v49 }
0x125b   :  { %6374 = vrcp.f32 %v5234_v1 }
0x125c   :  { %6376 = vrcp.f32 %v5232_v27 }
0x1263   :  { %v6371_v16 = vpop.eup %6370 }
0x1264   :  { %v6373_v31 = vpop.eup %6372  ;;  %5245 = vst [vmem:[#allocation40 + $0x10] sm:$0xff] %v6371_v16 }
0x1265   :  { %v6375_v29 = vpop.eup %6374  ;;  %5243 = vst [vmem:[#allocation40] sm:$0xff] %v6373_v31 }
0x1266   :  { %v6377_v30 = vpop.eup %6376  ;;  %5246 = vst [vmem:[#allocation40 + $0x18] sm:$0xff] %v6375_v29 }
0x1267   :  { %5244 = vst [vmem:[#allocation40 + $0x8] sm:$0xff] %v6377_v30 }
0x1268   :  { %6917 = shalt.err (!%p6914_p0)
}
0x1269   :  { %s6918_s20 = scalar_lea.hbm %s7185_s9, 512 }
0x126a   :  { %p6919_p1 = scmp.ne.s32.totalorder %s7185_s9, %s6918_s20  ;;  %p6922_p2 = scmp.lt.u32.totalorder %s6918_s20, %s7185_s9 }
0x126c   :  { %p6924_p3 = pnand %p6922_p2, %p6919_p1 }
0x126e   :  { %6927 = shalt.err (!%p6924_p3)
}
0x126f   :  { %5258 = dma.vmem_to_hbm [thread:$0]  %s5253_s19, 512, %s7185_s9, [#allocation4], %s6997_s4, %s6997_s4, %s6998_s26  }
0x1270   :  { %6954 = dma.done.wait [#allocation4], 512  }
0x1271   :  { %6955 = vsyncadd [#allocation4], 4294966784 }
0x1272   :  { %5262 = vsyncpa [#allocation3], 1 }
0x1273   :  { %5263 = vsyncpa [#allocation6], 1 }
0x1274   :  { %5264 = vsyncpa [#allocation9], 1 }
0x1275   :  { %5265 = vsyncpa [#allocation12], 1 }
0x1276   :  { %5266 = vsyncpa [#allocation15], 1 }
0x1277   :  { %5267 = vsyncpa [#allocation18], 1 }
0x1278   :  { %5268 = vsyncpa [#allocation21], 1 }
0x1279   :  { %5269 = vsyncpa [#allocation24], 1 }
0x127a   :  { %5270 = vsyncpa [#allocation27], 1 }
0x127b   :  { %5271 = vsyncpa [#allocation30], 1 }
0x127c   :  { %5272 = vsyncpa [#allocation33], 1 }
0x127d   :  { %5273 = vsyncpa [#allocation36], 1 }
0x127e   :  { %5274 = vsyncpa [#allocation39], 1 }
0x127f   :  { %5275 = vsyncpa [#allocation4], 1 }

</bundles_post_ra>
